<compile_context>
chip_gen: v5e
topology: v5e:2x2
jax: 0.10.0
libtpu: 0.0.40
codegen_flags: <defaults>
</compile_context>

<pallas_src>
import functools

import jax
import jax.numpy as jnp
from jax import lax
from jax.experimental import pallas as pl
from jax.experimental.pallas import tpu as pltpu


def _round_up(x, m):
    return ((x + m - 1) // m) * m


def _adj_topk_kernel(nv_rows_ref, nvt_ref, o_ref, *, alpha, k):
    """One row-block: a = rows @ full^T, adj = relu(tanh(alpha*a)), keep the
    top-k entries per row (lowest-index tie-break, matching torch.topk/scatter),
    zero everything else, and write adj*mask directly."""
    f32 = jnp.float32

    # ---- (tm, Dp) @ (Dp, Vp) on the MXU; HIGHEST precision to match reference.
    a = jnp.dot(nv_rows_ref[...], nvt_ref[...],
                precision=lax.Precision.HIGHEST,
                preferred_element_type=f32)                        # (tm, Vp)
    adj = jnp.maximum(jnp.tanh(alpha * a), f32(0.0))               # (tm, Vp) in [0, 1)

    _, Vp = adj.shape
    # (1, Vp) column iota; comparisons broadcast it across sublanes for free,
    # so no full-size iota buffer stays live through the unrolled k-loop.
    col = lax.broadcasted_iota(jnp.int32, (1, Vp), 1).astype(f32)

    work = adj                     # knocked-out entries become -1 (< any adj value >= 0)
    out = jnp.zeros_like(adj)      # accumulates adj * mask directly (no separate mask)
    # k is small & static -> Python-unrolled so the LLO scheduler can co-issue
    # the VPU selects with the XLU row reductions.
    for _ in range(k):
        row_max = jnp.max(work, axis=1, keepdims=True)             # (tm, 1)
        is_max = work == row_max
        # lowest column index among the maxima (lax.top_k / torch.topk order;
        # also guarantees padded zero columns — highest indices — never win a tie
        # against a real column).
        first = jnp.min(jnp.where(is_max, col, f32(Vp)), axis=1, keepdims=True)
        pick = col == first                                         # exactly one col/row
        out = jnp.where(pick, work, out)
        work = jnp.where(pick, f32(-1.0), work)
    # TODO(synk): fusing the two row reductions/iteration into one packed
    # value+index key is not exactly representable in 32 bits for adj in [0,1)
    # (30 value bits) once V > 2, so the exact 2-reduction form is kept.

    o_ref[...] = out.astype(o_ref.dtype)


def graph_undirected_forward(idx, emb_weight, lin_w, lin_b, *, k, alpha,
                             tm_target=512):
    """idx: (V,) int node indices; emb_weight: (nnodes, dim); lin_w: (dim, dim)
    torch Linear weight (out, in); lin_b: (dim,). Returns the (V, V) sparsified
    adjacency (float32)."""
    f32 = jnp.float32
    V = int(idx.shape[0])
    dim = int(emb_weight.shape[1])
    assert 1 <= int(k) <= V, "top-k requires 1 <= k <= number of nodes"
    alpha = float(alpha)

    # ---- emb1(idx), lin1, tanh once in the wrapper (plain XLA). O(V*dim^2) is
    # negligible next to the O(V^2) adjacency and is not redone per grid step.
    nv = emb_weight[idx].astype(f32)                                    # (V, dim)
    nv = jnp.tanh(alpha * (jnp.dot(nv, lin_w.T.astype(f32),
                                   precision=lax.Precision.HIGHEST)
                           + lin_b.astype(f32)))                        # (V, dim)

    # ---- lane-dense padding: V -> Vp, dim -> Dp (multiples of 128). Exact:
    # zero features contribute nothing to the matmul; zero-padded columns give
    # adj = 0 at the highest indices, so with the lowest-index tie-break they
    # never displace a real column. Result is sliced back to (V, V).
    Vp = _round_up(V, 128)
    Dp = _round_up(dim, 128)
    nv_pad = jnp.zeros((Vp, Dp), f32).at[:V, :dim].set(nv)              # row-tiled lhs
    nvt_pad = jnp.zeros((Dp, Vp), f32).at[:dim, :V].set(nv.T)           # resident rhs

    # ---- row tile: bounds the live set to O(tm*Vp) and lets the (tm, Vp) output
    # writeback DMA overlap compute of the next block. tm <= 512 stays within
    # v7x's 64 MiB VMEM; v5e/v6e (128 MiB) can take larger tm for very large V.
    tm = Vp
    for cand in (int(tm_target), 256, 128):
        if cand <= Vp and Vp % cand == 0:
            tm = cand
            break

    kernel = functools.partial(_adj_topk_kernel, alpha=alpha, k=int(k))
    out_p = pl.pallas_call(
        kernel,
        out_shape=jax.ShapeDtypeStruct((Vp, Vp), f32),
        grid=(Vp // tm,),
        in_specs=[
            pl.BlockSpec((tm, Dp), lambda i: (i, 0)),   # row block of nodevec
            pl.BlockSpec((Dp, Vp), lambda i: (0, 0)),   # full nodevec^T, stays resident
        ],
        out_specs=pl.BlockSpec((tm, Vp), lambda i: (i, 0)),
        compiler_params=pltpu.CompilerParams(
            # v7x has 2 TCs: split row blocks across them; no effect on v5e/v6e.
            dimension_semantics=("parallel",),
            # Footprint at these shapes is << 32 MiB; 32 MiB is safe under every
            # generation's physical VMEM (re-derive tm / limit for very large V).
            vmem_limit_bytes=32 * 1024 * 1024,
        ),
    )(nv_pad, nvt_pad)
    return out_p[:V, :V]


def graph_undirected_reference(idx, emb_weight, lin_w, lin_b, k, alpha):
    """Pure-JAX reference mirroring the torch module (topk + scatter mask)."""
    nv = emb_weight[idx]
    nv = jnp.tanh(alpha * (jnp.dot(nv, lin_w.T, precision=lax.Precision.HIGHEST)
                           + lin_b))
    a = jnp.dot(nv, nv.T, precision=lax.Precision.HIGHEST)
    adj = jax.nn.relu(jnp.tanh(alpha * a))
    _, t1 = lax.top_k(adj, k)                                      # (V, k) indices
    V = adj.shape[0]
    mask = jnp.zeros_like(adj).at[jnp.arange(V)[:, None], t1].set(1.0)
    return adj * mask


if __name__ == "__main__":
    nnodes, dim, k, alpha = 64, 32, 8, 3.0

    key = jax.random.PRNGKey(0)
    k1, k2, k3 = jax.random.split(key, 3)
    # Scales chosen so tanh stays out of exact saturation (well-conditioned top-k).
    emb_weight = 0.1 * jax.random.normal(k1, (nnodes, dim), dtype=jnp.float32)
    lin_w = jax.random.normal(k2, (dim, dim), dtype=jnp.float32) * (1.0 / dim ** 0.5)
    lin_b = 0.1 * jax.random.normal(k3, (dim,), dtype=jnp.float32)
    idx = jnp.arange(nnodes, dtype=jnp.int32)

    out = graph_undirected_forward(idx, emb_weight, lin_w, lin_b, k=k, alpha=alpha)
    out = jax.block_until_ready(out)

    ref = graph_undirected_reference(idx, emb_weight, lin_w, lin_b, k, alpha)
    assert out.shape == (nnodes, nnodes), out.shape
    assert jnp.allclose(out, ref, atol=1e-5, rtol=1e-5), float(
        jnp.max(jnp.abs(out - ref))
    )
    print("KERNEL_OK")
</pallas_src>

<mosaic_0001>
module attributes {stable_mosaic.version = 11 : i64} {
  func.func @_adj_topk_kernel(%arg0: i32, %arg1: memref<128x128xf32, #tpu.memory_space<vmem>>, %arg2: memref<128x128xf32, #tpu.memory_space<vmem>>, %arg3: memref<128x128xf32, #tpu.memory_space<vmem>>) attributes {dimension_semantics = [#tpu.dimension_semantics<parallel>], iteration_bounds = array<i64: 1>, scalar_prefetch = 0 : i64, scratch_operands = 0 : i64, tpu.core_type = #tpu.core_type<tc>, window_params = [{transform_indices = @transform_0, window_bounds = array<i64: 128, 128>}, {pipeline_mode = #tpu.pipeline_mode<synchronous>, transform_indices = @transform_1, window_bounds = array<i64: 128, 128>}, {transform_indices = @transform_2, window_bounds = array<i64: 128, 128>}]} {
    %c0 = arith.constant 0 : index
    %c0_0 = arith.constant 0 : index
    %0 = vector.load %arg1[%c0, %c0_0] : memref<128x128xf32, #tpu.memory_space<vmem>>, vector<128x128xf32>
    %c0_1 = arith.constant 0 : index
    %c0_2 = arith.constant 0 : index
    %1 = vector.load %arg2[%c0_1, %c0_2] : memref<128x128xf32, #tpu.memory_space<vmem>>, vector<128x128xf32>
    %cst = arith.constant dense<0.000000e+00> : vector<128x128xf32>
    %2 = tpu.matmul %0, %1, %cst {dimension_numbers = #tpu.dot_dimension_numbers<[1], [0], [0], [1], [0, 0, 1, 1], [], []>, precision = #tpu.contract_precision<fp32>} : vector<128x128xf32>, vector<128x128xf32>, vector<128x128xf32> -> vector<128x128xf32>
    %cst_3 = arith.constant 3.000000e+00 : f32
    %3 = vector.broadcast %cst_3 : f32 to vector<128x128xf32>
    %4 = arith.mulf %3, %2 : vector<128x128xf32>
    %5 = math.tanh %4 : vector<128x128xf32>
    %cst_4 = arith.constant 0.000000e+00 : f32
    %6 = vector.broadcast %cst_4 : f32 to vector<128x128xf32>
    %7 = arith.maximumf %5, %6 : vector<128x128xf32>
    %8 = tpu.iota {dimensions = array<i32: 1>} : vector<1x128xi32>
    %9 = arith.sitofp %8 : vector<1x128xi32> to vector<1x128xf32>
    %cst_5 = arith.constant 0.000000e+00 : f32
    %10 = vector.broadcast %cst_5 : f32 to vector<128x128xf32>
    %cst_6 = arith.constant dense<0xFF800000> : vector<128xf32>
    %11 = vector.multi_reduction <maximumf>, %7, %cst_6 [1] : vector<128x128xf32> to vector<128xf32>
    %12 = vector.shape_cast %11 : vector<128xf32> to vector<128x1xf32>
    %13 = vector.broadcast %12 : vector<128x1xf32> to vector<128x128xf32>
    %14 = arith.cmpf oeq, %7, %13 : vector<128x128xf32>
    %cst_7 = arith.constant 1.280000e+02 : f32
    %15 = vector.shape_cast %9 : vector<1x128xf32> to vector<1x128xf32>
    %16 = vector.broadcast %15 : vector<1x128xf32> to vector<128x128xf32>
    %17 = vector.broadcast %cst_7 : f32 to vector<128x128xf32>
    %18 = arith.select %14, %16, %17 : vector<128x128xi1>, vector<128x128xf32>
    %cst_8 = arith.constant dense<0x7F800000> : vector<128xf32>
    %19 = vector.multi_reduction <minimumf>, %18, %cst_8 [1] : vector<128x128xf32> to vector<128xf32>
    %20 = vector.shape_cast %19 : vector<128xf32> to vector<128x1xf32>
    %21 = vector.broadcast %9 : vector<1x128xf32> to vector<128x128xf32>
    %22 = vector.broadcast %20 : vector<128x1xf32> to vector<128x128xf32>
    %23 = arith.cmpf oeq, %21, %22 : vector<128x128xf32>
    %24 = arith.select %23, %7, %10 : vector<128x128xi1>, vector<128x128xf32>
    %cst_9 = arith.constant -1.000000e+00 : f32
    %25 = vector.broadcast %cst_9 : f32 to vector<128x128xf32>
    %26 = arith.select %23, %25, %7 : vector<128x128xi1>, vector<128x128xf32>
    %cst_10 = arith.constant dense<0xFF800000> : vector<128xf32>
    %27 = vector.multi_reduction <maximumf>, %26, %cst_10 [1] : vector<128x128xf32> to vector<128xf32>
    %28 = vector.shape_cast %27 : vector<128xf32> to vector<128x1xf32>
    %29 = vector.broadcast %28 : vector<128x1xf32> to vector<128x128xf32>
    %30 = arith.cmpf oeq, %26, %29 : vector<128x128xf32>
    %cst_11 = arith.constant 1.280000e+02 : f32
    %31 = vector.shape_cast %9 : vector<1x128xf32> to vector<1x128xf32>
    %32 = vector.broadcast %31 : vector<1x128xf32> to vector<128x128xf32>
    %33 = vector.broadcast %cst_11 : f32 to vector<128x128xf32>
    %34 = arith.select %30, %32, %33 : vector<128x128xi1>, vector<128x128xf32>
    %cst_12 = arith.constant dense<0x7F800000> : vector<128xf32>
    %35 = vector.multi_reduction <minimumf>, %34, %cst_12 [1] : vector<128x128xf32> to vector<128xf32>
    %36 = vector.shape_cast %35 : vector<128xf32> to vector<128x1xf32>
    %37 = vector.broadcast %9 : vector<1x128xf32> to vector<128x128xf32>
    %38 = vector.broadcast %36 : vector<128x1xf32> to vector<128x128xf32>
    %39 = arith.cmpf oeq, %37, %38 : vector<128x128xf32>
    %40 = arith.select %39, %26, %24 : vector<128x128xi1>, vector<128x128xf32>
    %cst_13 = arith.constant -1.000000e+00 : f32
    %41 = vector.broadcast %cst_13 : f32 to vector<128x128xf32>
    %42 = arith.select %39, %41, %26 : vector<128x128xi1>, vector<128x128xf32>
    %cst_14 = arith.constant dense<0xFF800000> : vector<128xf32>
    %43 = vector.multi_reduction <maximumf>, %42, %cst_14 [1] : vector<128x128xf32> to vector<128xf32>
    %44 = vector.shape_cast %43 : vector<128xf32> to vector<128x1xf32>
    %45 = vector.broadcast %44 : vector<128x1xf32> to vector<128x128xf32>
    %46 = arith.cmpf oeq, %42, %45 : vector<128x128xf32>
    %cst_15 = arith.constant 1.280000e+02 : f32
    %47 = vector.shape_cast %9 : vector<1x128xf32> to vector<1x128xf32>
    %48 = vector.broadcast %47 : vector<1x128xf32> to vector<128x128xf32>
    %49 = vector.broadcast %cst_15 : f32 to vector<128x128xf32>
    %50 = arith.select %46, %48, %49 : vector<128x128xi1>, vector<128x128xf32>
    %cst_16 = arith.constant dense<0x7F800000> : vector<128xf32>
    %51 = vector.multi_reduction <minimumf>, %50, %cst_16 [1] : vector<128x128xf32> to vector<128xf32>
    %52 = vector.shape_cast %51 : vector<128xf32> to vector<128x1xf32>
    %53 = vector.broadcast %9 : vector<1x128xf32> to vector<128x128xf32>
    %54 = vector.broadcast %52 : vector<128x1xf32> to vector<128x128xf32>
    %55 = arith.cmpf oeq, %53, %54 : vector<128x128xf32>
    %56 = arith.select %55, %42, %40 : vector<128x128xi1>, vector<128x128xf32>
    %cst_17 = arith.constant -1.000000e+00 : f32
    %57 = vector.broadcast %cst_17 : f32 to vector<128x128xf32>
    %58 = arith.select %55, %57, %42 : vector<128x128xi1>, vector<128x128xf32>
    %cst_18 = arith.constant dense<0xFF800000> : vector<128xf32>
    %59 = vector.multi_reduction <maximumf>, %58, %cst_18 [1] : vector<128x128xf32> to vector<128xf32>
    %60 = vector.shape_cast %59 : vector<128xf32> to vector<128x1xf32>
    %61 = vector.broadcast %60 : vector<128x1xf32> to vector<128x128xf32>
    %62 = arith.cmpf oeq, %58, %61 : vector<128x128xf32>
    %cst_19 = arith.constant 1.280000e+02 : f32
    %63 = vector.shape_cast %9 : vector<1x128xf32> to vector<1x128xf32>
    %64 = vector.broadcast %63 : vector<1x128xf32> to vector<128x128xf32>
    %65 = vector.broadcast %cst_19 : f32 to vector<128x128xf32>
    %66 = arith.select %62, %64, %65 : vector<128x128xi1>, vector<128x128xf32>
    %cst_20 = arith.constant dense<0x7F800000> : vector<128xf32>
    %67 = vector.multi_reduction <minimumf>, %66, %cst_20 [1] : vector<128x128xf32> to vector<128xf32>
    %68 = vector.shape_cast %67 : vector<128xf32> to vector<128x1xf32>
    %69 = vector.broadcast %9 : vector<1x128xf32> to vector<128x128xf32>
    %70 = vector.broadcast %68 : vector<128x1xf32> to vector<128x128xf32>
    %71 = arith.cmpf oeq, %69, %70 : vector<128x128xf32>
    %72 = arith.select %71, %58, %56 : vector<128x128xi1>, vector<128x128xf32>
    %cst_21 = arith.constant -1.000000e+00 : f32
    %73 = vector.broadcast %cst_21 : f32 to vector<128x128xf32>
    %74 = arith.select %71, %73, %58 : vector<128x128xi1>, vector<128x128xf32>
    %cst_22 = arith.constant dense<0xFF800000> : vector<128xf32>
    %75 = vector.multi_reduction <maximumf>, %74, %cst_22 [1] : vector<128x128xf32> to vector<128xf32>
    %76 = vector.shape_cast %75 : vector<128xf32> to vector<128x1xf32>
    %77 = vector.broadcast %76 : vector<128x1xf32> to vector<128x128xf32>
    %78 = arith.cmpf oeq, %74, %77 : vector<128x128xf32>
    %cst_23 = arith.constant 1.280000e+02 : f32
    %79 = vector.shape_cast %9 : vector<1x128xf32> to vector<1x128xf32>
    %80 = vector.broadcast %79 : vector<1x128xf32> to vector<128x128xf32>
    %81 = vector.broadcast %cst_23 : f32 to vector<128x128xf32>
    %82 = arith.select %78, %80, %81 : vector<128x128xi1>, vector<128x128xf32>
    %cst_24 = arith.constant dense<0x7F800000> : vector<128xf32>
    %83 = vector.multi_reduction <minimumf>, %82, %cst_24 [1] : vector<128x128xf32> to vector<128xf32>
    %84 = vector.shape_cast %83 : vector<128xf32> to vector<128x1xf32>
    %85 = vector.broadcast %9 : vector<1x128xf32> to vector<128x128xf32>
    %86 = vector.broadcast %84 : vector<128x1xf32> to vector<128x128xf32>
    %87 = arith.cmpf oeq, %85, %86 : vector<128x128xf32>
    %88 = arith.select %87, %74, %72 : vector<128x128xi1>, vector<128x128xf32>
    %cst_25 = arith.constant -1.000000e+00 : f32
    %89 = vector.broadcast %cst_25 : f32 to vector<128x128xf32>
    %90 = arith.select %87, %89, %74 : vector<128x128xi1>, vector<128x128xf32>
    %cst_26 = arith.constant dense<0xFF800000> : vector<128xf32>
    %91 = vector.multi_reduction <maximumf>, %90, %cst_26 [1] : vector<128x128xf32> to vector<128xf32>
    %92 = vector.shape_cast %91 : vector<128xf32> to vector<128x1xf32>
    %93 = vector.broadcast %92 : vector<128x1xf32> to vector<128x128xf32>
    %94 = arith.cmpf oeq, %90, %93 : vector<128x128xf32>
    %cst_27 = arith.constant 1.280000e+02 : f32
    %95 = vector.shape_cast %9 : vector<1x128xf32> to vector<1x128xf32>
    %96 = vector.broadcast %95 : vector<1x128xf32> to vector<128x128xf32>
    %97 = vector.broadcast %cst_27 : f32 to vector<128x128xf32>
    %98 = arith.select %94, %96, %97 : vector<128x128xi1>, vector<128x128xf32>
    %cst_28 = arith.constant dense<0x7F800000> : vector<128xf32>
    %99 = vector.multi_reduction <minimumf>, %98, %cst_28 [1] : vector<128x128xf32> to vector<128xf32>
    %100 = vector.shape_cast %99 : vector<128xf32> to vector<128x1xf32>
    %101 = vector.broadcast %9 : vector<1x128xf32> to vector<128x128xf32>
    %102 = vector.broadcast %100 : vector<128x1xf32> to vector<128x128xf32>
    %103 = arith.cmpf oeq, %101, %102 : vector<128x128xf32>
    %104 = arith.select %103, %90, %88 : vector<128x128xi1>, vector<128x128xf32>
    %cst_29 = arith.constant -1.000000e+00 : f32
    %105 = vector.broadcast %cst_29 : f32 to vector<128x128xf32>
    %106 = arith.select %103, %105, %90 : vector<128x128xi1>, vector<128x128xf32>
    %cst_30 = arith.constant dense<0xFF800000> : vector<128xf32>
    %107 = vector.multi_reduction <maximumf>, %106, %cst_30 [1] : vector<128x128xf32> to vector<128xf32>
    %108 = vector.shape_cast %107 : vector<128xf32> to vector<128x1xf32>
    %109 = vector.broadcast %108 : vector<128x1xf32> to vector<128x128xf32>
    %110 = arith.cmpf oeq, %106, %109 : vector<128x128xf32>
    %cst_31 = arith.constant 1.280000e+02 : f32
    %111 = vector.shape_cast %9 : vector<1x128xf32> to vector<1x128xf32>
    %112 = vector.broadcast %111 : vector<1x128xf32> to vector<128x128xf32>
    %113 = vector.broadcast %cst_31 : f32 to vector<128x128xf32>
    %114 = arith.select %110, %112, %113 : vector<128x128xi1>, vector<128x128xf32>
    %cst_32 = arith.constant dense<0x7F800000> : vector<128xf32>
    %115 = vector.multi_reduction <minimumf>, %114, %cst_32 [1] : vector<128x128xf32> to vector<128xf32>
    %116 = vector.shape_cast %115 : vector<128xf32> to vector<128x1xf32>
    %117 = vector.broadcast %9 : vector<1x128xf32> to vector<128x128xf32>
    %118 = vector.broadcast %116 : vector<128x1xf32> to vector<128x128xf32>
    %119 = arith.cmpf oeq, %117, %118 : vector<128x128xf32>
    %120 = arith.select %119, %106, %104 : vector<128x128xi1>, vector<128x128xf32>
    %cst_33 = arith.constant -1.000000e+00 : f32
    %121 = vector.broadcast %cst_33 : f32 to vector<128x128xf32>
    %122 = arith.select %119, %121, %106 : vector<128x128xi1>, vector<128x128xf32>
    %cst_34 = arith.constant dense<0xFF800000> : vector<128xf32>
    %123 = vector.multi_reduction <maximumf>, %122, %cst_34 [1] : vector<128x128xf32> to vector<128xf32>
    %124 = vector.shape_cast %123 : vector<128xf32> to vector<128x1xf32>
    %125 = vector.broadcast %124 : vector<128x1xf32> to vector<128x128xf32>
    %126 = arith.cmpf oeq, %122, %125 : vector<128x128xf32>
    %cst_35 = arith.constant 1.280000e+02 : f32
    %127 = vector.shape_cast %9 : vector<1x128xf32> to vector<1x128xf32>
    %128 = vector.broadcast %127 : vector<1x128xf32> to vector<128x128xf32>
    %129 = vector.broadcast %cst_35 : f32 to vector<128x128xf32>
    %130 = arith.select %126, %128, %129 : vector<128x128xi1>, vector<128x128xf32>
    %cst_36 = arith.constant dense<0x7F800000> : vector<128xf32>
    %131 = vector.multi_reduction <minimumf>, %130, %cst_36 [1] : vector<128x128xf32> to vector<128xf32>
    %132 = vector.shape_cast %131 : vector<128xf32> to vector<128x1xf32>
    %133 = vector.broadcast %9 : vector<1x128xf32> to vector<128x128xf32>
    %134 = vector.broadcast %132 : vector<128x1xf32> to vector<128x128xf32>
    %135 = arith.cmpf oeq, %133, %134 : vector<128x128xf32>
    %136 = arith.select %135, %122, %120 : vector<128x128xi1>, vector<128x128xf32>
    %c0_37 = arith.constant 0 : index
    %c0_38 = arith.constant 0 : index
    %137 = vector.load %arg3[%c0_37, %c0_38] : memref<128x128xf32, #tpu.memory_space<vmem>>, vector<128x128xf32>
    tpu.vector_store %arg3[%c0_37, %c0_38], %136 {strides = array<i32>} : memref<128x128xf32, #tpu.memory_space<vmem>>, vector<128x128xf32>,
    return
  }
  func.func @transform_0(%arg0: i32) -> (i32, i32) {
    %c0_i32 = arith.constant 0 : i32
    %c0_i32_0 = arith.constant 0 : i32
    return %arg0, %c0_i32 : i32, i32
  }
  func.func @transform_1(%arg0: i32) -> (i32, i32) {
    %c0_i32 = arith.constant 0 : i32
    %c0_i32_0 = arith.constant 0 : i32
    %c0_i32_1 = arith.constant 0 : i32
    return %c0_i32, %c0_i32_0 : i32, i32
  }
  func.func @transform_2(%arg0: i32) -> (i32, i32) {
    %c0_i32 = arith.constant 0 : i32
    %c0_i32_0 = arith.constant 0 : i32
    return %arg0, %c0_i32 : i32, i32
  }
}

</mosaic_0001>

<bundles_post_ra>
// kernel: tpu_custom_call.1
= control target key start
LH: loop header
LB: loop body
LE: loop exit
PB: predicated region body
PF: predicated region fallthrough
CT: control target
= control target key end

     0   :  { %7 = vsyncpa [#allocation3], 0  ;;  %s4287_s0 = inlined_call_operand.hbm [shape: f32[128,128], index: 0, kind: input, shape index: {}]   ;;  %s4288_s1 = inlined_call_operand.hbm [shape: f32[128,128], index: 1, kind: input, shape index: {}]   ;;  %s4289_s2 = inlined_call_operand.hbm [shape: f32[128,128], index: 2, kind: output, shape index: {}]  }
   0x1   :  { %8 = vsyncpa [#allocation6], 0 }
   0x2   :  { %9 = vsyncpa [#allocation4], 0  ;;  %s14_s11 = sshll.u32 %s4287_s0, 4  ;;  %s2252_s12 = smov [#allocation2]   ;;  %s15_s11 = int_to_ptr.hbm [resolvable:$true] %s14_s11 }
   0x3   :  { %s16_s13 = sshll.u32 %s2252_s12, 4  ;;  %s27_s16 = sshll.u32 %s4288_s1, 4  ;;  %s17_s13 = int_to_ptr.vmem [resolvable:$true] %s16_s13  ;;  %s28_s16 = int_to_ptr.hbm [resolvable:$true] %s27_s16 }
   0x4   :  { %s2253_s17 = smov 128   ;;  %s2254_s18 = smov 8  }
   0x5   :  { %22 = dma.hbm_to_vmem [thread:$0]  %s15_s11, 2048, %s17_s13, [#allocation3], %s2253_s17, %s2253_s17, %s2254_s18  }
   0x6   :  { %s2255_s19 = smov [#allocation5]  }
   0x7   :  { %s29_s20 = sshll.u32 %s2255_s19, 4  ;;  %s30_s20 = int_to_ptr.vmem [resolvable:$true] %s29_s20 }
   0x8   :  { %35 = dma.hbm_to_vmem [thread:$0]  %s28_s16, 2048, %s30_s20, [#allocation6], %s2253_s17, %s2253_s17, %s2254_s18  }
   0x9   :  { %2246 = dma.done.wait [#allocation3], 2048  }
   0xa   :  { %2247 = vsyncadd [#allocation3], 4294965248 }
   0xb   :  { %2248 = dma.done.wait [#allocation6], 2048  }
   0xc   :  { %2249 = vsyncadd [#allocation6], 4294965248  ;;  %v75_v0 = vld [vmem:[#allocation5 + $0x78] sm:$0xff]  ;;  %v74_v1 = vld [vmem:[#allocation5 + $0x70] sm:$0xff]  ;;  %s2256_s0 = smov [#allocation7]   ;;  %s2091_s23 = sshll.u32 %s4289_s2, 4  ;;  %s2092_s23 = int_to_ptr.hbm [resolvable:$true] %s2091_s23 }
   0xd   :  { %v73_v2 = vld [vmem:[#allocation5 + $0x68] sm:$0xff]  ;;  %v2284_v3 = vand.u32 4294901760, %v75_v0  ;;  %v2286_v4 = vand.u32 4294901760, %v74_v1  ;;  %v72_v6 = vld [vmem:[#allocation5 + $0x60] sm:$0xff]  ;;  %v71_v7 = vld [vmem:[#allocation5 + $0x58] sm:$0xff]  ;;  %s2089_s1 = sshll.u32 %s2256_s0, 4  ;;  %s2090_s1 = int_to_ptr.vmem [resolvable:$true] %s2089_s1 }
   0xe   :  { %v2288_v5 = vand.u32 4294901760, %v73_v2  ;;  %v70_v8 = vld [vmem:[#allocation5 + $0x50] sm:$0xff]  ;;  %v2290_v9 = vand.u32 4294901760, %v72_v6  ;;  %v2292_v10 = vand.u32 4294901760, %v71_v7  ;;  %v69_v12 = vld [vmem:[#allocation5 + $0x48] sm:$0xff]  ;;  %v68_v13 = vld [vmem:[#allocation5 + $0x40] sm:$0xff] }
   0xf   :  { %v2294_v11 = vand.u32 4294901760, %v70_v8  ;;  %2105 = vmatpush.msra.mxu2 %v2284_v3  ;;  %v2298_v14 = vsub.f32 %v75_v0, %v2284_v3  ;;  %v2301_v15 = vsub.f32 %v74_v1, %v2286_v4  ;;  %77 = vmatpush.msra.mxu0 %v2284_v3  ;;  %v67_v17 = vld [vmem:[#allocation5 + $0x38] sm:$0xff]  ;;  %v2307_v18 = vand.u32 4294901760, %v69_v12  ;;  %v66_v25 = vld [vmem:[#allocation5 + $0x30] sm:$0xff]  ;;  %v65_v33 = vld [vmem:[#allocation5 + $0x28] sm:$0xff] }
  0x10   :  { %v2304_v16 = vsub.f32 %v73_v2, %v2288_v5  ;;  %v2310_v19 = vsub.f32 %v72_v6, %v2290_v9  ;;  %v2313_v20 = vsub.f32 %v71_v7, %v2292_v10  ;;  %v2319_v24 = vand.u32 4294901760, %v68_v13  ;;  %v64_v42 = vld [vmem:[#allocation5 + $0x20] sm:$0xff]  ;;  %v63_v49 = vld [vmem:[#allocation5 + $0x18] sm:$0xff]  ;;  %v62_v55 = vld [vmem:[#allocation5 + $0x10] sm:$0xff] }
  0x11   :  { %2106 = vmatpush.msra.mxu2 %v2286_v4  ;;  %v239_v21 = vand.u32 4294901760, %v2298_v14  ;;  %v245_v22 = vand.u32 4294901760, %v2301_v15  ;;  %79 = vmatpush.msra.mxu0 %v2286_v4  ;;  %v2323_v27 = vand.u32 4294901760, %v67_v17  ;;  %v2326_v28 = vsub.f32 %v70_v8, %v2294_v11  ;;  %v52_v47 = vld [vmem:[#allocation2 + $0x40] sm:$0xff]  ;;  %v61_v62 = vld [vmem:[#allocation5 + $0x8] sm:$0xff] }
  0x12   :  { %v251_v23 = vand.u32 4294901760, %v2304_v16  ;;  %v257_v26 = vand.u32 4294901760, %v2310_v19  ;;  %v263_v32 = vand.u32 4294901760, %v2313_v20  ;;  %v2343_v35 = vand.u32 4294901760, %v66_v25  ;;  %v60_v2 = vld [vmem:[#allocation5] sm:$0xff] }
  0x13   :  { %2107 = vmatpush.msra.mxu2 %v2288_v5  ;;  %v240_v29 = vsub.f32 %v2298_v14, %v239_v21  ;;  %v246_v30 = vsub.f32 %v2301_v15, %v245_v22  ;;  %81 = vmatpush.msra.mxu0 %v2288_v5  ;;  %v2346_v36 = vsub.f32 %v69_v12, %v2307_v18  ;;  %v4301_v39 = vand.u32 4294901760, %v2326_v28  ;;  %v44_v12 = vld [vmem:[#allocation2] sm:$0xff] }
  0x14   :  { %v252_v31 = vsub.f32 %v2304_v16, %v251_v23  ;;  %v258_v34 = vsub.f32 %v2310_v19, %v257_v26  ;;  %v2352_v40 = vsub.f32 %v68_v13, %v2319_v24  ;;  %v2354_v41 = vand.u32 4294901760, %v65_v33 }
  0x15   :  { %2108 = vmatpush.msra.mxu2 %v2290_v9  ;;  %v241_v37 = vand.u32 4294901760, %v240_v29  ;;  %v247_v38 = vand.u32 4294901760, %v246_v30  ;;  %83 = vmatpush.msra.mxu0 %v2290_v9  ;;  %v264_v44 = vsub.f32 %v2313_v20, %v263_v32  ;;  %v4300_v45 = vand.u32 4294901760, %v2346_v36  ;;  %v53_v30 = vld [vmem:[#allocation2 + $0x48] sm:$0xff] }
  0x16   :  { %v253_v43 = vand.u32 4294901760, %v252_v31  ;;  %v2362_v46 = vsub.f32 %v67_v17, %v2323_v27  ;;  %v4297_v48 = vand.u32 4294901760, %v2352_v40  ;;  %v259_v50 = vand.u32 4294901760, %v258_v34 }
  0x17   :  { %2109 = vmatpush.msra.mxu2 %v2292_v10  ;;  %2121 = vmatpush.msra.mxu3 %v241_v37  ;;  %v270_v51 = vsub.f32 %v2326_v28, %v4301_v39  ;;  %v2370_v52 = vand.u32 4294901760, %v64_v42  ;;  %v2373_v53 = vsub.f32 %v66_v25, %v2343_v35  ;;  %v2377_v56 = vand.u32 4294901760, %v52_v47 }
  0x18   :  { %242 = vmatpush.msra.mxu1 %v241_v37  ;;  %85 = vmatpush.msra.mxu0 %v2292_v10  ;;  %v4294_v54 = vand.u32 4294901760, %v2362_v46  ;;  %v265_v57 = vand.u32 4294901760, %v264_v44  ;;  %v276_v58 = vsub.f32 %v2346_v36, %v4300_v45  ;;  %v2383_v59 = vand.u32 4294901760, %v63_v49  ;;  %v55_v45 = vld [vmem:[#allocation2 + $0x58] sm:$0xff] }
  0x19   :  { %2110 = vmatpush.msra.mxu2 %v2294_v11  ;;  %2122 = vmatpush.msra.mxu3 %v247_v38  ;;  %v2386_v60 = vsub.f32 %v65_v33, %v2354_v41  ;;  %v282_v61 = vsub.f32 %v2352_v40, %v4297_v48  ;;  %v271_v63 = vand.u32 4294901760, %v270_v51  ;;  %v2393_v0 = vand.u32 4294901760, %v62_v55 }
  0x1a   :  { %248 = vmatpush.msra.mxu1 %v247_v38  ;;  %87 = vmatpush.msra.mxu0 %v2294_v11  ;;  %v4293_v1 = vand.u32 4294901760, %v2373_v53  ;;  %v2397_v6 = vsub.f32 %v64_v42, %v2370_v52  ;;  %v288_v7 = vsub.f32 %v2362_v46, %v4294_v54  ;;  %v2404_v8 = vsub.f32 %v52_v47, %v2377_v56 }
  0x1b   :  { %2111 = vmatpush.msra.mxu2 %v2307_v18  ;;  %2123 = vmatpush.msra.mxu3 %v253_v43  ;;  %v277_v13 = vand.u32 4294901760, %v276_v58  ;;  %v2407_v17 = vand.u32 4294901760, %v61_v62  ;;  %v4290_v25 = vand.u32 4294901760, %v2386_v60  ;;  %v2411_v29 = vsub.f32 %v63_v49, %v2383_v59 }
  0x1c   :  { %254 = vmatpush.msra.mxu1 %v253_v43  ;;  %89 = vmatpush.msra.mxu0 %v2307_v18  ;;  %v283_v31 = vand.u32 4294901760, %v282_v61  ;;  %v2413_v33 = vand.u32 4294901760, %v60_v2  ;;  %v294_v34 = vsub.f32 %v2373_v53, %v4293_v1  ;;  %v4292_v37 = vand.u32 4294901760, %v2397_v6 }
  0x1d   :  { %2112 = vmatpush.msra.mxu2 %v2319_v24  ;;  %2124 = vmatpush.msra.mxu3 %v259_v50  ;;  %v2422_v38 = vsub.f32 %v62_v55, %v2393_v0  ;;  %v2424_v42 = vand.u32 4294901760, %v44_v12  ;;  %v289_v43 = vand.u32 4294901760, %v288_v7  ;;  %v4291_v44 = vand.u32 4294901760, %v2404_v8 }
  0x1e   :  { %260 = vmatpush.msra.mxu1 %v259_v50  ;;  %91 = vmatpush.msra.mxu0 %v2319_v24  ;;  %v2428_v47 = vand.u32 4294901760, %v53_v30  ;;  %v300_v49 = vsub.f32 %v2386_v60, %v4290_v25  ;;  %v4295_v50 = vand.u32 4294901760, %v2411_v29  ;;  %v2436_v51 = vsub.f32 %v61_v62, %v2407_v17 }
  0x1f   :  { %2113 = vmatpush.msra.mxu2 %v2323_v27  ;;  %2125 = vmatpush.msra.mxu3 %v265_v57  ;;  %v2439_v55 = vsub.f32 %v44_v12, %v2424_v42  ;;  %v295_v58 = vand.u32 4294901760, %v294_v34  ;;  %v306_v61 = vsub.f32 %v2397_v6, %v4292_v37  ;;  %v2448_v62 = vsub.f32 %v60_v2, %v2413_v33  ;;  %v54_v34 = vld [vmem:[#allocation2 + $0x50] sm:$0xff] }
  0x20   :  { %266 = vmatpush.msra.mxu1 %v265_v57  ;;  %93 = vmatpush.msra.mxu0 %v2323_v27  ;;  %v45_v57 = vld [vmem:[#allocation2 + $0x8] sm:$0xff]  ;;  %v175_v7 = vsub.f32 %v2404_v8, %v4291_v44  ;;  %v2455_v12 = vsub.f32 %v53_v30, %v2428_v47  ;;  %v301_v2 = vand.u32 4294901760, %v300_v49  ;;  %v4299_v44 = vand.u32 4294901760, %v2436_v51 }
  0x21   :  { %2114 = vmatpush.msra.mxu2 %v2343_v35  ;;  %2126 = vmatpush.msra.mxu3 %v271_v63  ;;  %v2458_v25 = vand.u32 4294901760, %v45_v57  ;;  %v307_v30 = vand.u32 4294901760, %v306_v61  ;;  %v329_v1 = vand.u32 4294901760, %v2448_v62  ;;  %v2471_v49 = vand.u32 4294901760, %v54_v34 }
  0x22   :  { %272 = vmatpush.msra.mxu1 %v271_v63  ;;  %95 = vmatpush.msra.mxu0 %v2343_v35  ;;  %v4296_v63 = vand.u32 4294901760, %v2422_v38  ;;  %v176_v54 = vand.u32 4294901760, %v175_v7  ;;  %v324_v7 = vsub.f32 %v2436_v51, %v4299_v44 }
  0x23   :  { %2115 = vmatpush.msra.mxu2 %v2354_v41  ;;  %2127 = vmatpush.msra.mxu3 %v277_v13  ;;  %v2479_v61 = vsub.f32 %v45_v57, %v2458_v25  ;;  %v330_v57 = vsub.f32 %v2448_v62, %v329_v1 }
  0x24   :  { %278 = vmatpush.msra.mxu1 %v277_v13  ;;  %97 = vmatpush.msra.mxu0 %v2354_v41  ;;  %v4298_v13 = vand.u32 4294901760, %v2439_v55  ;;  %v318_v37 = vsub.f32 %v2422_v38, %v4296_v63 }
  0x25   :  { %2116 = vmatpush.msra.mxu2 %v2370_v52  ;;  %2128 = vmatpush.msra.mxu3 %v283_v31  ;;  %v118_v44 = vand.u32 4294901760, %v2479_v61 }
  0x26   :  { %284 = vmatpush.msra.mxu1 %v283_v31  ;;  %99 = vmatpush.msra.mxu0 %v2370_v52  ;;  %v312_v31 = vsub.f32 %v2411_v29, %v4295_v50  ;;  %v4302_v50 = vand.u32 4294901760, %v2455_v12  ;;  %v319_v48 = vand.u32 4294901760, %v318_v37  ;;  %v325_v37 = vand.u32 4294901760, %v324_v7 }
  0x27   :  { %2117 = vmatpush.msra.mxu2 %v2383_v59  ;;  %2129 = vmatpush.msra.mxu3 %v289_v43  ;;  %v119_v7 = vsub.f32 %v2479_v61, %v118_v44 }
  0x28   :  { %290 = vmatpush.msra.mxu1 %v289_v43  ;;  %101 = vmatpush.msra.mxu0 %v2383_v59  ;;  %v111_v43 = vsub.f32 %v2439_v55, %v4298_v13  ;;  %v313_v63 = vand.u32 4294901760, %v312_v31  ;;  %v2491_v13 = vsub.f32 %v54_v34, %v2471_v49  ;;  %v183_v31 = vsub.f32 %v2455_v12, %v4302_v50 }
  0x29   :  { %2118 = vmatpush.msra.mxu2 %v2393_v0  ;;  %2130 = vmatpush.msra.mxu3 %v295_v58  ;;  %v2502_v34 = vand.u32 4294901760, %v55_v45 }
  0x2a   :  { %296 = vmatpush.msra.mxu1 %v295_v58  ;;  %103 = vmatpush.msra.mxu0 %v2393_v0  ;;  %v46_v58 = vld [vmem:[#allocation2 + $0x10] sm:$0xff] }
  0x2b   :  { %2119 = vmatpush.msra.mxu2 %v2407_v17  ;;  %2131 = vmatpush.msra.mxu3 %v301_v2  ;;  %v2497_v39 = vand.u32 4294901760, %v46_v58 }
  0x2c   :  { %302 = vmatpush.msra.mxu1 %v301_v2  ;;  %105 = vmatpush.msra.mxu0 %v2407_v17  ;;  %v112_v2 = vand.u32 4294901760, %v111_v43  ;;  %v190_v43 = vand.u32 4294901760, %v2491_v13 }
  0x2d   :  { %2120 = vmatpush.msra.mxu2 %v2413_v33  ;;  %2132 = vmatpush.msra.mxu3 %v307_v30  ;;  %v2509_v50 = vsub.f32 %v46_v58, %v2497_v39 }
  0x2e   :  { %177 = vmatmul.f32.vlgmr.msra.gmra.mxu2 %v176_v54  ;;  %308 = vmatpush.msra.mxu1 %v307_v30  ;;  %v331_v54 = vand.u32 4294901760, %v330_v57  ;;  %v184_v30 = vand.u32 4294901760, %v183_v31  ;;  %v191_v58 = vsub.f32 %v2491_v13, %v190_v43  ;;  %v120_v57 = vand.u32 4294901760, %v119_v7 }
  0x2f   :  { %2133 = vmatpush.msra.mxu3 %v313_v63  ;;  %400 = vmatpush.msrb.mxu2 %v2298_v14  ;;  %v126_v31 = vand.u32 4294901760, %v2509_v50 }
  0x30   :  { %314 = vmatpush.msra.mxu1 %v313_v63  ;;  %107 = vmatpush.msra.mxu0 %v2413_v33  ;;  %v47_v63 = vld [vmem:[#allocation2 + $0x18] sm:$0xff] }
  0x31   :  { %2134 = vmatpush.msra.mxu3 %v319_v48  ;;  %403 = vmatpush.msrb.mxu2 %v2301_v15 }
  0x32   :  { %320 = vmatpush.msra.mxu1 %v319_v48  ;;  %113 = vmatmul.f32.vlgmr.msra.gmra.mxu0 %v112_v2  ;;  %v2516_v48 = vsub.f32 %v55_v45, %v2502_v34  ;;  %v56_v2 = vld [vmem:[#allocation2 + $0x60] sm:$0xff] }
  0x33   :  { %2135 = vmatpush.msra.mxu3 %v325_v37  ;;  %406 = vmatpush.msrb.mxu2 %v2304_v16  ;;  %v2531_v14 = vand.u32 4294901760, %v56_v2 }
  0x34   :  { %326 = vmatpush.msra.mxu1 %v325_v37  ;;  %659 = vmatpush.msrb.mxu0 %v239_v21  ;;  %v2523_v37 = vand.u32 4294901760, %v47_v63  ;;  %v192_v21 = vand.u32 4294901760, %v191_v58  ;;  %v198_v45 = vand.u32 4294901760, %v2516_v48 }
  0x35   :  { %2136 = vmatpush.msra.mxu3 %v331_v54  ;;  %409 = vmatpush.msrb.mxu2 %v2310_v19  ;;  %v2549_v15 = vsub.f32 %v56_v2, %v2531_v14  ;;  %v4307_v2 = vand.u32 4294901760, %v2326_v28 }
  0x36   :  { %185 = vmatmul.f32.gmra.mxu2 %v184_v30  ;;  %366 = vmatmul.f32.vlgmr.msra.gmra.mxu3 %v2377_v56  ;;  %v2539_v30 = vsub.f32 %v47_v63, %v2523_v37 }
  0x37   :  { %528 = vmatpush.msrb.mxu3 %v2284_v3  ;;  %332 = vmatpush.msra.mxu1 %v331_v54  ;;  %v127_v54 = vsub.f32 %v2509_v50, %v126_v31  ;;  %v206_v7 = vand.u32 4294901760, %v2549_v15 }
  0x38   :  { %334 = vmatmul.f32.vlgmr.msra.gmra.mxu1 %v2424_v42  ;;  %663 = vmatpush.msrb.mxu0 %v245_v22  ;;  %v134_v16 = vand.u32 4294901760, %v2539_v30 }
  0x39   :  { %530 = vmatpush.msrb.mxu3 %v2286_v4  ;;  %786 = vmatpush.msrb.mxu1 %v2284_v3  ;;  %v48_v3 = vld [vmem:[#allocation2 + $0x20] sm:$0xff]  ;;  %v128_v22 = vand.u32 4294901760, %v127_v54 }
  0x3a   :  { %412 = vmatpush.msrb.mxu2 %v2313_v20  ;;  %121 = vmatmul.f32.gmra.mxu0 %v120_v57  ;;  %v135_v19 = vsub.f32 %v2539_v30, %v134_v16  ;;  %v207_v57 = vsub.f32 %v2549_v15, %v206_v7 }
  0x3b   :  { %532 = vmatpush.msrb.mxu3 %v2288_v5  ;;  %788 = vmatpush.msrb.mxu1 %v2286_v4  ;;  %v199_v4 = vsub.f32 %v2516_v48, %v198_v45 }
  0x3c   :  { %667 = vmatpush.msrb.mxu0 %v251_v23  ;;  %415 = vmatpush.msrb.mxu2 %v2326_v28  ;;  %v2556_v23 = vand.u32 4294901760, %v48_v3  ;;  %v4308_v28 = vand.u32 4294901760, %v2346_v36 }
  0x3d   :  { %534 = vmatpush.msrb.mxu3 %v2290_v9  ;;  %790 = vmatpush.msrb.mxu1 %v2288_v5  ;;  %v57_v5 = vld [vmem:[#allocation2 + $0x68] sm:$0xff]  ;;  %v200_v63 = vand.u32 4294901760, %v199_v4  ;;  %v208_v4 = vand.u32 4294901760, %v207_v57 }
  0x3e   :  { %193 = vmatmul.f32.gmra.mxu2 %v192_v21  ;;  %370 = vmatmul.f32.gmra.mxu3 %v2428_v47  ;;  %v2573_v58 = vsub.f32 %v48_v3, %v2556_v23  ;;  %v136_v21 = vand.u32 4294901760, %v135_v19  ;;  %v4310_v19 = vand.u32 4294901760, %v2362_v46 }
  0x3f   :  { %536 = vmatpush.msrb.mxu3 %v2292_v10  ;;  %671 = vmatpush.msrb.mxu0 %v257_v26  ;;  %v2570_v26 = vand.u32 4294901760, %v57_v5 }
  0x40   :  { %338 = vmatmul.f32.gmra.mxu1 %v2458_v25  ;;  %418 = vmatpush.msrb.mxu2 %v2346_v36  ;;  %v4309_v36 = vand.u32 4294901760, %v2352_v40 }
  0x41   :  { %538 = vmatpush.msrb.mxu3 %v2294_v11  ;;  %792 = vmatpush.msrb.mxu1 %v2290_v9  ;;  %v49_v9 = vld [vmem:[#allocation2 + $0x28] sm:$0xff]  ;;  %v2588_v20 = vsub.f32 %v57_v5, %v2570_v26 }
  0x42   :  { %129 = vmatmul.f32.gmra.mxu0 %v128_v22  ;;  %421 = vmatpush.msrb.mxu2 %v2352_v40  ;;  %v2591_v54 = vand.u32 4294901760, %v49_v9 }
  0x43   :  { %540 = vmatpush.msrb.mxu3 %v2307_v18  ;;  %675 = vmatpush.msrb.mxu0 %v263_v32  ;;  %v58_v32 = vld [vmem:[#allocation2 + $0x70] sm:$0xff]  ;;  %v214_v22 = vand.u32 4294901760, %v2588_v20 }
  0x44   :  { %794 = vmatpush.msrb.mxu1 %v2292_v10  ;;  %424 = vmatpush.msrb.mxu2 %v2362_v46  ;;  %v142_v10 = vand.u32 4294901760, %v2573_v58  ;;  %v2600_v3 = vand.u32 4294901760, %v58_v32  ;;  %v2608_v5 = vsub.f32 %v49_v9, %v2591_v54  ;;  %v59_v46 = vld [vmem:[#allocation2 + $0x78] sm:$0xff] }
  0x45   :  { %542 = vmatpush.msrb.mxu3 %v2319_v24  ;;  %679 = vmatpush.msrb.mxu0 %v4307_v2  ;;  %v215_v40 = vsub.f32 %v2588_v20, %v214_v22  ;;  %v4311_v2 = vand.u32 4294901760, %v2373_v53 }
  0x46   :  { %201 = vmatmul.f32.gmra.mxu2 %v200_v63  ;;  %374 = vmatmul.f32.gmra.mxu3 %v2471_v49  ;;  %v2616_v63 = vsub.f32 %v58_v32, %v2600_v3 }
  0x47   :  { %796 = vmatpush.msrb.mxu1 %v2294_v11  ;;  %544 = vmatpush.msrb.mxu3 %v2323_v27  ;;  %v143_v11 = vsub.f32 %v2573_v58, %v142_v10  ;;  %v216_v32 = vand.u32 4294901760, %v215_v40 }
  0x48   :  { %342 = vmatmul.f32.gmra.mxu1 %v2497_v39  ;;  %683 = vmatpush.msrb.mxu0 %v4308_v28  ;;  %v2639_v28 = vand.u32 4294901760, %v59_v46 }
  0x49   :  { %427 = vmatpush.msrb.mxu2 %v2373_v53  ;;  %798 = vmatpush.msrb.mxu1 %v2307_v18  ;;  %v50_v18 = vld [vmem:[#allocation2 + $0x30] sm:$0xff]  ;;  %v144_v9 = vand.u32 4294901760, %v143_v11  ;;  %v4312_v53 = vand.u32 4294901760, %v2386_v60  ;;  %v51_v11 = vld [vmem:[#allocation2 + $0x38] sm:$0xff] }
  0x4a   :  { %137 = vmatmul.f32.gmra.mxu0 %v136_v21  ;;  %546 = vmatpush.msrb.mxu3 %v2343_v35  ;;  %v2626_v57 = vand.u32 4294901760, %v50_v18  ;;  %v222_v21 = vand.u32 4294901760, %v2616_v63 }
  0x4b   :  { %687 = vmatpush.msrb.mxu0 %v4309_v36  ;;  %430 = vmatpush.msrb.mxu2 %v2386_v60  ;;  %v4313_v36 = vand.u32 4294901760, %v2397_v6 }
  0x4c   :  { %800 = vmatpush.msrb.mxu1 %v2319_v24  ;;  %548 = vmatpush.msrb.mxu3 %v2354_v41  ;;  %v150_v24 = vand.u32 4294901760, %v2608_v5 }
  0x4d   :  { %691 = vmatpush.msrb.mxu0 %v4310_v19  ;;  %433 = vmatpush.msrb.mxu2 %v2397_v6  ;;  %v2661_v19 = vand.u32 4294901760, %v51_v11  ;;  %v4314_v6 = vand.u32 4294901760, %v2411_v29 }
  0x4e   :  { %209 = vmatmul.f32.gmra.mxu2 %v208_v4  ;;  %378 = vmatmul.f32.gmra.mxu3 %v2502_v34  ;;  %v2643_v4 = vsub.f32 %v50_v18, %v2626_v57  ;;  %v2658_v18 = vsub.f32 %v59_v46, %v2639_v28 }
  0x4f   :  { %802 = vmatpush.msrb.mxu1 %v2323_v27  ;;  %550 = vmatpush.msrb.mxu3 %v2370_v52  ;;  %v151_v27 = vsub.f32 %v2608_v5, %v150_v24 }
  0x50   :  { %346 = vmatmul.f32.gmra.mxu1 %v2523_v37  ;;  %695 = vmatpush.msrb.mxu0 %v4311_v2  ;;  %v4315_v2 = vand.u32 4294901760, %v2422_v38 }
  0x51   :  { %436 = vmatpush.msrb.mxu2 %v2411_v29  ;;  %804 = vmatpush.msrb.mxu1 %v2343_v35  ;;  %v223_v35 = vsub.f32 %v2616_v63, %v222_v21  ;;  %v152_v60 = vand.u32 4294901760, %v151_v27  ;;  %v4316_v29 = vand.u32 4294901760, %v2436_v51 }
  0x52   :  { %145 = vmatmul.f32.gmra.mxu0 %v144_v9  ;;  %552 = vmatpush.msrb.mxu3 %v2383_v59  ;;  %v230_v9 = vand.u32 4294901760, %v2658_v18 }
  0x53   :  { %699 = vmatpush.msrb.mxu0 %v4312_v53  ;;  %439 = vmatpush.msrb.mxu2 %v2422_v38  ;;  %v224_v40 = vand.u32 4294901760, %v223_v35 }
  0x54   :  { %806 = vmatpush.msrb.mxu1 %v2354_v41  ;;  %554 = vmatpush.msrb.mxu3 %v2393_v0  ;;  %v158_v41 = vand.u32 4294901760, %v2643_v4 }
  0x55   :  { %703 = vmatpush.msrb.mxu0 %v4313_v36  ;;  %442 = vmatpush.msrb.mxu2 %v2436_v51 }
  0x56   :  { %217 = vmatmul.f32.gmra.mxu2 %v216_v32  ;;  %382 = vmatmul.f32.gmra.mxu3 %v2531_v14  ;;  %v159_v46 = vsub.f32 %v2643_v4, %v158_v41 }
  0x57   :  { %808 = vmatpush.msrb.mxu1 %v2370_v52  ;;  %445 = vmatpush.msrb.mxu2 %v2448_v62  ;;  %v165_v52 = vsub.f32 %v51_v11, %v2661_v19 }
  0x58   :  { %350 = vmatmul.f32.gmra.mxu1 %v2556_v23  ;;  %556 = vmatpush.msrb.mxu3 %v2407_v17  ;;  %v160_v32 = vand.u32 4294901760, %v159_v46 }
  0x59   :  { %707 = vmatpush.msrb.mxu0 %v4314_v6  ;;  %810 = vmatpush.msrb.mxu1 %v2383_v59  ;;  %v231_v59 = vsub.f32 %v2658_v18, %v230_v9  ;;  %v166_v27 = vand.u32 4294901760, %v165_v52 }
  0x5a   :  { %153 = vmatmul.f32.gmra.mxu0 %v152_v60  ;;  %558 = vmatpush.msrb.mxu3 %v2413_v33 }
  0x5b   :  { %711 = vmatpush.msrb.mxu0 %v4315_v2  ;;  %812 = vmatpush.msrb.mxu1 %v2393_v0  ;;  %v232_v0 = vand.u32 4294901760, %v231_v59  ;;  %v167_v38 = vsub.f32 %v165_v52, %v166_v27 }
  0x5d   :  { %715 = vmatpush.msrb.mxu0 %v4316_v29  ;;  %814 = vmatpush.msrb.mxu1 %v2407_v17  ;;  %v168_v17 = vand.u32 4294901760, %v167_v38 }
  0x5e   :  { %225 = vmatmul.f32.gmra.mxu2 %v224_v40  ;;  %386 = vmatmul.f32.gmra.mxu3 %v2570_v26 }
  0x5f   :  { %719 = vmatpush.msrb.mxu0 %v329_v1  ;;  %816 = vmatpush.msrb.mxu1 %v2413_v33  ;;  %v4317_v1 = vand.u32 4294901760, %v2439_v55 }
  0x60   :  { %354 = vmatmul.f32.gmra.mxu1 %v2591_v54 }
  0x62   :  { %161 = vmatmul.f32.gmra.mxu0 %v160_v32 }
  0x66   :  { %233 = vmatmul.f32.gmra.mxu2 %v232_v0  ;;  %390 = vmatmul.f32.gmra.mxu3 %v2600_v3 }
  0x68   :  { %358 = vmatmul.f32.gmra.mxu1 %v2626_v57 }
  0x6a   :  { %169 = vmatmul.f32.gmra.mxu0 %v168_v17 }
  0x6e   :  { %394 = vmatmul.f32.gmra.mxu3 %v2639_v28  ;;  %448 = vmatmul.f32.vlgmr.msrb.gmra.mxu2 %v2439_v55 }
  0x70   :  { %362 = vmatmul.f32.gmra.mxu1 %v2661_v19 }
  0x72   :  { %721 = vmatmul.f32.vlgmr.msrb.gmra.mxu0 %v2424_v42 }
  0x76   :  { %453 = vmatmul.f32.gmra.mxu2 %v2479_v61  ;;  %562 = vmatmul.f32.vlgmr.msrb.gmra.mxu3 %v4317_v1  ;;  %v4319_v61 = vand.u32 4294901760, %v2455_v12 }
  0x78   :  { %818 = vmatmul.f32.vlgmr.msrb.gmra.mxu1 %v2424_v42  ;;  %v4318_v42 = vand.u32 4294901760, %v2404_v8 }
  0x7a   :  { %725 = vmatmul.f32.gmra.mxu0 %v2458_v25 }
  0x7e   :  { %458 = vmatmul.f32.gmra.mxu2 %v2509_v50  ;;  %568 = vmatmul.f32.gmra.mxu3 %v118_v44 }
  0x80   :  { %822 = vmatmul.f32.gmra.mxu1 %v2458_v25 }
  0x82   :  { %729 = vmatmul.f32.gmra.mxu0 %v2497_v39 }
  0x86   :  { %463 = vmatmul.f32.gmra.mxu2 %v2539_v30  ;;  %574 = vmatmul.f32.gmra.mxu3 %v126_v31 }
  0x88   :  { %826 = vmatmul.f32.gmra.mxu1 %v2497_v39 }
  0x8a   :  { %733 = vmatmul.f32.gmra.mxu0 %v2523_v37 }
  0x8e   :  { %468 = vmatmul.f32.gmra.mxu2 %v2573_v58  ;;  %580 = vmatmul.f32.gmra.mxu3 %v134_v16 }
  0x90   :  { %830 = vmatmul.f32.gmra.mxu1 %v2523_v37 }
  0x92   :  { %737 = vmatmul.f32.gmra.mxu0 %v2556_v23 }
  0x96   :  { %473 = vmatmul.f32.gmra.mxu2 %v2608_v5  ;;  %586 = vmatmul.f32.gmra.mxu3 %v142_v10 }
  0x98   :  { %834 = vmatmul.f32.gmra.mxu1 %v2556_v23 }
  0x9a   :  { %741 = vmatmul.f32.gmra.mxu0 %v2591_v54 }
  0x9e   :  { %478 = vmatmul.f32.gmra.mxu2 %v2643_v4  ;;  %592 = vmatmul.f32.gmra.mxu3 %v150_v24 }
  0xa0   :  { %838 = vmatmul.f32.gmra.mxu1 %v2591_v54 }
  0xa2   :  { %745 = vmatmul.f32.gmra.mxu0 %v2626_v57 }
  0xa6   :  { %483 = vmatmul.f32.gmra.mxu2 %v165_v52  ;;  %598 = vmatmul.f32.gmra.mxu3 %v158_v41 }
  0xa8   :  { %842 = vmatmul.f32.gmra.mxu1 %v2626_v57 }
  0xaa   :  { %749 = vmatmul.f32.gmra.mxu0 %v2661_v19 }
  0xae   :  { %488 = vmatmul.f32.gmra.mxu2 %v2404_v8  ;;  %604 = vmatmul.f32.gmra.mxu3 %v166_v27 }
  0xaf   :  { %v2727_v39 = vpop.f32.mrf.mxu0 }
  0xb0   :  { %846 = vmatmul.f32.gmra.mxu1 %v2661_v19 }
  0xb1   :  { %v178_v25 = vpop.f32.mrf.mxu2 }
  0xb2   :  { %753 = vmatmul.f32.gmra.mxu0 %v2377_v56 }
  0xb5   :  { %v2731_v33 = vpop.f32.mrf.mxu1 }
  0xb6   :  { %493 = vmatmul.f32.gmra.mxu2 %v2455_v12  ;;  %610 = vmatmul.f32.gmra.mxu3 %v4318_v42 }
  0xb7   :  { %v2736_v44 = vpop.f32.mrf.mxu0 }
  0xb8   :  { %850 = vmatmul.f32.gmra.mxu1 %v2377_v56 }
  0xb9   :  { %v186_v50 = vpop.f32.mrf.mxu2  ;;  %v367_v51 = vpop.f32.mrf.mxu3 }
  0xba   :  { %v2739_v55 = vadd.f32 %v367_v51, %v178_v25  ;;  %757 = vmatmul.f32.gmra.mxu0 %v2428_v47 }
  0xbd   :  { %v2742_v62 = vpop.f32.mrf.mxu1 }
  0xbe   :  { %498 = vmatmul.f32.gmra.mxu2 %v2491_v13  ;;  %616 = vmatmul.f32.gmra.mxu3 %v4319_v61 }
  0xbf   :  { %v2747_v31 = vpop.f32.mrf.mxu0 }
  0xc0   :  { %854 = vmatmul.f32.gmra.mxu1 %v2428_v47 }
  0xc1   :  { %v194_v8 = vpop.f32.mrf.mxu2  ;;  %v371_v37 = vpop.f32.mrf.mxu3 }
  0xc2   :  { %v2750_v56 = vadd.f32 %v371_v37, %v186_v50  ;;  %761 = vmatmul.f32.gmra.mxu0 %v2471_v49 }
  0xc5   :  { %v2753_v30 = vpop.f32.mrf.mxu1 }
  0xc6   :  { %503 = vmatmul.f32.gmra.mxu2 %v2516_v48  ;;  %622 = vmatmul.f32.gmra.mxu3 %v190_v43  ;;  %v344_v1 = vadd.f32 %v2753_v30, %v2747_v31 }
  0xc7   :  { %v2758_v16 = vpop.f32.mrf.mxu0 }
  0xc8   :  { %858 = vmatmul.f32.gmra.mxu1 %v2471_v49 }
  0xc9   :  { %v202_v12 = vpop.f32.mrf.mxu2  ;;  %v375_v23 = vpop.f32.mrf.mxu3 }
  0xca   :  { %v2761_v47 = vadd.f32 %v375_v23, %v194_v8  ;;  %765 = vmatmul.f32.gmra.mxu0 %v2502_v34 }
  0xcd   :  { %v2764_v58 = vpop.f32.mrf.mxu1 }
  0xce   :  { %508 = vmatmul.f32.gmra.mxu2 %v2549_v15  ;;  %628 = vmatmul.f32.gmra.mxu3 %v198_v45 }
  0xcf   :  { %v2769_v10 = vpop.f32.mrf.mxu0 }
  0xd0   :  { %862 = vmatmul.f32.gmra.mxu1 %v2502_v34 }
  0xd1   :  { %v210_v13 = vpop.f32.mrf.mxu2  ;;  %v379_v43 = vpop.f32.mrf.mxu3 }
  0xd2   :  { %v2772_v49 = vadd.f32 %v379_v43, %v202_v12  ;;  %769 = vmatmul.f32.gmra.mxu0 %v2531_v14  ;;  %v348_v12 = vadd.f32 %v2764_v58, %v2758_v16 }
  0xd5   :  { %v2775_v54 = vpop.f32.mrf.mxu1 }
  0xd6   :  { %513 = vmatmul.f32.gmra.mxu2 %v2588_v20  ;;  %634 = vmatmul.f32.gmra.mxu3 %v206_v7 }
  0xd7   :  { %v2780_v5 = vpop.f32.mrf.mxu0 }
  0xd8   :  { %866 = vmatmul.f32.gmra.mxu1 %v2531_v14 }
  0xd9   :  { %v218_v48 = vpop.f32.mrf.mxu2  ;;  %v383_v45 = vpop.f32.mrf.mxu3 }
  0xda   :  { %v2783_v34 = vadd.f32 %v383_v45, %v210_v13  ;;  %773 = vmatmul.f32.gmra.mxu0 %v2570_v26 }
  0xdd   :  { %v2786_v24 = vpop.f32.mrf.mxu1 }
  0xde   :  { %518 = vmatmul.f32.gmra.mxu2 %v2616_v63  ;;  %640 = vmatmul.f32.gmra.mxu3 %v214_v22 }
  0xdf   :  { %v2791_v57 = vpop.f32.mrf.mxu0 }
  0xe0   :  { %870 = vmatmul.f32.gmra.mxu1 %v2570_v26 }
  0xe1   :  { %v226_v15 = vpop.f32.mrf.mxu2  ;;  %v387_v7 = vpop.f32.mrf.mxu3 }
  0xe2   :  { %v2794_v14 = vadd.f32 %v387_v7, %v218_v48  ;;  %777 = vmatmul.f32.gmra.mxu0 %v2600_v3 }
  0xe5   :  { %v2797_v4 = vpop.f32.mrf.mxu1 }
  0xe6   :  { %523 = vmatmul.f32.gmra.mxu2 %v2658_v18  ;;  %646 = vmatmul.f32.gmra.mxu3 %v222_v21  ;;  %v340_v18 = vadd.f32 %v2742_v62, %v2736_v44 }
  0xe7   :  { %v2802_v53 = vpop.f32.mrf.mxu0 }
  0xe8   :  { %874 = vmatmul.f32.gmra.mxu1 %v2600_v3  ;;  %v336_v3 = vadd.f32 %v2731_v33, %v2727_v39 }
  0xe9   :  { %v234_v20 = vpop.f32.mrf.mxu2  ;;  %v391_v22 = vpop.f32.mrf.mxu3 }
  0xea   :  { %v2805_v26 = vadd.f32 %v391_v22, %v226_v15  ;;  %781 = vmatmul.f32.gmra.mxu0 %v2639_v28 }
  0xed   :  { %v2808_v11 = vpop.f32.mrf.mxu1 }
  0xee   :  { %652 = vmatmul.f32.gmra.mxu3 %v230_v9 }
  0xef   :  { %v722_v35 = vpop.f32.mrf.mxu0 }
  0xf0   :  { %878 = vmatmul.f32.gmra.mxu1 %v2639_v28 }
  0xf1   :  { %v395_v63 = vpop.f32.mrf.mxu3  ;;  %v449_v21 = vpop.f32.mrf.mxu2 }
  0xf2   :  { %v2813_v36 = vadd.f32 %v395_v63, %v234_v20  ;;  %v450_v19 = vadd.f32 %v449_v21, %v336_v3 }
  0xf5   :  { %v819_v60 = vpop.f32.mrf.mxu1 }
  0xf7   :  { %v726_v41 = vpop.f32.mrf.mxu0 }
  0xf9   :  { %v454_v6 = vpop.f32.mrf.mxu2  ;;  %v563_v40 = vpop.f32.mrf.mxu3 }
  0xfa   :  { %v564_v46 = vadd.f32 %v563_v40, %v450_v19  ;;  %v455_v29 = vadd.f32 %v454_v6, %v340_v18 }
  0xfc   :  { %v723_v52 = vadd.f32 %v722_v35, %v564_v46  ;;  %v352_v35 = vadd.f32 %v2775_v54, %v2769_v10 }
  0xfd   :  { %v823_v2 = vpop.f32.mrf.mxu1 }
  0xfe   :  { %v820_v9 = vadd.f32 %v819_v60, %v723_v52  ;;  %v356_v52 = vadd.f32 %v2786_v24, %v2780_v5 }
  0xff   :  { %v730_v28 = vpop.f32.mrf.mxu0 }
 0x100   :  { %v882_v59 = vmul.f32 3.0, %v820_v9 }
 0x101   :  { %v459_v32 = vpop.f32.mrf.mxu2  ;;  %v569_v27 = vpop.f32.mrf.mxu3 }
 0x102   :  { %2142 = vtanh.f32 %v882_v59  ;;  %v570_v0 = vadd.f32 %v569_v27, %v455_v29  ;;  %v460_v42 = vadd.f32 %v459_v32, %v344_v1 }
 0x104   :  { %v727_v38 = vadd.f32 %v726_v41, %v570_v0 }
 0x105   :  { %v827_v17 = vpop.f32.mrf.mxu1 }
 0x106   :  { %v824_v39 = vadd.f32 %v823_v2, %v727_v38  ;;  %v360_v38 = vadd.f32 %v2797_v4, %v2791_v57 }
 0x107   :  { %v734_v25 = vpop.f32.mrf.mxu0 }
 0x108   :  { %v2143_v33 = vpop.eup %2142  ;;  %v883_v50 = vmul.f32 3.0, %v824_v39 }
 0x109   :  { %v2821_v51 = vmax.f32 %v2143_v33, 0.0  ;;  %v464_v44 = vpop.f32.mrf.mxu2  ;;  %v575_v62 = vpop.f32.mrf.mxu3 }
 0x10a   :  { %2144 = vtanh.f32 %v883_v50  ;;  %v576_v61 = vadd.f32 %v575_v62, %v460_v42  ;;  %v465_v13 = vadd.f32 %v464_v44, %v348_v12 }
 0x10b   :  { %933 = vmax.xlane.f32.xlu0 %v2821_v51 }
 0x10c   :  { %v731_v8 = vadd.f32 %v730_v28, %v576_v61  ;;  %v364_v61 = vadd.f32 %v2808_v11, %v2802_v53 }
 0x10d   :  { %v831_v37 = vpop.f32.mrf.mxu1 }
 0x10e   :  { %v828_v23 = vadd.f32 %v827_v17, %v731_v8 }
 0x10f   :  { %v738_v31 = vpop.f32.mrf.mxu0 }
 0x110   :  { %v2145_v30 = vpop.eup %2144  ;;  %v884_v43 = vmul.f32 3.0, %v828_v23 }
 0x111   :  { %v2826_v48 = vmax.f32 %v2145_v30, 0.0  ;;  %v469_v45 = vpop.f32.mrf.mxu2  ;;  %v581_v15 = vpop.f32.mrf.mxu3 }
 0x112   :  { %2146 = vtanh.f32 %v884_v43  ;;  %v582_v7 = vadd.f32 %v581_v15, %v465_v13  ;;  %v470_v21 = vadd.f32 %v469_v45, %v352_v35 }
 0x113   :  { %935 = vmax.xlane.f32.xlu0 %v2826_v48 }
 0x114   :  { %v735_v20 = vadd.f32 %v734_v25, %v582_v7 }
 0x115   :  { %v835_v22 = vpop.f32.mrf.mxu1 }
 0x116   :  { %v832_v63 = vadd.f32 %v831_v37, %v735_v20 }
 0x117   :  { %v742_v16 = vpop.f32.mrf.mxu0 }
 0x118   :  { %v2147_v58 = vpop.eup %2146  ;;  %v885_v60 = vmul.f32 3.0, %v832_v63 }
 0x119   :  { %v2831_v3 = vmax.f32 %v2147_v58, 0.0  ;;  %v474_v41 = vpop.f32.mrf.mxu2  ;;  %v587_v19 = vpop.f32.mrf.mxu3 }
 0x11a   :  { %2148 = vtanh.f32 %v885_v60  ;;  %v588_v6 = vadd.f32 %v587_v19, %v470_v21  ;;  %v475_v18 = vadd.f32 %v474_v41, %v356_v52 }
 0x11b   :  { %937 = vmax.xlane.f32.xlu1 %v2831_v3 }
 0x11c   :  { %v739_v40 = vadd.f32 %v738_v31, %v588_v6 }
 0x11d   :  { %v839_v46 = vpop.f32.mrf.mxu1 }
 0x11e   :  { %v836_v2 = vadd.f32 %v835_v22, %v739_v40 }
 0x11f   :  { %v746_v10 = vpop.f32.mrf.mxu0 }
 0x120   :  { %v2149_v54 = vpop.eup %2148  ;;  %v886_v9 = vmul.f32 3.0, %v836_v2 }
 0x121   :  { %v2836_v28 = vmax.f32 %v2149_v54, 0.0  ;;  %v479_v29 = vpop.f32.mrf.mxu2  ;;  %v593_v59 = vpop.f32.mrf.mxu3 }
 0x122   :  { %2150 = vtanh.f32 %v886_v9  ;;  %v594_v32 = vadd.f32 %v593_v59, %v475_v18  ;;  %v480_v1 = vadd.f32 %v479_v29, %v360_v38 }
 0x123   :  { %939 = vmax.xlane.f32.xlu1 %v2836_v28 }
 0x124   :  { %v743_v27 = vadd.f32 %v742_v16, %v594_v32 }
 0x125   :  { %v843_v0 = vpop.f32.mrf.mxu1 }
 0x126   :  { %v840_v17 = vadd.f32 %v839_v46, %v743_v27 }
 0x127   :  { %v750_v5 = vpop.f32.mrf.mxu0 }
 0x128   :  { %v2151_v24 = vpop.eup %2150  ;;  %v887_v39 = vmul.f32 3.0, %v840_v17 }
 0x129   :  { %v2841_v25 = vmax.f32 %v2151_v24, 0.0  ;;  %v484_v33 = vpop.f32.mrf.mxu2  ;;  %v599_v42 = vpop.f32.mrf.mxu3 }
 0x12a   :  { %2152 = vtanh.f32 %v887_v39  ;;  %v600_v50 = vadd.f32 %v599_v42, %v480_v1  ;;  %v485_v37 = vadd.f32 %v484_v33, %v364_v61 }
 0x12b   :  { %941 = vmax.xlane.f32.xlu2 %v2841_v25 }
 0x12c   :  { %v747_v44 = vadd.f32 %v746_v10, %v600_v50 }
 0x12d   :  { %v847_v62 = vpop.f32.mrf.mxu1 }
 0x12e   :  { %v844_v8 = vadd.f32 %v843_v0, %v747_v44 }
 0x12f   :  { %v754_v57 = vpop.f32.mrf.mxu0 }
 0x130   :  { %v2153_v4 = vpop.eup %2152  ;;  %v888_v12 = vmul.f32 3.0, %v844_v8 }
 0x131   :  { %v2846_v23 = vmax.f32 %v2153_v4, 0.0  ;;  %v489_v31 = vpop.f32.mrf.mxu2  ;;  %v605_v30 = vpop.f32.mrf.mxu3 }
 0x132   :  { %2154 = vtanh.f32 %v888_v12  ;;  %v606_v13 = vadd.f32 %v605_v30, %v485_v37  ;;  %v490_v53 = vadd.f32 %v489_v31, %v2739_v55 }
 0x133   :  { %943 = vmax.xlane.f32.xlu2 %v2846_v23 }
 0x134   :  { %v751_v43 = vadd.f32 %v750_v5, %v606_v13 }
 0x135   :  { %v851_v45 = vpop.f32.mrf.mxu1 }
 0x136   :  { %v848_v15 = vadd.f32 %v847_v62, %v751_v43 }
 0x137   :  { %v758_v7 = vpop.f32.mrf.mxu0 }
 0x138   :  { %v2155_v20 = vpop.eup %2154  ;;  %v889_v11 = vmul.f32 3.0, %v848_v15 }
 0x139   :  { %v2850_v22 = vmax.f32 %v2155_v20, 0.0  ;;  %v494_v35 = vpop.f32.mrf.mxu2  ;;  %v611_v63 = vpop.f32.mrf.mxu3 }
 0x13a   :  { %2156 = vtanh.f32 %v889_v11  ;;  %v612_v16 = vadd.f32 %v611_v63, %v490_v53  ;;  %v495_v6 = vadd.f32 %v494_v35, %v2750_v56 }
 0x13b   :  { %945 = vmax.xlane.f32.xlu0 %v2850_v22 }
 0x13c   :  { %v755_v58 = vadd.f32 %v754_v57, %v612_v16 }
 0x13d   :  { %v855_v21 = vpop.f32.mrf.mxu1 }
 0x13e   :  { %v852_v60 = vadd.f32 %v851_v45, %v755_v58 }
 0x13f   :  { %v762_v41 = vpop.f32.mrf.mxu0 }
 0x140   :  { %v2157_v19 = vpop.eup %2156  ;;  %v890_v40 = vmul.f32 3.0, %v852_v60 }
 0x141   :  { %v2854_v46 = vmax.f32 %v2157_v19, 0.0  ;;  %v499_v55 = vpop.f32.mrf.mxu2  ;;  %v617_v52 = vpop.f32.mrf.mxu3 }
 0x142   :  { %2158 = vtanh.f32 %v890_v40  ;;  %v618_v2 = vadd.f32 %v617_v52, %v495_v6  ;;  %v500_v29 = vadd.f32 %v499_v55, %v2761_v47 }
 0x143   :  { %947 = vmax.xlane.f32.xlu1 %v2854_v46 }
 0x144   :  { %v759_v10 = vadd.f32 %v758_v7, %v618_v2 }
 0x145   :  { %v859_v54 = vpop.f32.mrf.mxu1 }
 0x146   :  { %v856_v18 = vadd.f32 %v855_v21, %v759_v10 }
 0x147   :  { %v766_v32 = vpop.f32.mrf.mxu0 }
 0x148   :  { %v2159_v9 = vpop.eup %2158  ;;  %v891_v59 = vmul.f32 3.0, %v856_v18 }
 0x149   :  { %v2858_v27 = vmax.f32 %v2159_v9, 0.0  ;;  %v504_v56 = vpop.f32.mrf.mxu2  ;;  %v623_v0 = vpop.f32.mrf.mxu3 }
 0x14a   :  { %2160 = vtanh.f32 %v891_v59  ;;  %v624_v38 = vadd.f32 %v623_v0, %v500_v29  ;;  %v505_v39 = vadd.f32 %v504_v56, %v2772_v49 }
 0x14b   :  { %949 = vmax.xlane.f32.xlu2 %v2858_v27 }
 0x14c   :  { %v763_v17 = vadd.f32 %v762_v41, %v624_v38 }
 0x14d   :  { %v863_v5 = vpop.f32.mrf.mxu1 }
 0x14e   :  { %v860_v24 = vadd.f32 %v859_v54, %v763_v17  ;;  %v930_v17 = vlaneseq }
 0x14f   :  { %v770_v62 = vpop.f32.mrf.mxu0 }
 0x150   :  { %v2161_v1 = vpop.eup %2160  ;;  %v892_v33 = vmul.f32 3.0, %v860_v24 }
 0x151   :  { %v2862_v42 = vmax.f32 %v2161_v1, 0.0  ;;  %v509_v47 = vpop.f32.mrf.mxu2  ;;  %v629_v50 = vpop.f32.mrf.mxu3 }
 0x152   :  { %2162 = vtanh.f32 %v892_v33  ;;  %v630_v44 = vadd.f32 %v629_v50, %v505_v39  ;;  %v510_v37 = vadd.f32 %v509_v47, %v2783_v34  ;;  %v931_v39 = vand.u32 127, %v930_v17 }
 0x153   :  { %951 = vmax.xlane.f32.xlu0 %v2862_v42 }
 0x154   :  { %v767_v61 = vadd.f32 %v766_v32, %v630_v44 }
 0x155   :  { %v867_v8 = vpop.f32.mrf.mxu1 }
 0x156   :  { %v864_v57 = vadd.f32 %v863_v5, %v767_v61 }
 0x157   :  { %v774_v45 = vpop.f32.mrf.mxu0 }
 0x158   :  { %v2163_v4 = vpop.eup %2162  ;;  %v893_v12 = vmul.f32 3.0, %v864_v57 }
 0x159   :  { %v2866_v31 = vmax.f32 %v2163_v4, 0.0  ;;  %v514_v49 = vpop.f32.mrf.mxu2  ;;  %v635_v30 = vpop.f32.mrf.mxu3 }
 0x15a   :  { %2164 = vtanh.f32 %v893_v12  ;;  %v636_v13 = vadd.f32 %v635_v30, %v510_v37  ;;  %v515_v53 = vadd.f32 %v514_v49, %v2794_v14 }
 0x15b   :  { %953 = vmax.xlane.f32.xlu1 %v2866_v31 }
 0x15c   :  { %v771_v43 = vadd.f32 %v770_v62, %v636_v13 }
 0x15d   :  { %v871_v7 = vpop.f32.mrf.mxu1 }
 0x15e   :  { %v868_v15 = vadd.f32 %v867_v8, %v771_v43 }
 0x15f   :  { %v778_v60 = vpop.f32.mrf.mxu0 }
 0x160   :  { %v2165_v20 = vpop.eup %2164  ;;  %v894_v11 = vmul.f32 3.0, %v868_v15 }
 0x161   :  { %v2870_v35 = vmax.f32 %v2165_v20, 0.0  ;;  %v641_v34 = vpop.f32.mrf.mxu3  ;;  %v519_v16 = vpop.f32.mrf.mxu2 }
 0x162   :  { %2166 = vtanh.f32 %v894_v11  ;;  %v642_v63 = vadd.f32 %v641_v34, %v515_v53  ;;  %v520_v19 = vadd.f32 %v519_v16, %v2805_v26 }
 0x163   :  { %955 = vmax.xlane.f32.xlu2 %v2870_v35 }
 0x164   :  { %v775_v58 = vadd.f32 %v774_v45, %v642_v63 }
 0x165   :  { %v875_v14 = vpop.f32.mrf.mxu1 }
 0x166   :  { %v872_v21 = vadd.f32 %v871_v7, %v775_v58 }
 0x167   :  { %v782_v26 = vpop.f32.mrf.mxu0 }
 0x168   :  { %v2167_v41 = vpop.eup %2166  ;;  %v895_v6 = vmul.f32 3.0, %v872_v21 }
 0x169   :  { %v2874_v40 = vmax.f32 %v2167_v41, 0.0  ;;  %v647_v55 = vpop.f32.mrf.mxu3  ;;  %v524_v10 = vpop.f32.mrf.mxu2 }
 0x16a   :  { %2168 = vtanh.f32 %v895_v6  ;;  %v648_v52 = vadd.f32 %v647_v55, %v520_v19  ;;  %v525_v9 = vadd.f32 %v524_v10, %v2813_v36  ;;  %v2884_v36 = vcvt.s32.f32 %v931_v39 }
 0x16b   :  { %957 = vmax.xlane.f32.xlu0 %v2874_v40 }
 0x16c   :  { %v779_v2 = vadd.f32 %v778_v60, %v648_v52 }
 0x16d   :  { %v879_v0 = vpop.f32.mrf.mxu1 }
 0x16e   :  { %v876_v54 = vadd.f32 %v875_v14, %v779_v2 }
 0x170   :  { %v2169_v18 = vpop.eup %2168  ;;  %v896_v29 = vmul.f32 3.0, %v876_v54 }
 0x171   :  { %v2878_v59 = vmax.f32 %v2169_v18, 0.0  ;;  %v653_v32 = vpop.f32.mrf.mxu3 }
 0x172   :  { %2170 = vtanh.f32 %v896_v29  ;;  %v654_v56 = vadd.f32 %v653_v32, %v525_v9 }
 0x173   :  { %959 = vmax.xlane.f32.xlu1 %v2878_v59 }
 0x174   :  { %v783_v38 = vadd.f32 %v782_v26, %v654_v56 }
 0x176   :  { %v880_v5 = vadd.f32 %v879_v0, %v783_v38 }
 0x178   :  { %v2171_v24 = vpop.eup %2170  ;;  %v897_v1 = vmul.f32 3.0, %v880_v5 }
 0x179   :  { %v2881_v33 = vmax.f32 %v2171_v24, 0.0 }
 0x17a   :  { %2172 = vtanh.f32 %v897_v1 }
 0x17b   :  { %961 = vmax.xlane.f32.xlu2 %v2881_v33 }
 0x17e   :  { %v934_v47 = vpop.xlane.xlu0 %933 }
 0x17f   :  { %vm965_vm0 = vcmp.eq.f32.partialorder %v2821_v51, %v934_v47 }
 0x180   :  { %v2173_v50 = vpop.eup %2172  ;;  %v981_v44 = vsel %vm965_vm0, %v2884_v36, 128.0 }
 0x181   :  { %v2888_v62 = vmax.f32 %v2173_v50, 0.0  ;;  %997 = vmin.xlane.f32.xlu1 %v981_v44 }
 0x183   :  { %963 = vmax.xlane.f32.xlu0 %v2888_v62 }
 0x186   :  { %v936_v61 = vpop.xlane.xlu0 %935 }
 0x187   :  { %vm966_vm1 = vcmp.eq.f32.partialorder %v2826_v48, %v936_v61 }
 0x188   :  { %v982_v8 = vsel %vm966_vm1, %v2884_v36, 128.0 }
 0x189   :  { %999 = vmin.xlane.f32.xlu2 %v982_v8 }
 0x18e   :  { %v938_v57 = vpop.xlane.xlu1 %937 }
 0x18f   :  { %vm967_vm2 = vcmp.eq.f32.partialorder %v2831_v3, %v938_v57 }
 0x190   :  { %v983_v4 = vsel %vm967_vm2, %v2884_v36, 128.0 }
 0x191   :  { %1001 = vmin.xlane.f32.xlu0 %v983_v4 }
 0x196   :  { %v940_v37 = vpop.xlane.xlu1 %939 }
 0x197   :  { %vm968_vm3 = vcmp.eq.f32.partialorder %v2836_v28, %v940_v37 }
 0x198   :  { %v984_v12 = vsel %vm968_vm3, %v2884_v36, 128.0 }
 0x199   :  { %1003 = vmin.xlane.f32.xlu1 %v984_v12 }
 0x19e   :  { %v942_v49 = vpop.xlane.xlu2 %941 }
 0x19f   :  { %vm969_vm4 = vcmp.eq.f32.partialorder %v2841_v25, %v942_v49 }
 0x1a0   :  { %v985_v30 = vsel %vm969_vm4, %v2884_v36, 128.0 }
 0x1a1   :  { %1005 = vmin.xlane.f32.xlu2 %v985_v30 }
 0x1a6   :  { %v944_v13 = vpop.xlane.xlu2 %943 }
 0x1a7   :  { %vm970_vm5 = vcmp.eq.f32.partialorder %v2846_v23, %v944_v13 }
 0x1a8   :  { %v986_v43 = vsel %vm970_vm5, %v2884_v36, 128.0 }
 0x1a9   :  { %1007 = vmin.xlane.f32.xlu0 %v986_v43 }
 0x1ae   :  { %v946_v45 = vpop.xlane.xlu0 %945 }
 0x1af   :  { %vm971_vm6 = vcmp.eq.f32.partialorder %v2850_v22, %v946_v45 }
 0x1b0   :  { %v987_v15 = vsel %vm971_vm6, %v2884_v36, 128.0 }
 0x1b1   :  { %1009 = vmin.xlane.f32.xlu1 %v987_v15 }
 0x1b6   :  { %v948_v7 = vpop.xlane.xlu1 %947 }
 0x1b7   :  { %vm972_vm7 = vcmp.eq.f32.partialorder %v2854_v46, %v948_v7 }
 0x1b8   :  { %v988_v20 = vsel %vm972_vm7, %v2884_v36, 128.0 }
 0x1b9   :  { %1011 = vmin.xlane.f32.xlu2 %v988_v20 }
 0x1be   :  { %v950_v53 = vpop.xlane.xlu2 %949 }
 0x1bf   :  { %vm973_vm8 = vcmp.eq.f32.partialorder %v2858_v27, %v950_v53 }
 0x1c0   :  { %v989_v11 = vsel %vm973_vm8, %v2884_v36, 128.0 }
 0x1c1   :  { %1013 = vmin.xlane.f32.xlu0 %v989_v11 }
 0x1c6   :  { %v952_v34 = vpop.xlane.xlu0 %951 }
 0x1c7   :  { %vm974_vm9 = vcmp.eq.f32.partialorder %v2862_v42, %v952_v34 }
 0x1c8   :  { %v990_v63 = vsel %vm974_vm9, %v2884_v36, 128.0 }
 0x1c9   :  { %1015 = vmin.xlane.f32.xlu1 %v990_v63 }
 0x1ce   :  { %v954_v16 = vpop.xlane.xlu1 %953 }
 0x1cf   :  { %vm975_vm10 = vcmp.eq.f32.partialorder %v2866_v31, %v954_v16 }
 0x1d0   :  { %v991_v58 = vsel %vm975_vm10, %v2884_v36, 128.0 }
 0x1d1   :  { %1017 = vmin.xlane.f32.xlu2 %v991_v58 }
 0x1d6   :  { %v956_v21 = vpop.xlane.xlu2 %955 }
 0x1d7   :  { %vm976_vm11 = vcmp.eq.f32.partialorder %v2870_v35, %v956_v21 }
 0x1d8   :  { %v992_v60 = vsel %vm976_vm11, %v2884_v36, 128.0 }
 0x1d9   :  { %1019 = vmin.xlane.f32.xlu0 %v992_v60 }
 0x1de   :  { %v958_v41 = vpop.xlane.xlu0 %957 }
 0x1df   :  { %vm977_vm12 = vcmp.eq.f32.partialorder %v2874_v40, %v958_v41 }
 0x1e0   :  { %v993_v19 = vsel %vm977_vm12, %v2884_v36, 128.0 }
 0x1e1   :  { %1021 = vmin.xlane.f32.xlu1 %v993_v19 }
 0x1e6   :  { %v960_v6 = vpop.xlane.xlu1 %959 }
 0x1e7   :  { %vm978_vm13 = vcmp.eq.f32.partialorder %v2878_v59, %v960_v6 }
 0x1e8   :  { %v994_v55 = vsel %vm978_vm13, %v2884_v36, 128.0 }
 0x1e9   :  { %1023 = vmin.xlane.f32.xlu2 %v994_v55 }
 0x1ee   :  { %v962_v14 = vpop.xlane.xlu2 %961 }
 0x1ef   :  { %vm979_vm14 = vcmp.eq.f32.partialorder %v2881_v33, %v962_v14 }
 0x1f0   :  { %v995_v52 = vsel %vm979_vm14, %v2884_v36, 128.0 }
 0x1f1   :  { %1025 = vmin.xlane.f32.xlu0 %v995_v52 }
 0x1f4   :  { %v2919_v2 = vpop.xlane.xlu1 %997 }
 0x1f5   :  { %vm1029_vm15 = vcmp.eq.f32.partialorder %v2884_v36, %v2919_v2 }
 0x1f6   :  { %v2927_v10 = vsel %vm1029_vm15, -1.0, %v2821_v51  ;;  %v964_v54 = vpop.xlane.xlu0 %963 }
 0x1f7   :  { %1077 = vmax.xlane.f32.xlu2 %v2927_v10  ;;  %vm980_vm0 = vcmp.eq.f32.partialorder %v2888_v62, %v964_v54 }
 0x1f8   :  { %v996_v18 = vsel %vm980_vm0, %v2884_v36, 128.0 }
 0x1f9   :  { %1027 = vmin.xlane.f32.xlu1 %v996_v18 }
 0x1fc   :  { %v2932_v9 = vpop.xlane.xlu2 %999 }
 0x1fd   :  { %vm1030_vm1 = vcmp.eq.f32.partialorder %v2884_v36, %v2932_v9 }
 0x1fe   :  { %v2940_v29 = vsel %vm1030_vm1, -1.0, %v2826_v48 }
 0x1ff   :  { %1079 = vmax.xlane.f32.xlu0 %v2940_v29 }
 0x204   :  { %v2943_v32 = vpop.xlane.xlu0 %1001 }
 0x205   :  { %vm1031_vm2 = vcmp.eq.f32.partialorder %v2884_v36, %v2943_v32 }
 0x206   :  { %v2951_v26 = vsel %vm1031_vm2, -1.0, %v2831_v3 }
 0x207   :  { %1081 = vmax.xlane.f32.xlu1 %v2951_v26 }
 0x20c   :  { %v2954_v56 = vpop.xlane.xlu1 %1003 }
 0x20d   :  { %vm1032_vm3 = vcmp.eq.f32.partialorder %v2884_v36, %v2954_v56 }
 0x20e   :  { %v2962_v0 = vsel %vm1032_vm3, -1.0, %v2836_v28 }
 0x20f   :  { %1083 = vmax.xlane.f32.xlu2 %v2962_v0 }
 0x214   :  { %v2965_v38 = vpop.xlane.xlu2 %1005 }
 0x215   :  { %vm1033_vm4 = vcmp.eq.f32.partialorder %v2884_v36, %v2965_v38 }
 0x216   :  { %v2973_v17 = vsel %vm1033_vm4, -1.0, %v2841_v25 }
 0x217   :  { %1085 = vmax.xlane.f32.xlu0 %v2973_v17 }
 0x21c   :  { %v2976_v5 = vpop.xlane.xlu0 %1007 }
 0x21d   :  { %vm1034_vm5 = vcmp.eq.f32.partialorder %v2884_v36, %v2976_v5 }
 0x21e   :  { %v2984_v24 = vsel %vm1034_vm5, -1.0, %v2846_v23 }
 0x21f   :  { %1087 = vmax.xlane.f32.xlu1 %v2984_v24 }
 0x224   :  { %v2987_v1 = vpop.xlane.xlu1 %1009 }
 0x225   :  { %vm1035_vm6 = vcmp.eq.f32.partialorder %v2884_v36, %v2987_v1 }
 0x226   :  { %v2995_v39 = vsel %vm1035_vm6, -1.0, %v2850_v22 }
 0x227   :  { %1089 = vmax.xlane.f32.xlu2 %v2995_v39 }
 0x22c   :  { %v2998_v47 = vpop.xlane.xlu2 %1011 }
 0x22d   :  { %vm1036_vm7 = vcmp.eq.f32.partialorder %v2884_v36, %v2998_v47 }
 0x22e   :  { %v3006_v50 = vsel %vm1036_vm7, -1.0, %v2854_v46 }
 0x22f   :  { %1091 = vmax.xlane.f32.xlu0 %v3006_v50 }
 0x234   :  { %v3009_v44 = vpop.xlane.xlu0 %1013 }
 0x235   :  { %vm1037_vm8 = vcmp.eq.f32.partialorder %v2884_v36, %v3009_v44 }
 0x236   :  { %v3017_v61 = vsel %vm1037_vm8, -1.0, %v2858_v27 }
 0x237   :  { %1093 = vmax.xlane.f32.xlu1 %v3017_v61 }
 0x23c   :  { %v3020_v8 = vpop.xlane.xlu1 %1015 }
 0x23d   :  { %vm1038_vm9 = vcmp.eq.f32.partialorder %v2884_v36, %v3020_v8 }
 0x23e   :  { %v3028_v57 = vsel %vm1038_vm9, -1.0, %v2862_v42 }
 0x23f   :  { %1095 = vmax.xlane.f32.xlu2 %v3028_v57 }
 0x244   :  { %v3031_v4 = vpop.xlane.xlu2 %1017 }
 0x245   :  { %vm1039_vm10 = vcmp.eq.f32.partialorder %v2884_v36, %v3031_v4 }
 0x246   :  { %v3039_v37 = vsel %vm1039_vm10, -1.0, %v2866_v31 }
 0x247   :  { %1097 = vmax.xlane.f32.xlu0 %v3039_v37 }
 0x24c   :  { %v3042_v12 = vpop.xlane.xlu0 %1019 }
 0x24d   :  { %vm1040_vm11 = vcmp.eq.f32.partialorder %v2884_v36, %v3042_v12 }
 0x24e   :  { %v3050_v49 = vsel %vm1040_vm11, -1.0, %v2870_v35 }
 0x24f   :  { %1099 = vmax.xlane.f32.xlu1 %v3050_v49 }
 0x254   :  { %v3053_v30 = vpop.xlane.xlu1 %1021 }
 0x255   :  { %vm4305_vm12 = vcmp.eq.f32.partialorder %v2884_v36, %v3053_v30 }
 0x256   :  { %v3061_v13 = vsel %vm4305_vm12, -1.0, %v2874_v40 }
 0x257   :  { %1101 = vmax.xlane.f32.xlu2 %v3061_v13 }
 0x25c   :  { %v3064_v43 = vpop.xlane.xlu2 %1023 }
 0x25d   :  { %vm4303_vm13 = vcmp.eq.f32.partialorder %v2884_v36, %v3064_v43 }
 0x25e   :  { %v3072_v45 = vsel %vm4303_vm13, -1.0, %v2878_v59 }
 0x25f   :  { %1103 = vmax.xlane.f32.xlu0 %v3072_v45 }
 0x264   :  { %v3075_v15 = vpop.xlane.xlu0 %1025 }
 0x265   :  { %vm4304_vm14 = vcmp.eq.f32.partialorder %v2884_v36, %v3075_v15 }
 0x266   :  { %v3083_v7 = vsel %vm4304_vm14, -1.0, %v2881_v33 }
 0x267   :  { %1105 = vmax.xlane.f32.xlu1 %v3083_v7 }
 0x26a   :  { %v1078_v20 = vpop.xlane.xlu2 %1077 }
 0x26b   :  { %vm1109_vm0 = vcmp.eq.f32.partialorder %v2927_v10, %v1078_v20 }
 0x26c   :  { %v3087_v53 = vpop.xlane.xlu1 %1027  ;;  %v1125_v11 = vsel %vm1109_vm0, %v2884_v36, 128.0 }
 0x26d   :  { %vm4306_vm13 = vcmp.eq.f32.partialorder %v2884_v36, %v3087_v53  ;;  %1141 = vmin.xlane.f32.xlu0 %v1125_v11 }
 0x26e   :  { %v3096_v34 = vsel %vm4306_vm13, -1.0, %v2888_v62 }
 0x26f   :  { %1107 = vmax.xlane.f32.xlu2 %v3096_v34 }
 0x272   :  { %v1080_v63 = vpop.xlane.xlu0 %1079 }
 0x273   :  { %vm1110_vm14 = vcmp.eq.f32.partialorder %v2940_v29, %v1080_v63 }
 0x274   :  { %v1126_v16 = vsel %vm1110_vm14, %v2884_v36, 128.0 }
 0x275   :  { %1143 = vmin.xlane.f32.xlu1 %v1126_v16 }
 0x27a   :  { %v1082_v58 = vpop.xlane.xlu1 %1081 }
 0x27b   :  { %vm1111_vm0 = vcmp.eq.f32.partialorder %v2951_v26, %v1082_v58 }
 0x27c   :  { %v1127_v21 = vsel %vm1111_vm0, %v2884_v36, 128.0 }
 0x27d   :  { %1145 = vmin.xlane.f32.xlu2 %v1127_v21 }
 0x282   :  { %v1084_v60 = vpop.xlane.xlu2 %1083 }
 0x283   :  { %vm1112_vm12 = vcmp.eq.f32.partialorder %v2962_v0, %v1084_v60 }
 0x284   :  { %v1128_v41 = vsel %vm1112_vm12, %v2884_v36, 128.0 }
 0x285   :  { %1147 = vmin.xlane.f32.xlu0 %v1128_v41 }
 0x28a   :  { %v1086_v19 = vpop.xlane.xlu0 %1085 }
 0x28b   :  { %vm1113_vm13 = vcmp.eq.f32.partialorder %v2973_v17, %v1086_v19 }
 0x28c   :  { %v1129_v6 = vsel %vm1113_vm13, %v2884_v36, 128.0 }
 0x28d   :  { %1149 = vmin.xlane.f32.xlu1 %v1129_v6 }
 0x292   :  { %v1088_v55 = vpop.xlane.xlu1 %1087 }
 0x293   :  { %vm1114_vm14 = vcmp.eq.f32.partialorder %v2984_v24, %v1088_v55 }
 0x294   :  { %v1130_v14 = vsel %vm1114_vm14, %v2884_v36, 128.0 }
 0x295   :  { %1151 = vmin.xlane.f32.xlu2 %v1130_v14 }
 0x29a   :  { %v1090_v52 = vpop.xlane.xlu2 %1089 }
 0x29b   :  { %vm1115_vm0 = vcmp.eq.f32.partialorder %v2995_v39, %v1090_v52 }
 0x29c   :  { %v1131_v54 = vsel %vm1115_vm0, %v2884_v36, 128.0 }
 0x29d   :  { %1153 = vmin.xlane.f32.xlu0 %v1131_v54 }
 0x2a2   :  { %v1092_v18 = vpop.xlane.xlu0 %1091 }
 0x2a3   :  { %vm1116_vm12 = vcmp.eq.f32.partialorder %v3006_v50, %v1092_v18 }
 0x2a4   :  { %v1132_v20 = vsel %vm1116_vm12, %v2884_v36, 128.0 }
 0x2a5   :  { %1155 = vmin.xlane.f32.xlu1 %v1132_v20 }
 0x2aa   :  { %v1094_v11 = vpop.xlane.xlu1 %1093 }
 0x2ab   :  { %vm1117_vm13 = vcmp.eq.f32.partialorder %v3017_v61, %v1094_v11  ;;  %v1045_v11 = vsel %vm1029_vm15, %v2821_v51, 0.0  ;;  %v1046_v51 = vsel %vm1030_vm1, %v2826_v48, 0.0 }
 0x2ac   :  { %v1133_v63 = vsel %vm1117_vm13, %v2884_v36, 128.0 }
 0x2ad   :  { %1157 = vmin.xlane.f32.xlu2 %v1133_v63 }
 0x2b2   :  { %v1096_v16 = vpop.xlane.xlu2 %1095 }
 0x2b3   :  { %vm1118_vm14 = vcmp.eq.f32.partialorder %v3028_v57, %v1096_v16 }
 0x2b4   :  { %v1134_v58 = vsel %vm1118_vm14, %v2884_v36, 128.0 }
 0x2b5   :  { %1159 = vmin.xlane.f32.xlu0 %v1134_v58 }
 0x2ba   :  { %v1098_v21 = vpop.xlane.xlu0 %1097 }
 0x2bb   :  { %vm1119_vm0 = vcmp.eq.f32.partialorder %v3039_v37, %v1098_v21 }
 0x2bc   :  { %v1135_v60 = vsel %vm1119_vm0, %v2884_v36, 128.0 }
 0x2bd   :  { %1161 = vmin.xlane.f32.xlu1 %v1135_v60 }
 0x2c2   :  { %v1100_v41 = vpop.xlane.xlu1 %1099 }
 0x2c3   :  { %vm1120_vm12 = vcmp.eq.f32.partialorder %v3050_v49, %v1100_v41 }
 0x2c4   :  { %v1136_v19 = vsel %vm1120_vm12, %v2884_v36, 128.0 }
 0x2c5   :  { %1163 = vmin.xlane.f32.xlu2 %v1136_v19  ;;  %v1047_v19 = vsel %vm1031_vm2, %v2831_v3, 0.0 }
 0x2ca   :  { %v1102_v6 = vpop.xlane.xlu2 %1101 }
 0x2cb   :  { %vm1121_vm13 = vcmp.eq.f32.partialorder %v3061_v13, %v1102_v6  ;;  %v1048_v6 = vsel %vm1032_vm3, %v2836_v28, 0.0 }
 0x2cc   :  { %v1137_v55 = vsel %vm1121_vm13, %v2884_v36, 128.0 }
 0x2cd   :  { %1165 = vmin.xlane.f32.xlu0 %v1137_v55  ;;  %v1049_v55 = vsel %vm1033_vm4, %v2841_v25, 0.0 }
 0x2d2   :  { %v1104_v14 = vpop.xlane.xlu0 %1103 }
 0x2d3   :  { %vm1122_vm14 = vcmp.eq.f32.partialorder %v3072_v45, %v1104_v14  ;;  %v1050_v14 = vsel %vm1034_vm5, %v2846_v23, 0.0 }
 0x2d4   :  { %v1138_v52 = vsel %vm1122_vm14, %v2884_v36, 128.0 }
 0x2d5   :  { %1167 = vmin.xlane.f32.xlu1 %v1138_v52  ;;  %v1051_v52 = vsel %vm1035_vm6, %v2850_v22, 0.0 }
 0x2da   :  { %v1106_v54 = vpop.xlane.xlu1 %1105 }
 0x2db   :  { %vm1123_vm0 = vcmp.eq.f32.partialorder %v3083_v7, %v1106_v54  ;;  %v1052_v54 = vsel %vm1036_vm7, %v2854_v46, 0.0 }
 0x2dc   :  { %v1139_v18 = vsel %vm1123_vm0, %v2884_v36, 128.0 }
 0x2dd   :  { %1169 = vmin.xlane.f32.xlu2 %v1139_v18  ;;  %v1053_v18 = vsel %vm1037_vm8, %v2858_v27, 0.0 }
 0x2e0   :  { %v1142_v20 = vpop.xlane.xlu0 %1141 }
 0x2e1   :  { %vm1173_vm12 = vcmp.eq.f32.partialorder %v2884_v36, %v1142_v20  ;;  %v1054_v20 = vsel %vm1038_vm9, %v2862_v42, 0.0 }
 0x2e2   :  { %v3133_v63 = vsel %vm1173_vm12, %v2927_v10, %v1045_v11  ;;  %v3136_v16 = vsel %vm1173_vm12, -1.0, %v2927_v10  ;;  %v1108_v58 = vpop.xlane.xlu2 %1107  ;;  %v1055_v11 = vsel %vm1039_vm10, %v2866_v31, 0.0  ;;  %vm4320_vm10 = vcmp.eq.f32.partialorder %v2884_v36, %v3053_v30 }
 0x2e3   :  { %1221 = vmax.xlane.f32.xlu1 %v3136_v16  ;;  %vm1124_vm13 = vcmp.eq.f32.partialorder %v3096_v34, %v1108_v58  ;;  %v1056_v58 = vsel %vm1040_vm11, %v2870_v35, 0.0  ;;  %vm4321_vm11 = vcmp.eq.f32.partialorder %v2884_v36, %v3064_v43 }
 0x2e4   :  { %v1140_v21 = vsel %vm1124_vm13, %v2884_v36, 128.0  ;;  %vm4322_vm13 = vcmp.eq.f32.partialorder %v2884_v36, %v3075_v15 }
 0x2e5   :  { %1171 = vmin.xlane.f32.xlu0 %v1140_v21  ;;  %v1057_v21 = vsel %vm4320_vm10, %v2874_v40, 0.0 }
 0x2e8   :  { %v1144_v60 = vpop.xlane.xlu1 %1143 }
 0x2e9   :  { %vm1174_vm15 = vcmp.eq.f32.partialorder %v2884_v36, %v1144_v60  ;;  %v1058_v60 = vsel %vm4321_vm11, %v2878_v59, 0.0 }
 0x2ea   :  { %v3147_v2 = vsel %vm1174_vm15, %v2940_v29, %v1046_v51  ;;  %v3150_v10 = vsel %vm1174_vm15, -1.0, %v2940_v29  ;;  %v1059_v51 = vsel %vm4322_vm13, %v2881_v33, 0.0 }
 0x2eb   :  { %1223 = vmax.xlane.f32.xlu2 %v3150_v10 }
 0x2f0   :  { %v1146_v41 = vpop.xlane.xlu2 %1145 }
 0x2f1   :  { %vm1175_vm14 = vcmp.eq.f32.partialorder %v2884_v36, %v1146_v41 }
 0x2f2   :  { %v3159_v48 = vsel %vm1175_vm14, %v2951_v26, %v1047_v19  ;;  %v3162_v9 = vsel %vm1175_vm14, -1.0, %v2951_v26 }
 0x2f3   :  { %1225 = vmax.xlane.f32.xlu0 %v3162_v9 }
 0x2f8   :  { %v1148_v29 = vpop.xlane.xlu0 %1147 }
 0x2f9   :  { %vm1176_vm1 = vcmp.eq.f32.partialorder %v2884_v36, %v1148_v29 }
 0x2fa   :  { %v3171_v3 = vsel %vm1176_vm1, %v2962_v0, %v1048_v6  ;;  %v3174_v32 = vsel %vm1176_vm1, -1.0, %v2962_v0  ;;  %vm4323_vm1 = vcmp.eq.f32.partialorder %v2884_v36, %v3087_v53 }
 0x2fb   :  { %1227 = vmax.xlane.f32.xlu1 %v3174_v32  ;;  %v1060_v33 = vsel %vm4323_vm1, %v2888_v62, 0.0 }
 0x300   :  { %v1150_v26 = vpop.xlane.xlu1 %1149 }
 0x301   :  { %vm1177_vm2 = vcmp.eq.f32.partialorder %v2884_v36, %v1150_v26 }
 0x302   :  { %v3183_v28 = vsel %vm1177_vm2, %v2973_v17, %v1049_v55  ;;  %v3186_v56 = vsel %vm1177_vm2, -1.0, %v2973_v17 }
 0x303   :  { %1229 = vmax.xlane.f32.xlu2 %v3186_v56 }
 0x308   :  { %v1152_v0 = vpop.xlane.xlu2 %1151 }
 0x309   :  { %vm1178_vm3 = vcmp.eq.f32.partialorder %v2884_v36, %v1152_v0 }
 0x30a   :  { %v3195_v25 = vsel %vm1178_vm3, %v2984_v24, %v1050_v14  ;;  %v3198_v38 = vsel %vm1178_vm3, -1.0, %v2984_v24 }
 0x30b   :  { %1231 = vmax.xlane.f32.xlu0 %v3198_v38 }
 0x310   :  { %v1154_v17 = vpop.xlane.xlu0 %1153 }
 0x311   :  { %vm1179_vm4 = vcmp.eq.f32.partialorder %v2884_v36, %v1154_v17 }
 0x312   :  { %v3207_v23 = vsel %vm1179_vm4, %v2995_v39, %v1051_v52  ;;  %v3210_v5 = vsel %vm1179_vm4, -1.0, %v2995_v39 }
 0x313   :  { %1233 = vmax.xlane.f32.xlu1 %v3210_v5 }
 0x318   :  { %v1156_v24 = vpop.xlane.xlu1 %1155 }
 0x319   :  { %vm1180_vm5 = vcmp.eq.f32.partialorder %v2884_v36, %v1156_v24 }
 0x31a   :  { %v3219_v22 = vsel %vm1180_vm5, %v3006_v50, %v1052_v54  ;;  %v3222_v1 = vsel %vm1180_vm5, -1.0, %v3006_v50 }
 0x31b   :  { %1235 = vmax.xlane.f32.xlu2 %v3222_v1 }
 0x320   :  { %v1158_v39 = vpop.xlane.xlu2 %1157 }
 0x321   :  { %vm1181_vm6 = vcmp.eq.f32.partialorder %v2884_v36, %v1158_v39 }
 0x322   :  { %v3231_v46 = vsel %vm1181_vm6, %v3017_v61, %v1053_v18  ;;  %v3234_v47 = vsel %vm1181_vm6, -1.0, %v3017_v61 }
 0x323   :  { %1237 = vmax.xlane.f32.xlu0 %v3234_v47 }
 0x328   :  { %v1160_v50 = vpop.xlane.xlu0 %1159 }
 0x329   :  { %vm1182_vm7 = vcmp.eq.f32.partialorder %v2884_v36, %v1160_v50 }
 0x32a   :  { %v3243_v27 = vsel %vm1182_vm7, %v3028_v57, %v1054_v20  ;;  %v3246_v44 = vsel %vm1182_vm7, -1.0, %v3028_v57 }
 0x32b   :  { %1239 = vmax.xlane.f32.xlu1 %v3246_v44 }
 0x330   :  { %v1162_v61 = vpop.xlane.xlu1 %1161 }
 0x331   :  { %vm1183_vm8 = vcmp.eq.f32.partialorder %v2884_v36, %v1162_v61 }
 0x332   :  { %v3255_v42 = vsel %vm1183_vm8, %v3039_v37, %v1055_v11  ;;  %v3258_v8 = vsel %vm1183_vm8, -1.0, %v3039_v37 }
 0x333   :  { %1241 = vmax.xlane.f32.xlu2 %v3258_v8 }
 0x338   :  { %v1164_v57 = vpop.xlane.xlu2 %1163 }
 0x339   :  { %vm1184_vm9 = vcmp.eq.f32.partialorder %v2884_v36, %v1164_v57 }
 0x33a   :  { %v3267_v31 = vsel %vm1184_vm9, %v3050_v49, %v1056_v58  ;;  %v3270_v4 = vsel %vm1184_vm9, -1.0, %v3050_v49 }
 0x33b   :  { %1243 = vmax.xlane.f32.xlu0 %v3270_v4 }
 0x340   :  { %v1166_v37 = vpop.xlane.xlu0 %1165 }
 0x341   :  { %vm1185_vm0 = vcmp.eq.f32.partialorder %v2884_v36, %v1166_v37 }
 0x342   :  { %v3279_v35 = vsel %vm1185_vm0, %v3061_v13, %v1057_v21  ;;  %v3282_v12 = vsel %vm1185_vm0, -1.0, %v3061_v13 }
 0x343   :  { %1245 = vmax.xlane.f32.xlu1 %v3282_v12 }
 0x348   :  { %v1168_v49 = vpop.xlane.xlu1 %1167 }
 0x349   :  { %vm1186_vm12 = vcmp.eq.f32.partialorder %v2884_v36, %v1168_v49 }
 0x34a   :  { %v3291_v40 = vsel %vm1186_vm12, %v3072_v45, %v1058_v60  ;;  %v3294_v30 = vsel %vm1186_vm12, -1.0, %v3072_v45 }
 0x34b   :  { %1247 = vmax.xlane.f32.xlu2 %v3294_v30 }
 0x350   :  { %v1170_v13 = vpop.xlane.xlu2 %1169 }
 0x351   :  { %vm1187_vm15 = vcmp.eq.f32.partialorder %v2884_v36, %v1170_v13 }
 0x352   :  { %v3303_v59 = vsel %vm1187_vm15, %v3083_v7, %v1059_v51  ;;  %v3306_v43 = vsel %vm1187_vm15, -1.0, %v3083_v7 }
 0x353   :  { %1249 = vmax.xlane.f32.xlu0 %v3306_v43 }
 0x356   :  { %v1222_v45 = vpop.xlane.xlu1 %1221 }
 0x357   :  { %vm1253_vm14 = vcmp.eq.f32.partialorder %v3136_v16, %v1222_v45 }
 0x358   :  { %v1172_v41 = vpop.xlane.xlu0 %1171  ;;  %v1269_v19 = vsel %vm1253_vm14, %v2884_v36, 128.0 }
 0x359   :  { %vm1188_vm2 = vcmp.eq.f32.partialorder %v2884_v36, %v1172_v41  ;;  %1285 = vmin.xlane.f32.xlu2 %v1269_v19 }
 0x35a   :  { %v3317_v15 = vsel %vm1188_vm2, %v3096_v34, %v1060_v33  ;;  %v3320_v7 = vsel %vm1188_vm2, -1.0, %v3096_v34 }
 0x35b   :  { %1251 = vmax.xlane.f32.xlu1 %v3320_v7 }
 0x35e   :  { %v1224_v29 = vpop.xlane.xlu2 %1223 }
 0x35f   :  { %vm1254_vm3 = vcmp.eq.f32.partialorder %v3150_v10, %v1224_v29 }
 0x360   :  { %v1270_v6 = vsel %vm1254_vm3, %v2884_v36, 128.0 }
 0x361   :  { %1287 = vmin.xlane.f32.xlu0 %v1270_v6 }
 0x366   :  { %v1226_v26 = vpop.xlane.xlu0 %1225 }
 0x367   :  { %vm1255_vm4 = vcmp.eq.f32.partialorder %v3162_v9, %v1226_v26 }
 0x368   :  { %v1271_v62 = vsel %vm1255_vm4, %v2884_v36, 128.0 }
 0x369   :  { %1289 = vmin.xlane.f32.xlu1 %v1271_v62 }
 0x36e   :  { %v1228_v53 = vpop.xlane.xlu1 %1227 }
 0x36f   :  { %vm1256_vm5 = vcmp.eq.f32.partialorder %v3174_v32, %v1228_v53 }
 0x370   :  { %v1272_v34 = vsel %vm1256_vm5, %v2884_v36, 128.0 }
 0x371   :  { %1291 = vmin.xlane.f32.xlu2 %v1272_v34 }
 0x376   :  { %v1230_v55 = vpop.xlane.xlu2 %1229 }
 0x377   :  { %vm1257_vm6 = vcmp.eq.f32.partialorder %v3186_v56, %v1230_v55 }
 0x378   :  { %v1273_v0 = vsel %vm1257_vm6, %v2884_v36, 128.0 }
 0x379   :  { %1293 = vmin.xlane.f32.xlu0 %v1273_v0 }
 0x37e   :  { %v1232_v14 = vpop.xlane.xlu0 %1231 }
 0x37f   :  { %vm1258_vm7 = vcmp.eq.f32.partialorder %v3198_v38, %v1232_v14 }
 0x380   :  { %v1274_v17 = vsel %vm1258_vm7, %v2884_v36, 128.0 }
 0x381   :  { %1295 = vmin.xlane.f32.xlu1 %v1274_v17 }
 0x386   :  { %v1234_v52 = vpop.xlane.xlu1 %1233 }
 0x387   :  { %vm1259_vm8 = vcmp.eq.f32.partialorder %v3210_v5, %v1234_v52 }
 0x388   :  { %v1275_v24 = vsel %vm1259_vm8, %v2884_v36, 128.0 }
 0x389   :  { %1297 = vmin.xlane.f32.xlu2 %v1275_v24 }
 0x38e   :  { %v1236_v54 = vpop.xlane.xlu2 %1235 }
 0x38f   :  { %vm1260_vm9 = vcmp.eq.f32.partialorder %v3222_v1, %v1236_v54 }
 0x390   :  { %v1276_v39 = vsel %vm1260_vm9, %v2884_v36, 128.0 }
 0x391   :  { %1299 = vmin.xlane.f32.xlu0 %v1276_v39 }
 0x396   :  { %v1238_v18 = vpop.xlane.xlu0 %1237 }
 0x397   :  { %vm1261_vm10 = vcmp.eq.f32.partialorder %v3234_v47, %v1238_v18 }
 0x398   :  { %v1277_v50 = vsel %vm1261_vm10, %v2884_v36, 128.0 }
 0x399   :  { %1301 = vmin.xlane.f32.xlu1 %v1277_v50 }
 0x39e   :  { %v1240_v20 = vpop.xlane.xlu1 %1239 }
 0x39f   :  { %vm1262_vm0 = vcmp.eq.f32.partialorder %v3246_v44, %v1240_v20 }
 0x3a0   :  { %v1278_v61 = vsel %vm1262_vm0, %v2884_v36, 128.0 }
 0x3a1   :  { %1303 = vmin.xlane.f32.xlu2 %v1278_v61 }
 0x3a6   :  { %v1242_v11 = vpop.xlane.xlu2 %1241 }
 0x3a7   :  { %vm1263_vm11 = vcmp.eq.f32.partialorder %v3258_v8, %v1242_v11 }
 0x3a8   :  { %v1279_v57 = vsel %vm1263_vm11, %v2884_v36, 128.0 }
 0x3a9   :  { %1305 = vmin.xlane.f32.xlu0 %v1279_v57 }
 0x3ae   :  { %v1244_v58 = vpop.xlane.xlu0 %1243 }
 0x3af   :  { %vm1264_vm12 = vcmp.eq.f32.partialorder %v3270_v4, %v1244_v58 }
 0x3b0   :  { %v1280_v37 = vsel %vm1264_vm12, %v2884_v36, 128.0 }
 0x3b1   :  { %1307 = vmin.xlane.f32.xlu1 %v1280_v37 }
 0x3b6   :  { %v1246_v21 = vpop.xlane.xlu1 %1245 }
 0x3b7   :  { %vm1265_vm13 = vcmp.eq.f32.partialorder %v3282_v12, %v1246_v21 }
 0x3b8   :  { %v1281_v49 = vsel %vm1265_vm13, %v2884_v36, 128.0 }
 0x3b9   :  { %1309 = vmin.xlane.f32.xlu2 %v1281_v49 }
 0x3be   :  { %v1248_v60 = vpop.xlane.xlu2 %1247 }
 0x3bf   :  { %vm1266_vm15 = vcmp.eq.f32.partialorder %v3294_v30, %v1248_v60 }
 0x3c0   :  { %v1282_v13 = vsel %vm1266_vm15, %v2884_v36, 128.0 }
 0x3c1   :  { %1311 = vmin.xlane.f32.xlu0 %v1282_v13 }
 0x3c6   :  { %v1250_v51 = vpop.xlane.xlu0 %1249 }
 0x3c7   :  { %vm1267_vm14 = vcmp.eq.f32.partialorder %v3306_v43, %v1250_v51 }
 0x3c8   :  { %v1283_v45 = vsel %vm1267_vm14, %v2884_v36, 128.0 }
 0x3c9   :  { %1313 = vmin.xlane.f32.xlu1 %v1283_v45 }
 0x3cc   :  { %v1286_v41 = vpop.xlane.xlu2 %1285 }
 0x3cd   :  { %vm1317_vm1 = vcmp.eq.f32.partialorder %v2884_v36, %v1286_v41 }
 0x3ce   :  { %v3354_v19 = vsel %vm1317_vm1, %v3136_v16, %v3133_v63  ;;  %v3357_v33 = vsel %vm1317_vm1, -1.0, %v3136_v16  ;;  %v1252_v29 = vpop.xlane.xlu1 %1251 }
 0x3cf   :  { %1365 = vmax.xlane.f32.xlu0 %v3357_v33  ;;  %vm1268_vm2 = vcmp.eq.f32.partialorder %v3320_v7, %v1252_v29 }
 0x3d0   :  { %v1284_v6 = vsel %vm1268_vm2, %v2884_v36, 128.0 }
 0x3d1   :  { %1315 = vmin.xlane.f32.xlu2 %v1284_v6 }
 0x3d4   :  { %v1288_v26 = vpop.xlane.xlu0 %1287 }
 0x3d5   :  { %vm1318_vm3 = vcmp.eq.f32.partialorder %v2884_v36, %v1288_v26 }
 0x3d6   :  { %v3365_v62 = vsel %vm1318_vm3, %v3150_v10, %v3147_v2  ;;  %v3368_v63 = vsel %vm1318_vm3, -1.0, %v3150_v10 }
 0x3d7   :  { %1367 = vmax.xlane.f32.xlu1 %v3368_v63 }
 0x3dc   :  { %v1290_v16 = vpop.xlane.xlu1 %1289 }
 0x3dd   :  { %vm1319_vm4 = vcmp.eq.f32.partialorder %v2884_v36, %v1290_v16 }
 0x3de   :  { %v3374_v53 = vsel %vm1319_vm4, %v3162_v9, %v3159_v48  ;;  %v3377_v34 = vsel %vm1319_vm4, -1.0, %v3162_v9 }
 0x3df   :  { %1369 = vmax.xlane.f32.xlu2 %v3377_v34 }
 0x3e4   :  { %v1292_v55 = vpop.xlane.xlu2 %1291 }
 0x3e5   :  { %vm1320_vm5 = vcmp.eq.f32.partialorder %v2884_v36, %v1292_v55 }
 0x3e6   :  { %v3383_v2 = vsel %vm1320_vm5, %v3174_v32, %v3171_v3  ;;  %v3386_v10 = vsel %vm1320_vm5, -1.0, %v3174_v32 }
 0x3e7   :  { %1371 = vmax.xlane.f32.xlu0 %v3386_v10 }
 0x3ec   :  { %v1294_v0 = vpop.xlane.xlu0 %1293 }
 0x3ed   :  { %vm1321_vm6 = vcmp.eq.f32.partialorder %v2884_v36, %v1294_v0 }
 0x3ee   :  { %v3392_v48 = vsel %vm1321_vm6, %v3186_v56, %v3183_v28  ;;  %v3395_v9 = vsel %vm1321_vm6, -1.0, %v3186_v56 }
 0x3ef   :  { %1373 = vmax.xlane.f32.xlu1 %v3395_v9 }
 0x3f4   :  { %v1296_v14 = vpop.xlane.xlu1 %1295 }
 0x3f5   :  { %vm1322_vm7 = vcmp.eq.f32.partialorder %v2884_v36, %v1296_v14 }
 0x3f6   :  { %v3401_v3 = vsel %vm1322_vm7, %v3198_v38, %v3195_v25  ;;  %v3404_v32 = vsel %vm1322_vm7, -1.0, %v3198_v38 }
 0x3f7   :  { %1375 = vmax.xlane.f32.xlu2 %v3404_v32 }
 0x3fc   :  { %v1298_v17 = vpop.xlane.xlu2 %1297 }
 0x3fd   :  { %vm1323_vm8 = vcmp.eq.f32.partialorder %v2884_v36, %v1298_v17 }
 0x3fe   :  { %v3410_v28 = vsel %vm1323_vm8, %v3210_v5, %v3207_v23  ;;  %v3413_v56 = vsel %vm1323_vm8, -1.0, %v3210_v5 }
 0x3ff   :  { %1377 = vmax.xlane.f32.xlu0 %v3413_v56 }
 0x404   :  { %v1300_v52 = vpop.xlane.xlu0 %1299 }
 0x405   :  { %vm1324_vm9 = vcmp.eq.f32.partialorder %v2884_v36, %v1300_v52 }
 0x406   :  { %v3419_v25 = vsel %vm1324_vm9, %v3222_v1, %v3219_v22  ;;  %v3422_v38 = vsel %vm1324_vm9, -1.0, %v3222_v1 }
 0x407   :  { %1379 = vmax.xlane.f32.xlu1 %v3422_v38 }
 0x40c   :  { %v1302_v24 = vpop.xlane.xlu1 %1301 }
 0x40d   :  { %vm1325_vm10 = vcmp.eq.f32.partialorder %v2884_v36, %v1302_v24 }
 0x40e   :  { %v3428_v23 = vsel %vm1325_vm10, %v3234_v47, %v3231_v46  ;;  %v3431_v5 = vsel %vm1325_vm10, -1.0, %v3234_v47 }
 0x40f   :  { %1381 = vmax.xlane.f32.xlu2 %v3431_v5 }
 0x414   :  { %v1304_v54 = vpop.xlane.xlu2 %1303 }
 0x415   :  { %vm1326_vm0 = vcmp.eq.f32.partialorder %v2884_v36, %v1304_v54 }
 0x416   :  { %v3437_v22 = vsel %vm1326_vm0, %v3246_v44, %v3243_v27  ;;  %v3440_v1 = vsel %vm1326_vm0, -1.0, %v3246_v44 }
 0x417   :  { %1383 = vmax.xlane.f32.xlu0 %v3440_v1 }
 0x41c   :  { %v1306_v39 = vpop.xlane.xlu0 %1305 }
 0x41d   :  { %vm1327_vm11 = vcmp.eq.f32.partialorder %v2884_v36, %v1306_v39 }
 0x41e   :  { %v3446_v46 = vsel %vm1327_vm11, %v3258_v8, %v3255_v42  ;;  %v3449_v47 = vsel %vm1327_vm11, -1.0, %v3258_v8 }
 0x41f   :  { %1385 = vmax.xlane.f32.xlu1 %v3449_v47 }
 0x424   :  { %v1308_v18 = vpop.xlane.xlu1 %1307 }
 0x425   :  { %vm1328_vm12 = vcmp.eq.f32.partialorder %v2884_v36, %v1308_v18 }
 0x426   :  { %v3455_v27 = vsel %vm1328_vm12, %v3270_v4, %v3267_v31  ;;  %v3458_v44 = vsel %vm1328_vm12, -1.0, %v3270_v4 }
 0x427   :  { %1387 = vmax.xlane.f32.xlu2 %v3458_v44 }
 0x42c   :  { %v1310_v50 = vpop.xlane.xlu2 %1309 }
 0x42d   :  { %vm1329_vm13 = vcmp.eq.f32.partialorder %v2884_v36, %v1310_v50 }
 0x42e   :  { %v3464_v42 = vsel %vm1329_vm13, %v3282_v12, %v3279_v35  ;;  %v3467_v8 = vsel %vm1329_vm13, -1.0, %v3282_v12 }
 0x42f   :  { %1389 = vmax.xlane.f32.xlu0 %v3467_v8 }
 0x434   :  { %v1312_v20 = vpop.xlane.xlu0 %1311 }
 0x435   :  { %vm1330_vm15 = vcmp.eq.f32.partialorder %v2884_v36, %v1312_v20 }
 0x436   :  { %v3473_v31 = vsel %vm1330_vm15, %v3294_v30, %v3291_v40  ;;  %v3476_v4 = vsel %vm1330_vm15, -1.0, %v3294_v30 }
 0x437   :  { %1391 = vmax.xlane.f32.xlu1 %v3476_v4 }
 0x43c   :  { %v1314_v61 = vpop.xlane.xlu1 %1313 }
 0x43d   :  { %vm1331_vm14 = vcmp.eq.f32.partialorder %v2884_v36, %v1314_v61 }
 0x43e   :  { %v3482_v35 = vsel %vm1331_vm14, %v3306_v43, %v3303_v59  ;;  %v3485_v12 = vsel %vm1331_vm14, -1.0, %v3306_v43 }
 0x43f   :  { %1393 = vmax.xlane.f32.xlu2 %v3485_v12 }
 0x442   :  { %v1366_v11 = vpop.xlane.xlu0 %1365 }
 0x443   :  { %vm1397_vm1 = vcmp.eq.f32.partialorder %v3357_v33, %v1366_v11 }
 0x444   :  { %v1316_v40 = vpop.xlane.xlu2 %1315  ;;  %v1413_v30 = vsel %vm1397_vm1, %v2884_v36, 128.0 }
 0x445   :  { %vm1332_vm2 = vcmp.eq.f32.partialorder %v2884_v36, %v1316_v40  ;;  %1429 = vmin.xlane.f32.xlu1 %v1413_v30 }
 0x446   :  { %v3493_v57 = vsel %vm1332_vm2, %v3320_v7, %v3317_v15  ;;  %v3496_v59 = vsel %vm1332_vm2, -1.0, %v3320_v7 }
 0x447   :  { %1395 = vmax.xlane.f32.xlu0 %v3496_v59 }
 0x44a   :  { %v1368_v43 = vpop.xlane.xlu1 %1367 }
 0x44b   :  { %vm1398_vm3 = vcmp.eq.f32.partialorder %v3368_v63, %v1368_v43 }
 0x44c   :  { %v1414_v58 = vsel %vm1398_vm3, %v2884_v36, 128.0 }
 0x44d   :  { %1431 = vmin.xlane.f32.xlu2 %v1414_v58 }
 0x452   :  { %v1370_v37 = vpop.xlane.xlu2 %1369 }
 0x453   :  { %vm1399_vm4 = vcmp.eq.f32.partialorder %v3377_v34, %v1370_v37 }
 0x454   :  { %v1415_v21 = vsel %vm1399_vm4, %v2884_v36, 128.0 }
 0x455   :  { %1433 = vmin.xlane.f32.xlu0 %v1415_v21 }
 0x45a   :  { %v1372_v49 = vpop.xlane.xlu0 %1371 }
 0x45b   :  { %vm1400_vm5 = vcmp.eq.f32.partialorder %v3386_v10, %v1372_v49 }
 0x45c   :  { %v1416_v15 = vsel %vm1400_vm5, %v2884_v36, 128.0 }
 0x45d   :  { %1435 = vmin.xlane.f32.xlu1 %v1416_v15 }
 0x462   :  { %v1374_v7 = vpop.xlane.xlu1 %1373 }
 0x463   :  { %vm1401_vm6 = vcmp.eq.f32.partialorder %v3395_v9, %v1374_v7 }
 0x464   :  { %v1417_v60 = vsel %vm1401_vm6, %v2884_v36, 128.0 }
 0x465   :  { %1437 = vmin.xlane.f32.xlu2 %v1417_v60 }
 0x46a   :  { %v1376_v13 = vpop.xlane.xlu2 %1375 }
 0x46b   :  { %vm1402_vm7 = vcmp.eq.f32.partialorder %v3404_v32, %v1376_v13 }
 0x46c   :  { %v1418_v51 = vsel %vm1402_vm7, %v2884_v36, 128.0 }
 0x46d   :  { %1439 = vmin.xlane.f32.xlu0 %v1418_v51 }
 0x472   :  { %v1378_v45 = vpop.xlane.xlu0 %1377 }
 0x473   :  { %vm1403_vm8 = vcmp.eq.f32.partialorder %v3413_v56, %v1378_v45 }
 0x474   :  { %v1419_v41 = vsel %vm1403_vm8, %v2884_v36, 128.0 }
 0x475   :  { %1441 = vmin.xlane.f32.xlu1 %v1419_v41 }
 0x47a   :  { %v1380_v29 = vpop.xlane.xlu1 %1379 }
 0x47b   :  { %vm1404_vm9 = vcmp.eq.f32.partialorder %v3422_v38, %v1380_v29 }
 0x47c   :  { %v1420_v6 = vsel %vm1404_vm9, %v2884_v36, 128.0 }
 0x47d   :  { %1443 = vmin.xlane.f32.xlu2 %v1420_v6 }
 0x482   :  { %v1382_v26 = vpop.xlane.xlu2 %1381 }
 0x483   :  { %vm1405_vm10 = vcmp.eq.f32.partialorder %v3431_v5, %v1382_v26 }
 0x484   :  { %v1421_v16 = vsel %vm1405_vm10, %v2884_v36, 128.0 }
 0x485   :  { %1445 = vmin.xlane.f32.xlu0 %v1421_v16 }
 0x48a   :  { %v1384_v55 = vpop.xlane.xlu0 %1383 }
 0x48b   :  { %vm1406_vm0 = vcmp.eq.f32.partialorder %v3440_v1, %v1384_v55 }
 0x48c   :  { %v1422_v0 = vsel %vm1406_vm0, %v2884_v36, 128.0 }
 0x48d   :  { %1447 = vmin.xlane.f32.xlu1 %v1422_v0 }
 0x492   :  { %v1386_v14 = vpop.xlane.xlu1 %1385 }
 0x493   :  { %vm1407_vm11 = vcmp.eq.f32.partialorder %v3449_v47, %v1386_v14 }
 0x494   :  { %v1423_v17 = vsel %vm1407_vm11, %v2884_v36, 128.0 }
 0x495   :  { %1449 = vmin.xlane.f32.xlu2 %v1423_v17 }
 0x49a   :  { %v1388_v52 = vpop.xlane.xlu2 %1387 }
 0x49b   :  { %vm1408_vm12 = vcmp.eq.f32.partialorder %v3458_v44, %v1388_v52 }
 0x49c   :  { %v1424_v24 = vsel %vm1408_vm12, %v2884_v36, 128.0 }
 0x49d   :  { %1451 = vmin.xlane.f32.xlu0 %v1424_v24 }
 0x4a2   :  { %v1390_v54 = vpop.xlane.xlu0 %1389 }
 0x4a3   :  { %vm1409_vm13 = vcmp.eq.f32.partialorder %v3467_v8, %v1390_v54 }
 0x4a4   :  { %v1425_v39 = vsel %vm1409_vm13, %v2884_v36, 128.0 }
 0x4a5   :  { %1453 = vmin.xlane.f32.xlu1 %v1425_v39 }
 0x4aa   :  { %v1392_v18 = vpop.xlane.xlu1 %1391 }
 0x4ab   :  { %vm1410_vm15 = vcmp.eq.f32.partialorder %v3476_v4, %v1392_v18 }
 0x4ac   :  { %v1426_v50 = vsel %vm1410_vm15, %v2884_v36, 128.0 }
 0x4ad   :  { %1455 = vmin.xlane.f32.xlu2 %v1426_v50 }
 0x4b2   :  { %v1394_v20 = vpop.xlane.xlu2 %1393 }
 0x4b3   :  { %vm1411_vm14 = vcmp.eq.f32.partialorder %v3485_v12, %v1394_v20 }
 0x4b4   :  { %v1427_v61 = vsel %vm1411_vm14, %v2884_v36, 128.0 }
 0x4b5   :  { %1457 = vmin.xlane.f32.xlu0 %v1427_v61 }
 0x4b8   :  { %v1430_v11 = vpop.xlane.xlu1 %1429 }
 0x4b9   :  { %vm1461_vm1 = vcmp.eq.f32.partialorder %v2884_v36, %v1430_v11 }
 0x4ba   :  { %v3530_v40 = vsel %vm1461_vm1, %v3357_v33, %v3354_v19  ;;  %v3533_v30 = vsel %vm1461_vm1, -1.0, %v3357_v33  ;;  %v1396_v43 = vpop.xlane.xlu0 %1395 }
 0x4bb   :  { %vm1412_vm2 = vcmp.eq.f32.partialorder %v3496_v59, %v1396_v43  ;;  %1509 = vmax.xlane.f32.xlu2 %v3533_v30 }
 0x4bc   :  { %v1428_v58 = vsel %vm1412_vm2, %v2884_v36, 128.0 }
 0x4bd   :  { %1459 = vmin.xlane.f32.xlu1 %v1428_v58 }
 0x4c0   :  { %v1432_v37 = vpop.xlane.xlu2 %1431 }
 0x4c1   :  { %vm1462_vm3 = vcmp.eq.f32.partialorder %v2884_v36, %v1432_v37 }
 0x4c2   :  { %v3541_v21 = vsel %vm1462_vm3, %v3368_v63, %v3365_v62  ;;  %v3544_v19 = vsel %vm1462_vm3, -1.0, %v3368_v63 }
 0x4c3   :  { %1511 = vmax.xlane.f32.xlu0 %v3544_v19 }
 0x4c8   :  { %v1434_v33 = vpop.xlane.xlu0 %1433 }
 0x4c9   :  { %vm1463_vm4 = vcmp.eq.f32.partialorder %v2884_v36, %v1434_v33 }
 0x4ca   :  { %v3550_v49 = vsel %vm1463_vm4, %v3377_v34, %v3374_v53  ;;  %v3553_v15 = vsel %vm1463_vm4, -1.0, %v3377_v34 }
 0x4cb   :  { %1513 = vmax.xlane.f32.xlu1 %v3553_v15 }
 0x4d0   :  { %v1436_v7 = vpop.xlane.xlu1 %1435 }
 0x4d1   :  { %vm1464_vm5 = vcmp.eq.f32.partialorder %v2884_v36, %v1436_v7 }
 0x4d2   :  { %v3559_v62 = vsel %vm1464_vm5, %v3386_v10, %v3383_v2  ;;  %v3562_v63 = vsel %vm1464_vm5, -1.0, %v3386_v10 }
 0x4d3   :  { %1515 = vmax.xlane.f32.xlu2 %v3562_v63 }
 0x4d8   :  { %v1438_v60 = vpop.xlane.xlu2 %1437 }
 0x4d9   :  { %vm1465_vm6 = vcmp.eq.f32.partialorder %v2884_v36, %v1438_v60 }
 0x4da   :  { %v3568_v53 = vsel %vm1465_vm6, %v3395_v9, %v3392_v48  ;;  %v3571_v34 = vsel %vm1465_vm6, -1.0, %v3395_v9 }
 0x4db   :  { %1517 = vmax.xlane.f32.xlu0 %v3571_v34 }
 0x4e0   :  { %v1440_v13 = vpop.xlane.xlu0 %1439 }
 0x4e1   :  { %vm1466_vm7 = vcmp.eq.f32.partialorder %v2884_v36, %v1440_v13 }
 0x4e2   :  { %v3577_v2 = vsel %vm1466_vm7, %v3404_v32, %v3401_v3  ;;  %v3580_v10 = vsel %vm1466_vm7, -1.0, %v3404_v32 }
 0x4e3   :  { %1519 = vmax.xlane.f32.xlu1 %v3580_v10 }
 0x4e8   :  { %v1442_v51 = vpop.xlane.xlu1 %1441 }
 0x4e9   :  { %vm1467_vm8 = vcmp.eq.f32.partialorder %v2884_v36, %v1442_v51 }
 0x4ea   :  { %v3586_v48 = vsel %vm1467_vm8, %v3413_v56, %v3410_v28  ;;  %v3589_v9 = vsel %vm1467_vm8, -1.0, %v3413_v56 }
 0x4eb   :  { %1521 = vmax.xlane.f32.xlu2 %v3589_v9 }
 0x4f0   :  { %v1444_v45 = vpop.xlane.xlu2 %1443 }
 0x4f1   :  { %vm1468_vm9 = vcmp.eq.f32.partialorder %v2884_v36, %v1444_v45 }
 0x4f2   :  { %v3595_v3 = vsel %vm1468_vm9, %v3422_v38, %v3419_v25  ;;  %v3598_v32 = vsel %vm1468_vm9, -1.0, %v3422_v38 }
 0x4f3   :  { %1523 = vmax.xlane.f32.xlu0 %v3598_v32 }
 0x4f8   :  { %v1446_v41 = vpop.xlane.xlu0 %1445 }
 0x4f9   :  { %vm1469_vm10 = vcmp.eq.f32.partialorder %v2884_v36, %v1446_v41 }
 0x4fa   :  { %v3604_v28 = vsel %vm1469_vm10, %v3431_v5, %v3428_v23  ;;  %v3607_v56 = vsel %vm1469_vm10, -1.0, %v3431_v5 }
 0x4fb   :  { %1525 = vmax.xlane.f32.xlu1 %v3607_v56 }
 0x500   :  { %v1448_v29 = vpop.xlane.xlu1 %1447 }
 0x501   :  { %vm1470_vm0 = vcmp.eq.f32.partialorder %v2884_v36, %v1448_v29 }
 0x502   :  { %v3613_v25 = vsel %vm1470_vm0, %v3440_v1, %v3437_v22  ;;  %v3616_v38 = vsel %vm1470_vm0, -1.0, %v3440_v1 }
 0x503   :  { %1527 = vmax.xlane.f32.xlu2 %v3616_v38 }
 0x508   :  { %v1450_v6 = vpop.xlane.xlu2 %1449 }
 0x509   :  { %vm1471_vm11 = vcmp.eq.f32.partialorder %v2884_v36, %v1450_v6 }
 0x50a   :  { %v3622_v23 = vsel %vm1471_vm11, %v3449_v47, %v3446_v46  ;;  %v3625_v5 = vsel %vm1471_vm11, -1.0, %v3449_v47 }
 0x50b   :  { %1529 = vmax.xlane.f32.xlu0 %v3625_v5 }
 0x510   :  { %v1452_v26 = vpop.xlane.xlu0 %1451 }
 0x511   :  { %vm1472_vm12 = vcmp.eq.f32.partialorder %v2884_v36, %v1452_v26 }
 0x512   :  { %v3631_v22 = vsel %vm1472_vm12, %v3458_v44, %v3455_v27  ;;  %v3634_v1 = vsel %vm1472_vm12, -1.0, %v3458_v44 }
 0x513   :  { %1531 = vmax.xlane.f32.xlu1 %v3634_v1 }
 0x518   :  { %v1454_v16 = vpop.xlane.xlu1 %1453 }
 0x519   :  { %vm1473_vm13 = vcmp.eq.f32.partialorder %v2884_v36, %v1454_v16 }
 0x51a   :  { %v3640_v46 = vsel %vm1473_vm13, %v3467_v8, %v3464_v42  ;;  %v3643_v47 = vsel %vm1473_vm13, -1.0, %v3467_v8 }
 0x51b   :  { %1533 = vmax.xlane.f32.xlu2 %v3643_v47 }
 0x520   :  { %v1456_v55 = vpop.xlane.xlu2 %1455 }
 0x521   :  { %vm1474_vm15 = vcmp.eq.f32.partialorder %v2884_v36, %v1456_v55 }
 0x522   :  { %v3649_v27 = vsel %vm1474_vm15, %v3476_v4, %v3473_v31  ;;  %v3652_v44 = vsel %vm1474_vm15, -1.0, %v3476_v4 }
 0x523   :  { %1535 = vmax.xlane.f32.xlu0 %v3652_v44 }
 0x528   :  { %v1458_v0 = vpop.xlane.xlu0 %1457 }
 0x529   :  { %vm1475_vm14 = vcmp.eq.f32.partialorder %v2884_v36, %v1458_v0 }
 0x52a   :  { %v3658_v42 = vsel %vm1475_vm14, %v3485_v12, %v3482_v35  ;;  %v3661_v8 = vsel %vm1475_vm14, -1.0, %v3485_v12 }
 0x52b   :  { %1537 = vmax.xlane.f32.xlu1 %v3661_v8 }
 0x52e   :  { %v1510_v14 = vpop.xlane.xlu2 %1509 }
 0x52f   :  { %vm1541_vm1 = vcmp.eq.f32.partialorder %v3533_v30, %v1510_v14 }
 0x530   :  { %v1460_v31 = vpop.xlane.xlu1 %1459  ;;  %v1557_v4 = vsel %vm1541_vm1, %v2884_v36, 128.0 }
 0x531   :  { %vm1476_vm2 = vcmp.eq.f32.partialorder %v2884_v36, %v1460_v31  ;;  %1573 = vmin.xlane.f32.xlu0 %v1557_v4 }
 0x532   :  { %v3669_v17 = vsel %vm1476_vm2, %v3496_v59, %v3493_v57  ;;  %v3672_v35 = vsel %vm1476_vm2, -1.0, %v3496_v59 }
 0x533   :  { %1539 = vmax.xlane.f32.xlu2 %v3672_v35 }
 0x536   :  { %v1512_v12 = vpop.xlane.xlu0 %1511 }
 0x537   :  { %vm1542_vm3 = vcmp.eq.f32.partialorder %v3544_v19, %v1512_v12 }
 0x538   :  { %v1558_v52 = vsel %vm1542_vm3, %v2884_v36, 128.0 }
 0x539   :  { %1575 = vmin.xlane.f32.xlu1 %v1558_v52 }
 0x53e   :  { %v1514_v24 = vpop.xlane.xlu1 %1513 }
 0x53f   :  { %vm1543_vm4 = vcmp.eq.f32.partialorder %v3553_v15, %v1514_v24 }
 0x540   :  { %v1559_v54 = vsel %vm1543_vm4, %v2884_v36, 128.0 }
 0x541   :  { %1577 = vmin.xlane.f32.xlu2 %v1559_v54 }
 0x546   :  { %v1516_v39 = vpop.xlane.xlu2 %1515 }
 0x547   :  { %vm1544_vm5 = vcmp.eq.f32.partialorder %v3562_v63, %v1516_v39 }
 0x548   :  { %v1560_v57 = vsel %vm1544_vm5, %v2884_v36, 128.0 }
 0x549   :  { %1579 = vmin.xlane.f32.xlu0 %v1560_v57 }
 0x54e   :  { %v1518_v59 = vpop.xlane.xlu0 %1517 }
 0x54f   :  { %vm1545_vm6 = vcmp.eq.f32.partialorder %v3571_v34, %v1518_v59 }
 0x550   :  { %v1561_v18 = vsel %vm1545_vm6, %v2884_v36, 128.0 }
 0x551   :  { %1581 = vmin.xlane.f32.xlu1 %v1561_v18 }
 0x556   :  { %v1520_v50 = vpop.xlane.xlu1 %1519 }
 0x557   :  { %vm1546_vm7 = vcmp.eq.f32.partialorder %v3580_v10, %v1520_v50 }
 0x558   :  { %v1562_v20 = vsel %vm1546_vm7, %v2884_v36, 128.0 }
 0x559   :  { %1583 = vmin.xlane.f32.xlu2 %v1562_v20 }
 0x55e   :  { %v1522_v61 = vpop.xlane.xlu2 %1521 }
 0x55f   :  { %vm1547_vm8 = vcmp.eq.f32.partialorder %v3589_v9, %v1522_v61 }
 0x560   :  { %v1563_v11 = vsel %vm1547_vm8, %v2884_v36, 128.0 }
 0x561   :  { %1585 = vmin.xlane.f32.xlu0 %v1563_v11 }
 0x566   :  { %v1524_v43 = vpop.xlane.xlu0 %1523 }
 0x567   :  { %vm1548_vm9 = vcmp.eq.f32.partialorder %v3598_v32, %v1524_v43 }
 0x568   :  { %v1564_v58 = vsel %vm1548_vm9, %v2884_v36, 128.0 }
 0x569   :  { %1587 = vmin.xlane.f32.xlu1 %v1564_v58 }
 0x56e   :  { %v1526_v37 = vpop.xlane.xlu1 %1525 }
 0x56f   :  { %vm1549_vm10 = vcmp.eq.f32.partialorder %v3607_v56, %v1526_v37 }
 0x570   :  { %v1565_v33 = vsel %vm1549_vm10, %v2884_v36, 128.0 }
 0x571   :  { %1589 = vmin.xlane.f32.xlu2 %v1565_v33 }
 0x576   :  { %v1528_v7 = vpop.xlane.xlu2 %1527 }
 0x577   :  { %vm1550_vm0 = vcmp.eq.f32.partialorder %v3616_v38, %v1528_v7 }
 0x578   :  { %v1566_v60 = vsel %vm1550_vm0, %v2884_v36, 128.0 }
 0x579   :  { %1591 = vmin.xlane.f32.xlu0 %v1566_v60 }
 0x57e   :  { %v1530_v13 = vpop.xlane.xlu0 %1529 }
 0x57f   :  { %vm1551_vm11 = vcmp.eq.f32.partialorder %v3625_v5, %v1530_v13 }
 0x580   :  { %v1567_v51 = vsel %vm1551_vm11, %v2884_v36, 128.0 }
 0x581   :  { %1593 = vmin.xlane.f32.xlu1 %v1567_v51 }
 0x586   :  { %v1532_v45 = vpop.xlane.xlu1 %1531 }
 0x587   :  { %vm1552_vm12 = vcmp.eq.f32.partialorder %v3634_v1, %v1532_v45 }
 0x588   :  { %v1568_v41 = vsel %vm1552_vm12, %v2884_v36, 128.0 }
 0x589   :  { %1595 = vmin.xlane.f32.xlu2 %v1568_v41 }
 0x58e   :  { %v1534_v29 = vpop.xlane.xlu2 %1533 }
 0x58f   :  { %vm1553_vm13 = vcmp.eq.f32.partialorder %v3643_v47, %v1534_v29 }
 0x590   :  { %v1569_v6 = vsel %vm1553_vm13, %v2884_v36, 128.0 }
 0x591   :  { %1597 = vmin.xlane.f32.xlu0 %v1569_v6 }
 0x596   :  { %v1536_v26 = vpop.xlane.xlu0 %1535 }
 0x597   :  { %vm1554_vm15 = vcmp.eq.f32.partialorder %v3652_v44, %v1536_v26 }
 0x598   :  { %v1570_v16 = vsel %vm1554_vm15, %v2884_v36, 128.0 }
 0x599   :  { %1599 = vmin.xlane.f32.xlu1 %v1570_v16 }
 0x59e   :  { %v1538_v55 = vpop.xlane.xlu1 %1537 }
 0x59f   :  { %vm1555_vm14 = vcmp.eq.f32.partialorder %v3661_v8, %v1538_v55 }
 0x5a0   :  { %v1571_v0 = vsel %vm1555_vm14, %v2884_v36, 128.0 }
 0x5a1   :  { %1601 = vmin.xlane.f32.xlu2 %v1571_v0 }
 0x5a4   :  { %v1574_v14 = vpop.xlane.xlu0 %1573 }
 0x5a5   :  { %vm1605_vm1 = vcmp.eq.f32.partialorder %v2884_v36, %v1574_v14 }
 0x5a6   :  { %v3706_v31 = vsel %vm1605_vm1, %v3533_v30, %v3530_v40  ;;  %v3709_v4 = vsel %vm1605_vm1, -1.0, %v3533_v30  ;;  %v1540_v12 = vpop.xlane.xlu2 %1539 }
 0x5a7   :  { %vm1556_vm2 = vcmp.eq.f32.partialorder %v3672_v35, %v1540_v12  ;;  %1653 = vmax.xlane.f32.xlu1 %v3709_v4 }
 0x5a8   :  { %v1572_v52 = vsel %vm1556_vm2, %v2884_v36, 128.0 }
 0x5a9   :  { %1603 = vmin.xlane.f32.xlu0 %v1572_v52 }
 0x5ac   :  { %v1576_v24 = vpop.xlane.xlu1 %1575 }
 0x5ad   :  { %vm1606_vm3 = vcmp.eq.f32.partialorder %v2884_v36, %v1576_v24 }
 0x5ae   :  { %v3717_v54 = vsel %vm1606_vm3, %v3544_v19, %v3541_v21  ;;  %v3720_v40 = vsel %vm1606_vm3, -1.0, %v3544_v19 }
 0x5af   :  { %1655 = vmax.xlane.f32.xlu2 %v3720_v40 }
 0x5b4   :  { %v1578_v30 = vpop.xlane.xlu2 %1577 }
 0x5b5   :  { %vm1607_vm4 = vcmp.eq.f32.partialorder %v2884_v36, %v1578_v30 }
 0x5b6   :  { %v3726_v39 = vsel %vm1607_vm4, %v3553_v15, %v3550_v49  ;;  %v3729_v57 = vsel %vm1607_vm4, -1.0, %v3553_v15 }
 0x5b7   :  { %1657 = vmax.xlane.f32.xlu0 %v3729_v57 }
 0x5bc   :  { %v1580_v59 = vpop.xlane.xlu0 %1579 }
 0x5bd   :  { %vm1608_vm5 = vcmp.eq.f32.partialorder %v2884_v36, %v1580_v59 }
 0x5be   :  { %v3735_v21 = vsel %vm1608_vm5, %v3562_v63, %v3559_v62  ;;  %v3738_v19 = vsel %vm1608_vm5, -1.0, %v3562_v63 }
 0x5bf   :  { %1659 = vmax.xlane.f32.xlu1 %v3738_v19 }
 0x5c4   :  { %v1582_v18 = vpop.xlane.xlu1 %1581 }
 0x5c5   :  { %vm1609_vm6 = vcmp.eq.f32.partialorder %v2884_v36, %v1582_v18 }
 0x5c6   :  { %v3744_v49 = vsel %vm1609_vm6, %v3571_v34, %v3568_v53  ;;  %v3747_v15 = vsel %vm1609_vm6, -1.0, %v3571_v34 }
 0x5c7   :  { %1661 = vmax.xlane.f32.xlu2 %v3747_v15 }
 0x5cc   :  { %v1584_v50 = vpop.xlane.xlu2 %1583 }
 0x5cd   :  { %vm1610_vm7 = vcmp.eq.f32.partialorder %v2884_v36, %v1584_v50 }
 0x5ce   :  { %v3753_v62 = vsel %vm1610_vm7, %v3580_v10, %v3577_v2  ;;  %v3756_v63 = vsel %vm1610_vm7, -1.0, %v3580_v10 }
 0x5cf   :  { %1663 = vmax.xlane.f32.xlu0 %v3756_v63 }
 0x5d4   :  { %v1586_v20 = vpop.xlane.xlu0 %1585 }
 0x5d5   :  { %vm1611_vm8 = vcmp.eq.f32.partialorder %v2884_v36, %v1586_v20 }
 0x5d6   :  { %v3762_v53 = vsel %vm1611_vm8, %v3589_v9, %v3586_v48  ;;  %v3765_v34 = vsel %vm1611_vm8, -1.0, %v3589_v9 }
 0x5d7   :  { %1665 = vmax.xlane.f32.xlu1 %v3765_v34 }
 0x5dc   :  { %v1588_v61 = vpop.xlane.xlu1 %1587 }
 0x5dd   :  { %vm1612_vm9 = vcmp.eq.f32.partialorder %v2884_v36, %v1588_v61 }
 0x5de   :  { %v3771_v2 = vsel %vm1612_vm9, %v3598_v32, %v3595_v3  ;;  %v3774_v10 = vsel %vm1612_vm9, -1.0, %v3598_v32 }
 0x5df   :  { %1667 = vmax.xlane.f32.xlu2 %v3774_v10 }
 0x5e4   :  { %v1590_v11 = vpop.xlane.xlu2 %1589 }
 0x5e5   :  { %vm1613_vm10 = vcmp.eq.f32.partialorder %v2884_v36, %v1590_v11 }
 0x5e6   :  { %v3780_v48 = vsel %vm1613_vm10, %v3607_v56, %v3604_v28  ;;  %v3783_v9 = vsel %vm1613_vm10, -1.0, %v3607_v56 }
 0x5e7   :  { %1669 = vmax.xlane.f32.xlu0 %v3783_v9 }
 0x5ec   :  { %v1592_v43 = vpop.xlane.xlu0 %1591 }
 0x5ed   :  { %vm1614_vm0 = vcmp.eq.f32.partialorder %v2884_v36, %v1592_v43 }
 0x5ee   :  { %v3789_v3 = vsel %vm1614_vm0, %v3616_v38, %v3613_v25  ;;  %v3792_v32 = vsel %vm1614_vm0, -1.0, %v3616_v38 }
 0x5ef   :  { %1671 = vmax.xlane.f32.xlu1 %v3792_v32 }
 0x5f4   :  { %v1594_v58 = vpop.xlane.xlu1 %1593 }
 0x5f5   :  { %vm1615_vm11 = vcmp.eq.f32.partialorder %v2884_v36, %v1594_v58 }
 0x5f6   :  { %v3798_v28 = vsel %vm1615_vm11, %v3625_v5, %v3622_v23  ;;  %v3801_v56 = vsel %vm1615_vm11, -1.0, %v3625_v5 }
 0x5f7   :  { %1673 = vmax.xlane.f32.xlu2 %v3801_v56 }
 0x5fc   :  { %v1596_v37 = vpop.xlane.xlu2 %1595 }
 0x5fd   :  { %vm1616_vm12 = vcmp.eq.f32.partialorder %v2884_v36, %v1596_v37 }
 0x5fe   :  { %v3807_v25 = vsel %vm1616_vm12, %v3634_v1, %v3631_v22  ;;  %v3810_v38 = vsel %vm1616_vm12, -1.0, %v3634_v1 }
 0x5ff   :  { %1675 = vmax.xlane.f32.xlu0 %v3810_v38 }
 0x604   :  { %v1598_v33 = vpop.xlane.xlu0 %1597 }
 0x605   :  { %vm1617_vm13 = vcmp.eq.f32.partialorder %v2884_v36, %v1598_v33 }
 0x606   :  { %v3816_v23 = vsel %vm1617_vm13, %v3643_v47, %v3640_v46  ;;  %v3819_v5 = vsel %vm1617_vm13, -1.0, %v3643_v47 }
 0x607   :  { %1677 = vmax.xlane.f32.xlu1 %v3819_v5 }
 0x60c   :  { %v1600_v7 = vpop.xlane.xlu1 %1599 }
 0x60d   :  { %vm1618_vm15 = vcmp.eq.f32.partialorder %v2884_v36, %v1600_v7 }
 0x60e   :  { %v3825_v22 = vsel %vm1618_vm15, %v3652_v44, %v3649_v27  ;;  %v3828_v1 = vsel %vm1618_vm15, -1.0, %v3652_v44 }
 0x60f   :  { %1679 = vmax.xlane.f32.xlu2 %v3828_v1 }
 0x614   :  { %v1602_v60 = vpop.xlane.xlu2 %1601 }
 0x615   :  { %vm1619_vm14 = vcmp.eq.f32.partialorder %v2884_v36, %v1602_v60 }
 0x616   :  { %v3834_v46 = vsel %vm1619_vm14, %v3661_v8, %v3658_v42  ;;  %v3837_v47 = vsel %vm1619_vm14, -1.0, %v3661_v8 }
 0x617   :  { %1681 = vmax.xlane.f32.xlu0 %v3837_v47 }
 0x61a   :  { %v1654_v13 = vpop.xlane.xlu1 %1653 }
 0x61b   :  { %vm1685_vm1 = vcmp.eq.f32.partialorder %v3709_v4, %v1654_v13 }
 0x61c   :  { %v1701_v27 = vsel %vm1685_vm1, %v2884_v36, 128.0  ;;  %v1604_v44 = vpop.xlane.xlu0 %1603 }
 0x61d   :  { %vm1620_vm2 = vcmp.eq.f32.partialorder %v2884_v36, %v1604_v44  ;;  %1717 = vmin.xlane.f32.xlu2 %v1701_v27 }
 0x61e   :  { %v3845_v51 = vsel %vm1620_vm2, %v3672_v35, %v3669_v17  ;;  %v3848_v42 = vsel %vm1620_vm2, -1.0, %v3672_v35 }
 0x61f   :  { %1683 = vmax.xlane.f32.xlu1 %v3848_v42 }
 0x622   :  { %v1656_v8 = vpop.xlane.xlu2 %1655 }
 0x623   :  { %vm1686_vm3 = vcmp.eq.f32.partialorder %v3720_v40, %v1656_v8 }
 0x624   :  { %v1702_v45 = vsel %vm1686_vm3, %v2884_v36, 128.0 }
 0x625   :  { %1719 = vmin.xlane.f32.xlu0 %v1702_v45 }
 0x62a   :  { %v1658_v41 = vpop.xlane.xlu0 %1657 }
 0x62b   :  { %vm1687_vm4 = vcmp.eq.f32.partialorder %v3729_v57, %v1658_v41 }
 0x62c   :  { %v1703_v29 = vsel %vm1687_vm4, %v2884_v36, 128.0 }
 0x62d   :  { %1721 = vmin.xlane.f32.xlu1 %v1703_v29 }
 0x632   :  { %v1660_v6 = vpop.xlane.xlu1 %1659 }
 0x633   :  { %vm1688_vm5 = vcmp.eq.f32.partialorder %v3738_v19, %v1660_v6 }
 0x634   :  { %v1704_v17 = vsel %vm1688_vm5, %v2884_v36, 128.0 }
 0x635   :  { %1723 = vmin.xlane.f32.xlu2 %v1704_v17 }
 0x63a   :  { %v1662_v35 = vpop.xlane.xlu2 %1661 }
 0x63b   :  { %vm1689_vm6 = vcmp.eq.f32.partialorder %v3747_v15, %v1662_v35 }
 0x63c   :  { %v1705_v26 = vsel %vm1689_vm6, %v2884_v36, 128.0 }
 0x63d   :  { %1725 = vmin.xlane.f32.xlu0 %v1705_v26 }
 0x642   :  { %v1664_v16 = vpop.xlane.xlu0 %1663 }
 0x643   :  { %vm1690_vm7 = vcmp.eq.f32.partialorder %v3756_v63, %v1664_v16 }
 0x644   :  { %v1706_v55 = vsel %vm1690_vm7, %v2884_v36, 128.0 }
 0x645   :  { %1727 = vmin.xlane.f32.xlu1 %v1706_v55 }
 0x64a   :  { %v1666_v0 = vpop.xlane.xlu1 %1665 }
 0x64b   :  { %vm1691_vm8 = vcmp.eq.f32.partialorder %v3765_v34, %v1666_v0 }
 0x64c   :  { %v1707_v14 = vsel %vm1691_vm8, %v2884_v36, 128.0 }
 0x64d   :  { %1729 = vmin.xlane.f32.xlu2 %v1707_v14 }
 0x652   :  { %v1668_v12 = vpop.xlane.xlu2 %1667 }
 0x653   :  { %vm1692_vm9 = vcmp.eq.f32.partialorder %v3774_v10, %v1668_v12 }
 0x654   :  { %v1708_v52 = vsel %vm1692_vm9, %v2884_v36, 128.0 }
 0x655   :  { %1731 = vmin.xlane.f32.xlu0 %v1708_v52 }
 0x65a   :  { %v1670_v24 = vpop.xlane.xlu0 %1669 }
 0x65b   :  { %vm1693_vm10 = vcmp.eq.f32.partialorder %v3783_v9, %v1670_v24 }
 0x65c   :  { %v1709_v30 = vsel %vm1693_vm10, %v2884_v36, 128.0 }
 0x65d   :  { %1733 = vmin.xlane.f32.xlu1 %v1709_v30 }
 0x662   :  { %v1672_v59 = vpop.xlane.xlu1 %1671 }
 0x663   :  { %vm1694_vm0 = vcmp.eq.f32.partialorder %v3792_v32, %v1672_v59 }
 0x664   :  { %v1710_v18 = vsel %vm1694_vm0, %v2884_v36, 128.0 }
 0x665   :  { %1735 = vmin.xlane.f32.xlu2 %v1710_v18 }
 0x66a   :  { %v1674_v50 = vpop.xlane.xlu2 %1673 }
 0x66b   :  { %vm1695_vm11 = vcmp.eq.f32.partialorder %v3801_v56, %v1674_v50 }
 0x66c   :  { %v1711_v20 = vsel %vm1695_vm11, %v2884_v36, 128.0 }
 0x66d   :  { %1737 = vmin.xlane.f32.xlu0 %v1711_v20 }
 0x672   :  { %v1676_v61 = vpop.xlane.xlu0 %1675 }
 0x673   :  { %vm1696_vm12 = vcmp.eq.f32.partialorder %v3810_v38, %v1676_v61 }
 0x674   :  { %v1712_v11 = vsel %vm1696_vm12, %v2884_v36, 128.0 }
 0x675   :  { %1739 = vmin.xlane.f32.xlu1 %v1712_v11 }
 0x67a   :  { %v1678_v43 = vpop.xlane.xlu1 %1677 }
 0x67b   :  { %vm1697_vm13 = vcmp.eq.f32.partialorder %v3819_v5, %v1678_v43 }
 0x67c   :  { %v1713_v58 = vsel %vm1697_vm13, %v2884_v36, 128.0 }
 0x67d   :  { %1741 = vmin.xlane.f32.xlu2 %v1713_v58 }
 0x682   :  { %v1680_v37 = vpop.xlane.xlu2 %1679 }
 0x683   :  { %vm1698_vm15 = vcmp.eq.f32.partialorder %v3828_v1, %v1680_v37 }
 0x684   :  { %v1714_v33 = vsel %vm1698_vm15, %v2884_v36, 128.0 }
 0x685   :  { %1743 = vmin.xlane.f32.xlu0 %v1714_v33 }
 0x68a   :  { %v1682_v7 = vpop.xlane.xlu0 %1681 }
 0x68b   :  { %vm1699_vm14 = vcmp.eq.f32.partialorder %v3837_v47, %v1682_v7 }
 0x68c   :  { %v1715_v60 = vsel %vm1699_vm14, %v2884_v36, 128.0 }
 0x68d   :  { %1745 = vmin.xlane.f32.xlu1 %v1715_v60 }
 0x690   :  { %v1718_v13 = vpop.xlane.xlu2 %1717 }
 0x691   :  { %vm1749_vm1 = vcmp.eq.f32.partialorder %v2884_v36, %v1718_v13 }
 0x692   :  { %v3882_v27 = vsel %vm1749_vm1, %v3709_v4, %v3706_v31  ;;  %v3885_v44 = vsel %vm1749_vm1, -1.0, %v3709_v4  ;;  %v1684_v8 = vpop.xlane.xlu1 %1683 }
 0x693   :  { %vm1700_vm2 = vcmp.eq.f32.partialorder %v3848_v42, %v1684_v8  ;;  %1797 = vmax.xlane.f32.xlu0 %v3885_v44 }
 0x694   :  { %v1716_v45 = vsel %vm1700_vm2, %v2884_v36, 128.0 }
 0x695   :  { %1747 = vmin.xlane.f32.xlu2 %v1716_v45 }
 0x698   :  { %v1720_v41 = vpop.xlane.xlu0 %1719 }
 0x699   :  { %vm1750_vm3 = vcmp.eq.f32.partialorder %v2884_v36, %v1720_v41 }
 0x69a   :  { %v3893_v29 = vsel %vm1750_vm3, %v3720_v40, %v3717_v54  ;;  %v3896_v31 = vsel %vm1750_vm3, -1.0, %v3720_v40 }
 0x69b   :  { %1799 = vmax.xlane.f32.xlu1 %v3896_v31 }
 0x6a0   :  { %v1722_v4 = vpop.xlane.xlu1 %1721 }
 0x6a1   :  { %vm1751_vm4 = vcmp.eq.f32.partialorder %v2884_v36, %v1722_v4 }
 0x6a2   :  { %v3902_v6 = vsel %vm1751_vm4, %v3729_v57, %v3726_v39  ;;  %v3905_v17 = vsel %vm1751_vm4, -1.0, %v3729_v57 }
 0x6a3   :  { %1801 = vmax.xlane.f32.xlu2 %v3905_v17 }
 0x6a8   :  { %v1724_v35 = vpop.xlane.xlu2 %1723 }
 0x6a9   :  { %vm1752_vm5 = vcmp.eq.f32.partialorder %v2884_v36, %v1724_v35 }
 0x6aa   :  { %v3911_v54 = vsel %vm1752_vm5, %v3738_v19, %v3735_v21  ;;  %v3914_v40 = vsel %vm1752_vm5, -1.0, %v3738_v19 }
 0x6ab   :  { %1803 = vmax.xlane.f32.xlu0 %v3914_v40 }
 0x6b0   :  { %v1726_v26 = vpop.xlane.xlu0 %1725 }
 0x6b1   :  { %vm1753_vm6 = vcmp.eq.f32.partialorder %v2884_v36, %v1726_v26 }
 0x6b2   :  { %v3920_v39 = vsel %vm1753_vm6, %v3747_v15, %v3744_v49  ;;  %v3923_v57 = vsel %vm1753_vm6, -1.0, %v3747_v15 }
 0x6b3   :  { %1805 = vmax.xlane.f32.xlu1 %v3923_v57 }
 0x6b8   :  { %v1728_v16 = vpop.xlane.xlu1 %1727 }
 0x6b9   :  { %vm1754_vm7 = vcmp.eq.f32.partialorder %v2884_v36, %v1728_v16 }
 0x6ba   :  { %v3929_v21 = vsel %vm1754_vm7, %v3756_v63, %v3753_v62  ;;  %v3932_v19 = vsel %vm1754_vm7, -1.0, %v3756_v63 }
 0x6bb   :  { %1807 = vmax.xlane.f32.xlu2 %v3932_v19 }
 0x6c0   :  { %v1730_v55 = vpop.xlane.xlu2 %1729 }
 0x6c1   :  { %vm1755_vm8 = vcmp.eq.f32.partialorder %v2884_v36, %v1730_v55 }
 0x6c2   :  { %v3938_v49 = vsel %vm1755_vm8, %v3765_v34, %v3762_v53  ;;  %v3941_v15 = vsel %vm1755_vm8, -1.0, %v3765_v34 }
 0x6c3   :  { %1809 = vmax.xlane.f32.xlu0 %v3941_v15 }
 0x6c8   :  { %v1732_v0 = vpop.xlane.xlu0 %1731 }
 0x6c9   :  { %vm1756_vm9 = vcmp.eq.f32.partialorder %v2884_v36, %v1732_v0 }
 0x6ca   :  { %v3947_v62 = vsel %vm1756_vm9, %v3774_v10, %v3771_v2  ;;  %v3950_v63 = vsel %vm1756_vm9, -1.0, %v3774_v10 }
 0x6cb   :  { %1811 = vmax.xlane.f32.xlu1 %v3950_v63 }
 0x6d0   :  { %v1734_v14 = vpop.xlane.xlu1 %1733 }
 0x6d1   :  { %vm1757_vm10 = vcmp.eq.f32.partialorder %v2884_v36, %v1734_v14 }
 0x6d2   :  { %v3956_v53 = vsel %vm1757_vm10, %v3783_v9, %v3780_v48  ;;  %v3959_v34 = vsel %vm1757_vm10, -1.0, %v3783_v9 }
 0x6d3   :  { %1813 = vmax.xlane.f32.xlu2 %v3959_v34 }
 0x6d8   :  { %v1736_v12 = vpop.xlane.xlu2 %1735 }
 0x6d9   :  { %vm1758_vm0 = vcmp.eq.f32.partialorder %v2884_v36, %v1736_v12 }
 0x6da   :  { %v3965_v2 = vsel %vm1758_vm0, %v3792_v32, %v3789_v3  ;;  %v3968_v10 = vsel %vm1758_vm0, -1.0, %v3792_v32 }
 0x6db   :  { %1815 = vmax.xlane.f32.xlu0 %v3968_v10 }
 0x6e0   :  { %v1738_v52 = vpop.xlane.xlu0 %1737 }
 0x6e1   :  { %vm1759_vm11 = vcmp.eq.f32.partialorder %v2884_v36, %v1738_v52 }
 0x6e2   :  { %v3974_v48 = vsel %vm1759_vm11, %v3801_v56, %v3798_v28  ;;  %v3977_v9 = vsel %vm1759_vm11, -1.0, %v3801_v56 }
 0x6e3   :  { %1817 = vmax.xlane.f32.xlu1 %v3977_v9 }
 0x6e8   :  { %v1740_v24 = vpop.xlane.xlu1 %1739 }
 0x6e9   :  { %vm1760_vm12 = vcmp.eq.f32.partialorder %v2884_v36, %v1740_v24 }
 0x6ea   :  { %v3983_v3 = vsel %vm1760_vm12, %v3810_v38, %v3807_v25  ;;  %v3986_v32 = vsel %vm1760_vm12, -1.0, %v3810_v38 }
 0x6eb   :  { %1819 = vmax.xlane.f32.xlu2 %v3986_v32 }
 0x6f0   :  { %v1742_v30 = vpop.xlane.xlu2 %1741 }
 0x6f1   :  { %vm1761_vm13 = vcmp.eq.f32.partialorder %v2884_v36, %v1742_v30 }
 0x6f2   :  { %v3992_v28 = vsel %vm1761_vm13, %v3819_v5, %v3816_v23  ;;  %v3995_v56 = vsel %vm1761_vm13, -1.0, %v3819_v5 }
 0x6f3   :  { %1821 = vmax.xlane.f32.xlu0 %v3995_v56 }
 0x6f8   :  { %v1744_v59 = vpop.xlane.xlu0 %1743 }
 0x6f9   :  { %vm1762_vm15 = vcmp.eq.f32.partialorder %v2884_v36, %v1744_v59 }
 0x6fa   :  { %v4001_v25 = vsel %vm1762_vm15, %v3828_v1, %v3825_v22  ;;  %v4004_v38 = vsel %vm1762_vm15, -1.0, %v3828_v1 }
 0x6fb   :  { %1823 = vmax.xlane.f32.xlu1 %v4004_v38 }
 0x700   :  { %v1746_v18 = vpop.xlane.xlu1 %1745 }
 0x701   :  { %vm1763_vm14 = vcmp.eq.f32.partialorder %v2884_v36, %v1746_v18 }
 0x702   :  { %v4010_v23 = vsel %vm1763_vm14, %v3837_v47, %v3834_v46  ;;  %v4013_v5 = vsel %vm1763_vm14, -1.0, %v3837_v47 }
 0x703   :  { %1825 = vmax.xlane.f32.xlu2 %v4013_v5 }
 0x706   :  { %v1798_v50 = vpop.xlane.xlu0 %1797 }
 0x707   :  { %vm1829_vm1 = vcmp.eq.f32.partialorder %v3885_v44, %v1798_v50 }
 0x708   :  { %v1845_v22 = vsel %vm1829_vm1, %v2884_v36, 128.0  ;;  %v1748_v1 = vpop.xlane.xlu2 %1747 }
 0x709   :  { %vm1764_vm2 = vcmp.eq.f32.partialorder %v2884_v36, %v1748_v1  ;;  %1861 = vmin.xlane.f32.xlu1 %v1845_v22 }
 0x70a   :  { %v4021_v20 = vsel %vm1764_vm2, %v3848_v42, %v3845_v51  ;;  %v4024_v46 = vsel %vm1764_vm2, -1.0, %v3848_v42 }
 0x70b   :  { %1827 = vmax.xlane.f32.xlu0 %v4024_v46 }
 0x70e   :  { %v1800_v47 = vpop.xlane.xlu1 %1799 }
 0x70f   :  { %vm1830_vm3 = vcmp.eq.f32.partialorder %v3896_v31, %v1800_v47 }
 0x710   :  { %v1846_v61 = vsel %vm1830_vm3, %v2884_v36, 128.0 }
 0x711   :  { %1863 = vmin.xlane.f32.xlu2 %v1846_v61 }
 0x716   :  { %v1802_v11 = vpop.xlane.xlu2 %1801 }
 0x717   :  { %vm1831_vm4 = vcmp.eq.f32.partialorder %v3905_v17, %v1802_v11 }
 0x718   :  { %v1847_v43 = vsel %vm1831_vm4, %v2884_v36, 128.0 }
 0x719   :  { %1865 = vmin.xlane.f32.xlu0 %v1847_v43 }
 0x71e   :  { %v1804_v58 = vpop.xlane.xlu0 %1803 }
 0x71f   :  { %vm1832_vm5 = vcmp.eq.f32.partialorder %v3914_v40, %v1804_v58 }
 0x720   :  { %v1848_v51 = vsel %vm1832_vm5, %v2884_v36, 128.0 }
 0x721   :  { %1867 = vmin.xlane.f32.xlu1 %v1848_v51 }
 0x726   :  { %v1806_v42 = vpop.xlane.xlu1 %1805 }
 0x727   :  { %vm1833_vm6 = vcmp.eq.f32.partialorder %v3923_v57, %v1806_v42 }
 0x728   :  { %v1849_v37 = vsel %vm1833_vm6, %v2884_v36, 128.0 }
 0x729   :  { %1869 = vmin.xlane.f32.xlu2 %v1849_v37 }
 0x72e   :  { %v1808_v33 = vpop.xlane.xlu2 %1807 }
 0x72f   :  { %vm1834_vm7 = vcmp.eq.f32.partialorder %v3932_v19, %v1808_v33 }
 0x730   :  { %v1850_v7 = vsel %vm1834_vm7, %v2884_v36, 128.0 }
 0x731   :  { %1871 = vmin.xlane.f32.xlu0 %v1850_v7 }
 0x736   :  { %v1810_v60 = vpop.xlane.xlu0 %1809 }
 0x737   :  { %vm1835_vm8 = vcmp.eq.f32.partialorder %v3941_v15, %v1810_v60 }
 0x738   :  { %v1851_v13 = vsel %vm1835_vm8, %v2884_v36, 128.0 }
 0x739   :  { %1873 = vmin.xlane.f32.xlu1 %v1851_v13 }
 0x73e   :  { %v1812_v8 = vpop.xlane.xlu1 %1811 }
 0x73f   :  { %vm1836_vm9 = vcmp.eq.f32.partialorder %v3950_v63, %v1812_v8 }
 0x740   :  { %v1852_v45 = vsel %vm1836_vm9, %v2884_v36, 128.0 }
 0x741   :  { %1875 = vmin.xlane.f32.xlu2 %v1852_v45 }
 0x746   :  { %v1814_v41 = vpop.xlane.xlu2 %1813 }
 0x747   :  { %vm1837_vm10 = vcmp.eq.f32.partialorder %v3959_v34, %v1814_v41 }
 0x748   :  { %v1853_v4 = vsel %vm1837_vm10, %v2884_v36, 128.0 }
 0x749   :  { %1877 = vmin.xlane.f32.xlu0 %v1853_v4 }
 0x74e   :  { %v1816_v35 = vpop.xlane.xlu0 %1815 }
 0x74f   :  { %vm1838_vm0 = vcmp.eq.f32.partialorder %v3968_v10, %v1816_v35 }
 0x750   :  { %v1854_v26 = vsel %vm1838_vm0, %v2884_v36, 128.0 }
 0x751   :  { %1879 = vmin.xlane.f32.xlu1 %v1854_v26 }
 0x756   :  { %v1818_v16 = vpop.xlane.xlu1 %1817 }
 0x757   :  { %vm1839_vm11 = vcmp.eq.f32.partialorder %v3977_v9, %v1818_v16 }
 0x758   :  { %v1855_v55 = vsel %vm1839_vm11, %v2884_v36, 128.0 }
 0x759   :  { %1881 = vmin.xlane.f32.xlu2 %v1855_v55 }
 0x75e   :  { %v1820_v0 = vpop.xlane.xlu2 %1819 }
 0x75f   :  { %vm1840_vm12 = vcmp.eq.f32.partialorder %v3986_v32, %v1820_v0 }
 0x760   :  { %v1856_v14 = vsel %vm1840_vm12, %v2884_v36, 128.0 }
 0x761   :  { %1883 = vmin.xlane.f32.xlu0 %v1856_v14 }
 0x766   :  { %v1822_v12 = vpop.xlane.xlu0 %1821 }
 0x767   :  { %vm1841_vm13 = vcmp.eq.f32.partialorder %v3995_v56, %v1822_v12 }
 0x768   :  { %v1857_v52 = vsel %vm1841_vm13, %v2884_v36, 128.0 }
 0x769   :  { %1885 = vmin.xlane.f32.xlu1 %v1857_v52 }
 0x76e   :  { %v1824_v24 = vpop.xlane.xlu1 %1823 }
 0x76f   :  { %vm1842_vm15 = vcmp.eq.f32.partialorder %v4004_v38, %v1824_v24 }
 0x770   :  { %v1858_v30 = vsel %vm1842_vm15, %v2884_v36, 128.0 }
 0x771   :  { %1887 = vmin.xlane.f32.xlu2 %v1858_v30 }
 0x776   :  { %v1826_v59 = vpop.xlane.xlu2 %1825 }
 0x777   :  { %vm1843_vm14 = vcmp.eq.f32.partialorder %v4013_v5, %v1826_v59 }
 0x778   :  { %v1859_v18 = vsel %vm1843_vm14, %v2884_v36, 128.0 }
 0x779   :  { %1889 = vmin.xlane.f32.xlu0 %v1859_v18 }
 0x77c   :  { %v1862_v50 = vpop.xlane.xlu1 %1861 }
 0x77d   :  { %vm1893_vm1 = vcmp.eq.f32.partialorder %v2884_v36, %v1862_v50 }
 0x77e   :  { %v4058_v22 = vsel %vm1893_vm1, %v3885_v44, %v3882_v27  ;;  %v4061_v1 = vsel %vm1893_vm1, -1.0, %v3885_v44  ;;  %v1828_v47 = vpop.xlane.xlu0 %1827 }
 0x77f   :  { %vm1844_vm2 = vcmp.eq.f32.partialorder %v4024_v46, %v1828_v47  ;;  %1941 = vmax.xlane.f32.xlu2 %v4061_v1 }
 0x780   :  { %v1860_v61 = vsel %vm1844_vm2, %v2884_v36, 128.0 }
 0x781   :  { %1891 = vmin.xlane.f32.xlu1 %v1860_v61 }
 0x784   :  { %v1864_v11 = vpop.xlane.xlu2 %1863 }
 0x785   :  { %vm1894_vm3 = vcmp.eq.f32.partialorder %v2884_v36, %v1864_v11 }
 0x786   :  { %v4069_v43 = vsel %vm1894_vm3, %v3896_v31, %v3893_v29  ;;  %v4072_v27 = vsel %vm1894_vm3, -1.0, %v3896_v31 }
 0x787   :  { %1943 = vmax.xlane.f32.xlu0 %v4072_v27 }
 0x78c   :  { %v1866_v44 = vpop.xlane.xlu0 %1865 }
 0x78d   :  { %vm1895_vm4 = vcmp.eq.f32.partialorder %v2884_v36, %v1866_v44 }
 0x78e   :  { %v4078_v58 = vsel %vm1895_vm4, %v3905_v17, %v3902_v6  ;;  %v4081_v51 = vsel %vm1895_vm4, -1.0, %v3905_v17 }
 0x78f   :  { %1945 = vmax.xlane.f32.xlu1 %v4081_v51 }
 0x794   :  { %v1868_v42 = vpop.xlane.xlu1 %1867 }
 0x795   :  { %vm1896_vm5 = vcmp.eq.f32.partialorder %v2884_v36, %v1868_v42 }
 0x796   :  { %v4087_v29 = vsel %vm1896_vm5, %v3914_v40, %v3911_v54  ;;  %v4090_v31 = vsel %vm1896_vm5, -1.0, %v3914_v40 }
 0x797   :  { %1947 = vmax.xlane.f32.xlu2 %v4090_v31 }
 0x79c   :  { %v1870_v37 = vpop.xlane.xlu2 %1869 }
 0x79d   :  { %vm1897_vm6 = vcmp.eq.f32.partialorder %v2884_v36, %v1870_v37 }
 0x79e   :  { %v4096_v6 = vsel %vm1897_vm6, %v3923_v57, %v3920_v39  ;;  %v4099_v17 = vsel %vm1897_vm6, -1.0, %v3923_v57 }
 0x79f   :  { %1949 = vmax.xlane.f32.xlu0 %v4099_v17 }
 0x7a4   :  { %v1872_v33 = vpop.xlane.xlu0 %1871 }
 0x7a5   :  { %vm1898_vm7 = vcmp.eq.f32.partialorder %v2884_v36, %v1872_v33 }
 0x7a6   :  { %v4105_v54 = vsel %vm1898_vm7, %v3932_v19, %v3929_v21  ;;  %v4108_v40 = vsel %vm1898_vm7, -1.0, %v3932_v19 }
 0x7a7   :  { %1951 = vmax.xlane.f32.xlu1 %v4108_v40 }
 0x7ac   :  { %v1874_v7 = vpop.xlane.xlu1 %1873 }
 0x7ad   :  { %vm1899_vm8 = vcmp.eq.f32.partialorder %v2884_v36, %v1874_v7 }
 0x7ae   :  { %v4114_v39 = vsel %vm1899_vm8, %v3941_v15, %v3938_v49  ;;  %v4117_v57 = vsel %vm1899_vm8, -1.0, %v3941_v15 }
 0x7af   :  { %1953 = vmax.xlane.f32.xlu2 %v4117_v57 }
 0x7b4   :  { %v1876_v60 = vpop.xlane.xlu2 %1875 }
 0x7b5   :  { %vm1900_vm9 = vcmp.eq.f32.partialorder %v2884_v36, %v1876_v60 }
 0x7b6   :  { %v4123_v21 = vsel %vm1900_vm9, %v3950_v63, %v3947_v62  ;;  %v4126_v19 = vsel %vm1900_vm9, -1.0, %v3950_v63 }
 0x7b7   :  { %1955 = vmax.xlane.f32.xlu0 %v4126_v19 }
 0x7bc   :  { %v1878_v13 = vpop.xlane.xlu0 %1877 }
 0x7bd   :  { %vm1901_vm10 = vcmp.eq.f32.partialorder %v2884_v36, %v1878_v13 }
 0x7be   :  { %v4132_v49 = vsel %vm1901_vm10, %v3959_v34, %v3956_v53  ;;  %v4135_v15 = vsel %vm1901_vm10, -1.0, %v3959_v34 }
 0x7bf   :  { %1957 = vmax.xlane.f32.xlu1 %v4135_v15 }
 0x7c4   :  { %v1880_v8 = vpop.xlane.xlu1 %1879 }
 0x7c5   :  { %vm1902_vm0 = vcmp.eq.f32.partialorder %v2884_v36, %v1880_v8 }
 0x7c6   :  { %v4141_v62 = vsel %vm1902_vm0, %v3968_v10, %v3965_v2  ;;  %v4144_v63 = vsel %vm1902_vm0, -1.0, %v3968_v10 }
 0x7c7   :  { %1959 = vmax.xlane.f32.xlu2 %v4144_v63 }
 0x7cc   :  { %v1882_v45 = vpop.xlane.xlu2 %1881 }
 0x7cd   :  { %vm1903_vm11 = vcmp.eq.f32.partialorder %v2884_v36, %v1882_v45 }
 0x7ce   :  { %v4150_v53 = vsel %vm1903_vm11, %v3977_v9, %v3974_v48  ;;  %v4153_v34 = vsel %vm1903_vm11, -1.0, %v3977_v9 }
 0x7cf   :  { %1961 = vmax.xlane.f32.xlu0 %v4153_v34 }
 0x7d4   :  { %v1884_v41 = vpop.xlane.xlu0 %1883 }
 0x7d5   :  { %vm1904_vm12 = vcmp.eq.f32.partialorder %v2884_v36, %v1884_v41 }
 0x7d6   :  { %v4159_v2 = vsel %vm1904_vm12, %v3986_v32, %v3983_v3  ;;  %v4162_v10 = vsel %vm1904_vm12, -1.0, %v3986_v32 }
 0x7d7   :  { %1963 = vmax.xlane.f32.xlu1 %v4162_v10 }
 0x7dc   :  { %v1886_v4 = vpop.xlane.xlu1 %1885 }
 0x7dd   :  { %vm1905_vm13 = vcmp.eq.f32.partialorder %v2884_v36, %v1886_v4 }
 0x7de   :  { %v4168_v48 = vsel %vm1905_vm13, %v3995_v56, %v3992_v28  ;;  %v4171_v9 = vsel %vm1905_vm13, -1.0, %v3995_v56 }
 0x7df   :  { %1965 = vmax.xlane.f32.xlu2 %v4171_v9 }
 0x7e4   :  { %v1888_v35 = vpop.xlane.xlu2 %1887 }
 0x7e5   :  { %vm1906_vm15 = vcmp.eq.f32.partialorder %v2884_v36, %v1888_v35 }
 0x7e6   :  { %v4177_v3 = vsel %vm1906_vm15, %v4004_v38, %v4001_v25  ;;  %v4180_v32 = vsel %vm1906_vm15, -1.0, %v4004_v38 }
 0x7e7   :  { %1967 = vmax.xlane.f32.xlu0 %v4180_v32 }
 0x7ec   :  { %v1890_v26 = vpop.xlane.xlu0 %1889 }
 0x7ed   :  { %vm1907_vm14 = vcmp.eq.f32.partialorder %v2884_v36, %v1890_v26 }
 0x7ee   :  { %v4186_v28 = vsel %vm1907_vm14, %v4013_v5, %v4010_v23  ;;  %v4189_v56 = vsel %vm1907_vm14, -1.0, %v4013_v5 }
 0x7ef   :  { %1969 = vmax.xlane.f32.xlu1 %v4189_v56 }
 0x7f2   :  { %v1942_v16 = vpop.xlane.xlu2 %1941 }
 0x7f3   :  { %vm1973_vm1 = vcmp.eq.f32.partialorder %v4061_v1, %v1942_v16 }
 0x7f4   :  { %v1989_v25 = vsel %vm1973_vm1, %v2884_v36, 128.0  ;;  %v1892_v38 = vpop.xlane.xlu1 %1891 }
 0x7f5   :  { %vm1908_vm2 = vcmp.eq.f32.partialorder %v2884_v36, %v1892_v38  ;;  %2005 = vmin.xlane.f32.xlu0 %v1989_v25 }
 0x7f6   :  { %v4197_v55 = vsel %vm1908_vm2, %v4024_v46, %v4021_v20  ;;  %v4200_v23 = vsel %vm1908_vm2, -1.0, %v4024_v46 }
 0x7f7   :  { %1971 = vmax.xlane.f32.xlu2 %v4200_v23 }
 0x7fa   :  { %v1944_v5 = vpop.xlane.xlu0 %1943 }
 0x7fb   :  { %vm1974_vm3 = vcmp.eq.f32.partialorder %v4072_v27, %v1944_v5 }
 0x7fc   :  { %v1990_v0 = vsel %vm1974_vm3, %v2884_v36, 128.0 }
 0x7fd   :  { %2007 = vmin.xlane.f32.xlu1 %v1990_v0 }
 0x802   :  { %v1946_v14 = vpop.xlane.xlu1 %1945 }
 0x803   :  { %vm1975_vm4 = vcmp.eq.f32.partialorder %v4081_v51, %v1946_v14 }
 0x804   :  { %v1991_v12 = vsel %vm1975_vm4, %v2884_v36, 128.0 }
 0x805   :  { %2009 = vmin.xlane.f32.xlu2 %v1991_v12 }
 0x80a   :  { %v1948_v52 = vpop.xlane.xlu2 %1947 }
 0x80b   :  { %vm1976_vm5 = vcmp.eq.f32.partialorder %v4090_v31, %v1948_v52 }
 0x80c   :  { %v1992_v20 = vsel %vm1976_vm5, %v2884_v36, 128.0 }
 0x80d   :  { %2011 = vmin.xlane.f32.xlu0 %v1992_v20 }
 0x812   :  { %v1950_v46 = vpop.xlane.xlu0 %1949 }
 0x813   :  { %vm1977_vm6 = vcmp.eq.f32.partialorder %v4099_v17, %v1950_v46 }
 0x814   :  { %v1993_v24 = vsel %vm1977_vm6, %v2884_v36, 128.0 }
 0x815   :  { %2013 = vmin.xlane.f32.xlu1 %v1993_v24 }
 0x81a   :  { %v1952_v30 = vpop.xlane.xlu1 %1951 }
 0x81b   :  { %vm1978_vm7 = vcmp.eq.f32.partialorder %v4108_v40, %v1952_v30 }
 0x81c   :  { %v1994_v59 = vsel %vm1978_vm7, %v2884_v36, 128.0 }
 0x81d   :  { %2015 = vmin.xlane.f32.xlu2 %v1994_v59 }
 0x822   :  { %v1954_v18 = vpop.xlane.xlu2 %1953 }
 0x823   :  { %vm1979_vm8 = vcmp.eq.f32.partialorder %v4117_v57, %v1954_v18 }
 0x824   :  { %v1995_v50 = vsel %vm1979_vm8, %v2884_v36, 128.0 }
 0x825   :  { %2017 = vmin.xlane.f32.xlu0 %v1995_v50 }
 0x82a   :  { %v1956_v47 = vpop.xlane.xlu0 %1955 }
 0x82b   :  { %vm1980_vm9 = vcmp.eq.f32.partialorder %v4126_v19, %v1956_v47 }
 0x82c   :  { %v1996_v61 = vsel %vm1980_vm9, %v2884_v36, 128.0 }
 0x82d   :  { %2019 = vmin.xlane.f32.xlu1 %v1996_v61 }
 0x832   :  { %v1958_v11 = vpop.xlane.xlu1 %1957 }
 0x833   :  { %vm1981_vm10 = vcmp.eq.f32.partialorder %v4135_v15, %v1958_v11 }
 0x834   :  { %v1997_v44 = vsel %vm1981_vm10, %v2884_v36, 128.0 }
 0x835   :  { %2021 = vmin.xlane.f32.xlu2 %v1997_v44 }
 0x83a   :  { %v1960_v42 = vpop.xlane.xlu2 %1959 }
 0x83b   :  { %vm1982_vm0 = vcmp.eq.f32.partialorder %v4144_v63, %v1960_v42 }
 0x83c   :  { %v1998_v37 = vsel %vm1982_vm0, %v2884_v36, 128.0 }
 0x83d   :  { %2023 = vmin.xlane.f32.xlu0 %v1998_v37 }
 0x842   :  { %v1962_v33 = vpop.xlane.xlu0 %1961 }
 0x843   :  { %vm1983_vm11 = vcmp.eq.f32.partialorder %v4153_v34, %v1962_v33 }
 0x844   :  { %v1999_v7 = vsel %vm1983_vm11, %v2884_v36, 128.0 }
 0x845   :  { %2025 = vmin.xlane.f32.xlu1 %v1999_v7 }
 0x84a   :  { %v1964_v60 = vpop.xlane.xlu1 %1963 }
 0x84b   :  { %vm1984_vm12 = vcmp.eq.f32.partialorder %v4162_v10, %v1964_v60 }
 0x84c   :  { %v2000_v13 = vsel %vm1984_vm12, %v2884_v36, 128.0 }
 0x84d   :  { %2027 = vmin.xlane.f32.xlu2 %v2000_v13 }
 0x852   :  { %v1966_v8 = vpop.xlane.xlu2 %1965 }
 0x853   :  { %vm1985_vm13 = vcmp.eq.f32.partialorder %v4171_v9, %v1966_v8 }
 0x854   :  { %v2001_v45 = vsel %vm1985_vm13, %v2884_v36, 128.0 }
 0x855   :  { %2029 = vmin.xlane.f32.xlu0 %v2001_v45 }
 0x85a   :  { %v1968_v41 = vpop.xlane.xlu0 %1967 }
 0x85b   :  { %vm1986_vm15 = vcmp.eq.f32.partialorder %v4180_v32, %v1968_v41 }
 0x85c   :  { %v2002_v4 = vsel %vm1986_vm15, %v2884_v36, 128.0 }
 0x85d   :  { %2031 = vmin.xlane.f32.xlu1 %v2002_v4 }
 0x862   :  { %v1970_v35 = vpop.xlane.xlu1 %1969 }
 0x863   :  { %vm1987_vm14 = vcmp.eq.f32.partialorder %v4189_v56, %v1970_v35 }
 0x864   :  { %v2003_v26 = vsel %vm1987_vm14, %v2884_v36, 128.0 }
 0x865   :  { %2033 = vmin.xlane.f32.xlu2 %v2003_v26 }
 0x868   :  { %v2006_v16 = vpop.xlane.xlu0 %2005 }
 0x869   :  { %vm2037_vm1 = vcmp.eq.f32.partialorder %v2884_v36, %v2006_v16 }
 0x86a   :  { %v2053_v25 = vsel %vm2037_vm1, %v4061_v1, %v4058_v22  ;;  %v1972_v38 = vpop.xlane.xlu2 %1971 }
 0x86b   :  { %2069 = vst [vmem:[#allocation7] sm:$0xff] %v2053_v25  ;;  %vm1988_vm2 = vcmp.eq.f32.partialorder %v4200_v23, %v1972_v38 }
 0x86c   :  { %v2004_v5 = vsel %vm1988_vm2, %v2884_v36, 128.0 }
 0x86d   :  { %2035 = vmin.xlane.f32.xlu0 %v2004_v5 }
 0x870   :  { %v2008_v0 = vpop.xlane.xlu1 %2007 }
 0x871   :  { %vm2038_vm3 = vcmp.eq.f32.partialorder %v2884_v36, %v2008_v0 }
 0x872   :  { %v2054_v14 = vsel %vm2038_vm3, %v4072_v27, %v4069_v43 }
 0x873   :  { %2070 = vst [vmem:[#allocation7 + $0x8] sm:$0xff] %v2054_v14 }
 0x878   :  { %v2010_v12 = vpop.xlane.xlu2 %2009 }
 0x879   :  { %vm2039_vm4 = vcmp.eq.f32.partialorder %v2884_v36, %v2010_v12 }
 0x87a   :  { %v2055_v22 = vsel %vm2039_vm4, %v4081_v51, %v4078_v58 }
 0x87b   :  { %2071 = vst [vmem:[#allocation7 + $0x10] sm:$0xff] %v2055_v22 }
 0x880   :  { %v2012_v1 = vpop.xlane.xlu0 %2011 }
 0x881   :  { %vm2040_vm5 = vcmp.eq.f32.partialorder %v2884_v36, %v2012_v1 }
 0x882   :  { %v2056_v52 = vsel %vm2040_vm5, %v4090_v31, %v4087_v29 }
 0x883   :  { %2072 = vst [vmem:[#allocation7 + $0x18] sm:$0xff] %v2056_v52 }
 0x888   :  { %v2014_v20 = vpop.xlane.xlu1 %2013 }
 0x889   :  { %vm2041_vm6 = vcmp.eq.f32.partialorder %v2884_v36, %v2014_v20 }
 0x88a   :  { %v2057_v43 = vsel %vm2041_vm6, %v4099_v17, %v4096_v6 }
 0x88b   :  { %2073 = vst [vmem:[#allocation7 + $0x20] sm:$0xff] %v2057_v43 }
 0x890   :  { %v2016_v27 = vpop.xlane.xlu2 %2015 }
 0x891   :  { %vm2042_vm7 = vcmp.eq.f32.partialorder %v2884_v36, %v2016_v27 }
 0x892   :  { %v2058_v58 = vsel %vm2042_vm7, %v4108_v40, %v4105_v54 }
 0x893   :  { %2074 = vst [vmem:[#allocation7 + $0x28] sm:$0xff] %v2058_v58 }
 0x898   :  { %v2018_v51 = vpop.xlane.xlu0 %2017 }
 0x899   :  { %vm2043_vm8 = vcmp.eq.f32.partialorder %v2884_v36, %v2018_v51 }
 0x89a   :  { %v2059_v29 = vsel %vm2043_vm8, %v4117_v57, %v4114_v39 }
 0x89b   :  { %2075 = vst [vmem:[#allocation7 + $0x30] sm:$0xff] %v2059_v29 }
 0x8a0   :  { %v2020_v31 = vpop.xlane.xlu1 %2019 }
 0x8a1   :  { %vm2044_vm9 = vcmp.eq.f32.partialorder %v2884_v36, %v2020_v31 }
 0x8a2   :  { %v2060_v6 = vsel %vm2044_vm9, %v4126_v19, %v4123_v21 }
 0x8a3   :  { %2076 = vst [vmem:[#allocation7 + $0x38] sm:$0xff] %v2060_v6 }
 0x8a8   :  { %v2022_v17 = vpop.xlane.xlu2 %2021 }
 0x8a9   :  { %vm2045_vm10 = vcmp.eq.f32.partialorder %v2884_v36, %v2022_v17 }
 0x8aa   :  { %v2061_v54 = vsel %vm2045_vm10, %v4135_v15, %v4132_v49 }
 0x8ab   :  { %2077 = vst [vmem:[#allocation7 + $0x40] sm:$0xff] %v2061_v54 }
 0x8b0   :  { %v2024_v40 = vpop.xlane.xlu0 %2023 }
 0x8b1   :  { %vm2046_vm0 = vcmp.eq.f32.partialorder %v2884_v36, %v2024_v40 }
 0x8b2   :  { %v2062_v39 = vsel %vm2046_vm0, %v4144_v63, %v4141_v62 }
 0x8b3   :  { %2078 = vst [vmem:[#allocation7 + $0x48] sm:$0xff] %v2062_v39 }
 0x8b8   :  { %v2026_v57 = vpop.xlane.xlu1 %2025 }
 0x8b9   :  { %vm2047_vm11 = vcmp.eq.f32.partialorder %v2884_v36, %v2026_v57 }
 0x8ba   :  { %v2063_v21 = vsel %vm2047_vm11, %v4153_v34, %v4150_v53 }
 0x8bb   :  { %2079 = vst [vmem:[#allocation7 + $0x50] sm:$0xff] %v2063_v21 }
 0x8c0   :  { %v2028_v19 = vpop.xlane.xlu2 %2027 }
 0x8c1   :  { %vm2048_vm12 = vcmp.eq.f32.partialorder %v2884_v36, %v2028_v19 }
 0x8c2   :  { %v2064_v49 = vsel %vm2048_vm12, %v4162_v10, %v4159_v2 }
 0x8c3   :  { %2080 = vst [vmem:[#allocation7 + $0x58] sm:$0xff] %v2064_v49 }
 0x8c8   :  { %v2030_v15 = vpop.xlane.xlu0 %2029 }
 0x8c9   :  { %vm2049_vm13 = vcmp.eq.f32.partialorder %v2884_v36, %v2030_v15 }
 0x8ca   :  { %v2065_v62 = vsel %vm2049_vm13, %v4171_v9, %v4168_v48 }
 0x8cb   :  { %2081 = vst [vmem:[#allocation7 + $0x60] sm:$0xff] %v2065_v62 }
 0x8d0   :  { %v2032_v63 = vpop.xlane.xlu1 %2031 }
 0x8d1   :  { %vm2050_vm15 = vcmp.eq.f32.partialorder %v2884_v36, %v2032_v63 }
 0x8d2   :  { %v2066_v53 = vsel %vm2050_vm15, %v4180_v32, %v4177_v3 }
 0x8d3   :  { %2082 = vst [vmem:[#allocation7 + $0x68] sm:$0xff] %v2066_v53 }
 0x8d8   :  { %v2034_v34 = vpop.xlane.xlu2 %2033 }
 0x8d9   :  { %vm2051_vm14 = vcmp.eq.f32.partialorder %v2884_v36, %v2034_v34 }
 0x8da   :  { %v2067_v2 = vsel %vm2051_vm14, %v4189_v56, %v4186_v28 }
 0x8db   :  { %2083 = vst [vmem:[#allocation7 + $0x70] sm:$0xff] %v2067_v2 }
 0x8e0   :  { %v2036_v10 = vpop.xlane.xlu0 %2035 }
 0x8e1   :  { %vm2052_vm1 = vcmp.eq.f32.partialorder %v2884_v36, %v2036_v10 }
 0x8e2   :  { %v2068_v48 = vsel %vm2052_vm1, %v4200_v23, %v4197_v55 }
 0x8e3   :  { %2084 = vst [vmem:[#allocation7 + $0x78] sm:$0xff] %v2068_v48 }
 0x8e4   :  { %2097 = dma.vmem_to_hbm [thread:$0]  %s2090_s1, 2048, %s2092_s23, [#allocation4], %s2253_s17, %s2253_s17, %s2254_s18  }
 0x8e5   :  { %2250 = dma.done.wait [#allocation4], 2048  }
 0x8e6   :  { %2251 = vsyncadd [#allocation4], 4294965248 }
 0x8e7   :  { %2102 = vsyncpa [#allocation3], 1 }
 0x8e8   :  { %2103 = vsyncpa [#allocation6], 1 }
 0x8e9   :  { %2104 = vsyncpa [#allocation4], 1 }

</bundles_post_ra>
